<compile_context>
chip_gen: v6e
topology: v6e:2x2x1
jax: 0.10.0
libtpu: 0.0.40
codegen_flags: <defaults>
</compile_context>

<pallas_src>
import math

import jax
import jax.numpy as jnp
from jax import lax
from jax.experimental import pallas as pl
from jax.experimental.pallas import tpu as pltpu

D = 32          # feature_dim / enc_dim
K = 4           # number of foreground slots
EPS_LN = 1e-5   # torch.nn.LayerNorm default eps
STD_RGB = 0.1
C_LP = -math.log(STD_RGB) - 0.5 * math.log(2.0 * math.pi)   # Normal log-prob constant


# ----------------------------------------------------------------------------
# small in-kernel helpers
# ----------------------------------------------------------------------------
def _dot(a, b):
    return jnp.dot(a, b, preferred_element_type=jnp.float32)


def _layernorm(x, g, b):
    mu = jnp.mean(x, axis=-1, keepdims=True)
    var = jnp.mean((x - mu) ** 2, axis=-1, keepdims=True)
    return (x - mu) * lax.rsqrt(var + EPS_LN) * g + b


def _mlp(x, w1, b1, w2, b2):
    # MLP(in, hidden, out) assumed Linear->ReLU->Linear (source not provided).
    h = jnp.maximum(_dot(x, w1) + b1, 0.0)
    return _dot(h, w2) + b2


def _gru_cell(x, h, w_ih, w_hh, b_ih, b_hh):
    # torch.nn.GRUCell semantics, gate order (r, z, n); weights stored (in, 3D).
    gi = _dot(x, w_ih) + b_ih
    gh = _dot(h, w_hh) + b_hh
    r = jax.nn.sigmoid(gi[:, 0 * D:1 * D] + gh[:, 0 * D:1 * D])
    z = jax.nn.sigmoid(gi[:, 1 * D:2 * D] + gh[:, 1 * D:2 * D])
    n = jnp.tanh(gi[:, 2 * D:3 * D] + r * gh[:, 2 * D:3 * D])
    return (1.0 - z) * n + z * h


# ----------------------------------------------------------------------------
# Kernel 1: fused point-feature lift + encoder head + slot attention (per batch)
# ----------------------------------------------------------------------------
def enc_slot_kernel(x_ref, fg_init_ref, bg_init_ref,
                    w_penc_ref, w_fh1_ref, w_fh2_ref, w_pos8_ref,
                    enc_vec_ref, enc_mats_ref,
                    w_kvv_ref, b_kvv_ref,
                    slot_vec_ref, slot_mats_ref,
                    gru_w_ref, gru_b_ref,
                    fg_out_ref, bg_out_ref):
    x = x_ref[...]                                   # (N, 8): [pcd(3), rgb(3), 0, 0]
    ev = enc_vec_ref[...]                            # (6, D): b_fh1,b_fh2,b_m1,b_m2,ln_g,ln_b

    # --- surrogate KPConv lift (TODO(synk)) fused in: (N,8)@(8,16) ---
    feat = _dot(x, w_penc_ref[...])                  # (N, 16)

    # --- feature_head MLP layer 1 ---
    h = jnp.maximum(_dot(feat, w_fh1_ref[...]) + ev[0], 0.0)          # (N, D)

    # --- feature_head layer 2 + position_net: two matmuls (no lane concat) ---
    enc = _dot(h, w_fh2_ref[...]) + _dot(x, w_pos8_ref[...]) + ev[1]  # (N, D)

    enc = _layernorm(enc, ev[4], ev[5])                               # enc_norm
    em = enc_mats_ref[...]                                            # (2, D, D)
    enc = _dot(jnp.maximum(_dot(enc, em[0]) + ev[2], 0.0), em[1]) + ev[3]   # enc_mlp

    # --- slot attention ---
    sv = slot_vec_ref[...]                           # (20, D)
    sm = slot_mats_ref[...]                          # (6, D, D)
    gw = gru_w_ref[...]                              # (4, D, 3D)
    gb = gru_b_ref[...]                              # (4, 3D)

    inpt = _layernorm(enc, sv[4], sv[5])             # inpt_norm
    # fused k / v_fg / v_bg projection: one (D, 3D) matmul
    kvv = _dot(inpt, w_kvv_ref[...]) + b_kvv_ref[...]                 # (N, 3D)
    kT = jnp.transpose(kvv[:, 0 * D:1 * D])          # (D, N): ONE hoisted transpose
    fg_v = kvv[:, 1 * D:2 * D]
    bg_v = kvv[:, 2 * D:3 * D]

    fg_slots = sv[0:1] + jnp.exp(sv[1:2]) * fg_init_ref[...]          # (K, D)
    bg_slots = sv[2:3] + jnp.exp(sv[3:4]) * bg_init_ref[...]          # (1, D)

    scale = D ** (-0.5)
    for _ in range(3):
        fg_prev = fg_slots
        bg_prev = bg_slots
        fg_n = _layernorm(fg_slots, sv[6], sv[7])    # slot_norm_fg
        bg_n = _layernorm(bg_slots, sv[8], sv[9])    # slot_norm_bg
        fg_q = _dot(fg_n, sm[0]) + sv[14]            # (K, D)
        bg_q = _dot(bg_n, sm[1]) + sv[15]            # (1, D)
        q = jnp.concatenate([bg_q, fg_q], axis=0)    # (K+1, D)

        # lane-dense attention: (K+1, D) @ (D, N), transpose-free in the loop.
        logits = _dot(q, kT) * scale                           # (K+1, N)
        attn = jax.nn.softmax(logits, axis=0) + 1e-8           # softmax over slots
        attn_v = attn / jnp.sum(attn, axis=1, keepdims=True)   # normalize over N

        fg_updates = _dot(attn_v[1:K + 1], fg_v)     # (K, N)@(N, D) -> (K, D)
        bg_updates = _dot(attn_v[0:1], bg_v)         # (1, D)

        fg_slots = _gru_cell(fg_updates, fg_prev, gw[0], gw[1], gb[0], gb[1])
        bg_slots = _gru_cell(bg_updates, bg_prev, gw[2], gw[3], gb[2], gb[3])

        fg_slots = fg_slots + _mlp(_layernorm(fg_slots, sv[10], sv[11]),
                                   sm[2], sv[16], sm[3], sv[17])
        bg_slots = bg_slots + _mlp(_layernorm(bg_slots, sv[12], sv[13]),
                                   sm[4], sv[18], sm[5], sv[19])

    fg_out_ref[...] = fg_slots
    bg_out_ref[...] = bg_slots


def _k1_vmem_limit(N):
    # x8 double-buffered + ~6 lane-padded N-row f32 intermediates + params.
    est = (2 * N * 128 + 6 * N * 128) * 4 + (1 << 20)
    return int(min(64 * 1024 * 1024, max(32 * 1024 * 1024, est)))


def encode_and_slot_att(pcd, rgb, fg_init, bg_init, p):
    B, N, _ = pcd.shape
    # pack pcd+rgb into one 8-wide (32-byte-row) input stream
    x8 = jnp.concatenate([pcd, rgb, jnp.zeros((B, N, 2), jnp.float32)], axis=-1)

    bmap = lambda b: (b, 0, 0)
    p2 = lambda b: (0, 0)
    p3 = lambda b: (0, 0, 0)
    in_specs = [
        pl.BlockSpec((None, N, 8), bmap),
        pl.BlockSpec((None, K, D), bmap),
        pl.BlockSpec((None, 1, D), bmap),
        pl.BlockSpec((8, 16), p2),
        pl.BlockSpec((16, D), p2),
        pl.BlockSpec((D, D), p2),
        pl.BlockSpec((8, D), p2),
        pl.BlockSpec((6, D), p2),
        pl.BlockSpec((2, D, D), p3),
        pl.BlockSpec((D, 3 * D), p2),
        pl.BlockSpec((1, 3 * D), p2),
        pl.BlockSpec((20, D), p2),
        pl.BlockSpec((6, D, D), p3),
        pl.BlockSpec((4, D, 3 * D), p3),
        pl.BlockSpec((4, 3 * D), p2),
    ]
    out_specs = [pl.BlockSpec((None, K, D), bmap),
                 pl.BlockSpec((None, 1, D), bmap)]
    out_shape = [jax.ShapeDtypeStruct((B, K, D), jnp.float32),
                 jax.ShapeDtypeStruct((B, 1, D), jnp.float32)]
    fg, bg = pl.pallas_call(
        enc_slot_kernel,
        grid=(B,),
        in_specs=in_specs,
        out_specs=out_specs,
        out_shape=out_shape,
        compiler_params=pltpu.CompilerParams(
            dimension_semantics=("parallel",),
            vmem_limit_bytes=_k1_vmem_limit(N)),
    )(x8, fg_init, bg_init,
      p["w_penc8"], p["w_fh1"], p["w_fh2"], p["w_pos8"], p["enc_vec"],
      p["enc_mats"], p["w_kvv"], p["b_kvv"], p["slot_vec"], p["slot_mats"],
      p["gru_w"], p["gru_b"])
    return fg, bg[:, 0]                              # bg_slots[:, 0] as in torch


# ----------------------------------------------------------------------------
# Kernel 2: eval_sigma + compute_loss, tiled over query points P
#   inputs are pre-packed in the wrapper:
#     rgb15 / recon15 : (B, 3*(K+1), P)  channel-major, slot-minor (bg first)
#     ls / la         : (B, K+1, P)      bg first
#     w_air           : (B, 1, P)        = 10 / importance_air
# ----------------------------------------------------------------------------
def sigma_loss_kernel(rgb15_ref, recon15_ref, ls_ref, la_ref, wair_ref,
                      sig_surf_ref, sig_air_ref,
                      rgb_loss_ref, air_ref, surf_ref):
    t = pl.program_id(1)

    @pl.when(t == 0)
    def _():
        rgb_loss_ref[...] = jnp.zeros_like(rgb_loss_ref)
        air_ref[...] = jnp.zeros_like(air_ref)
        surf_ref[...] = jnp.zeros_like(surf_ref)

    # --- eval_sigma (surface): reuse exp(ls - m) for softplus AND softmax ---
    ls = ls_ref[...]                                                       # (K+1, TP)
    # clamp the shift so exp(-m) cannot overflow (stable softplus, exact identity)
    m = jnp.maximum(jnp.max(ls, axis=0, keepdims=True), -30.0)             # (1, TP)
    e = jnp.exp(ls - m)                                                    # (K+1, TP)
    inv_se = pl.reciprocal(jnp.sum(e, axis=0, keepdims=True), approx=True)
    share = e * inv_se                                                     # softmax over slots
    sp = jnp.log(jnp.exp(-m) + e) + m                                      # softplus(ls)
    joint = jnp.tanh(jnp.sum(sp, axis=0, keepdims=True))                   # (1, TP)
    sigma_surface = joint * share                                          # (K+1, TP)
    sig_surf_ref[...] = sigma_surface

    # --- eval_sigma (air) ---
    la = la_ref[...]                                                       # (K+1, TP)
    ma = jnp.maximum(jnp.max(la, axis=0, keepdims=True), -30.0)
    ea = jnp.exp(la - ma)
    spa = jnp.log(jnp.exp(-ma) + ea) + ma
    sigma_air = jnp.tanh(jnp.sum(spa, axis=0, keepdims=True))              # (1, TP)
    sig_air_ref[...] = sigma_air

    # --- compute_loss: RGB mixture on dense 15-row layout ---
    d = (rgb15_ref[...] - recon15_ref[...]) * (1.0 / STD_RGB)              # (15, TP)
    lp = -0.5 * d * d                                                      # <= 0
    mlp_ = jnp.max(lp, axis=0, keepdims=True)                              # joint max, <= 0
    w = jnp.exp(lp - mlp_)                                                 # (15, TP)
    mscale = jnp.exp(mlp_ + C_LP)                                          # (1, TP), bounded
    sig_eps = sigma_surface + 1e-8                                         # (K+1, TP)
    loss = jnp.zeros((1, 1), jnp.float32)
    for c in range(3):
        w_c = w[c * (K + 1):(c + 1) * (K + 1)]                             # (K+1, TP)
        s_c = jnp.sum(sig_eps * w_c, axis=0, keepdims=True)                # (1, TP)
        # exactly -log( sum_k (sigma+1e-8)*exp(lp_full) + 1e-8 )
        loss = loss + jnp.sum(-jnp.log(mscale * s_c + 1e-8),
                              axis=1, keepdims=True)
    rgb_loss_ref[...] += loss

    air_ref[...] += jnp.sum(sigma_air * wair_ref[...], axis=1, keepdims=True)

    # sum_k sigma_surface == joint (softmax sums to 1)
    surf_ref[...] += jnp.sum(-jnp.log(10.0 * joint + 1e-8),
                             axis=1, keepdims=True)


def _choose_tile(P):
    # largest lane-aligned tile that divides P; per-tile VMEM is small, so go big
    for t in (16384, 8192, 4096, 2048, 1024, 512, 256, 128):
        if P % t == 0:
            return t
    return P


def sigma_and_loss(rgb15, recon15, ls_all, la_all, w_air):
    B, R, P = rgb15.shape                 # R = 3*(K+1)
    TP = _choose_tile(P)
    nt = P // TP
    i3 = lambda b, t: (b, 0, t)
    acc = lambda b, t: (b, 0, 0)
    in_specs = [
        pl.BlockSpec((None, R, TP), i3),
        pl.BlockSpec((None, R, TP), i3),
        pl.BlockSpec((None, K + 1, TP), i3),
        pl.BlockSpec((None, K + 1, TP), i3),
        pl.BlockSpec((None, 1, TP), i3),
    ]
    out_specs = [
        pl.BlockSpec((None, K + 1, TP), i3),
        pl.BlockSpec((None, 1, TP), i3),
        pl.BlockSpec((None, 1, 1), acc),
        pl.BlockSpec((None, 1, 1), acc),
        pl.BlockSpec((None, 1, 1), acc),
    ]
    out_shape = [
        jax.ShapeDtypeStruct((B, K + 1, P), jnp.float32),
        jax.ShapeDtypeStruct((B, 1, P), jnp.float32),
        jax.ShapeDtypeStruct((B, 1, 1), jnp.float32),
        jax.ShapeDtypeStruct((B, 1, 1), jnp.float32),
        jax.ShapeDtypeStruct((B, 1, 1), jnp.float32),
    ]
    return pl.pallas_call(
        sigma_loss_kernel,
        grid=(B, nt),
        in_specs=in_specs,
        out_specs=out_specs,
        out_shape=out_shape,
        compiler_params=pltpu.CompilerParams(
            dimension_semantics=("parallel", "arbitrary"),
            vmem_limit_bytes=48 * 1024 * 1024),
    )(rgb15, recon15, ls_all, la_all, w_air)


# ----------------------------------------------------------------------------
# parameter init (deterministic, synthetic) -> kernel-ready packed arrays
# ----------------------------------------------------------------------------
def init_params(key):
    keys = iter(jax.random.split(key, 64))

    def nrm(shape, s=0.1):
        return jax.random.normal(next(keys), shape, jnp.float32) * s

    # ---- logical parameters (mirroring the torch module) ----
    w_penc = nrm((6, 16))                        # TODO(synk): surrogate KPConv lift
    w_fh1, b_fh1 = nrm((16, D)), nrm((1, D), 0.01)     # feature_head = MLP(16,32,32)
    w_fh2, b_fh2 = nrm((D, D)), nrm((1, D), 0.01)
    w_pos = nrm((3, D))                          # position_net = Linear(3,32,bias=False)
    enc_ln_g = jnp.ones((1, D), jnp.float32)
    enc_ln_b = jnp.zeros((1, D), jnp.float32)
    w_m1, b_m1 = nrm((D, D)), nrm((1, D), 0.01)  # enc_mlp = MLP(32,32,32)
    w_m2, b_m2 = nrm((D, D)), nrm((1, D), 0.01)
    slot_prior = jnp.concatenate([nrm((1, D)), nrm((1, D), 0.01),
                                  nrm((1, D)), nrm((1, D), 0.01)], axis=0)  # mu/logsig fg,bg
    ln_pair = jnp.concatenate([jnp.ones((1, D)), jnp.zeros((1, D))], axis=0)
    ln = jnp.concatenate([ln_pair] * 5, axis=0).astype(jnp.float32)   # inpt,slot_fg,slot_bg,res_fg,res_bg
    w_k, b_k = nrm((D, D)), nrm((1, D), 0.01)
    w_qfg, b_qfg = nrm((D, D)), nrm((1, D), 0.01)
    w_qbg, b_qbg = nrm((D, D)), nrm((1, D), 0.01)
    w_vfg, b_vfg = nrm((D, D)), nrm((1, D), 0.01)
    w_vbg, b_vbg = nrm((D, D)), nrm((1, D), 0.01)
    gru_fg_wih, gru_fg_whh = nrm((D, 3 * D)), nrm((D, 3 * D))   # (in, 3D), gates (r,z,n)
    gru_fg_bih, gru_fg_bhh = nrm((1, 3 * D), 0.01), nrm((1, 3 * D), 0.01)
    gru_bg_wih, gru_bg_whh = nrm((D, 3 * D)), nrm((D, 3 * D))
    gru_bg_bih, gru_bg_bhh = nrm((1, 3 * D), 0.01), nrm((1, 3 * D), 0.01)
    res_fg_w, res_fg_b = nrm((2, D, D)), nrm((2, D), 0.01)
    res_bg_w, res_bg_b = nrm((2, D, D)), nrm((2, D), 0.01)

    # ---- kernel-ready packed parameters ----
    p = {}
    p["w_penc8"] = jnp.concatenate([w_penc, jnp.zeros((2, 16), jnp.float32)], axis=0)
    p["w_fh1"] = w_fh1
    p["w_fh2"] = w_fh2
    # W_pos padded to 8 rows so x8 (pcd, rgb, pad) @ w_pos8 == position_net(pcd)
    p["w_pos8"] = jnp.concatenate([w_pos, jnp.zeros((5, D), jnp.float32)], axis=0)
    p["enc_vec"] = jnp.concatenate([b_fh1, b_fh2, b_m1, b_m2, enc_ln_g, enc_ln_b], axis=0)
    p["enc_mats"] = jnp.stack([w_m1, w_m2], axis=0)
    p["w_kvv"] = jnp.concatenate([w_k, w_vfg, w_vbg], axis=1)          # (D, 3D)
    p["b_kvv"] = jnp.concatenate([b_k, b_vfg, b_vbg], axis=1)          # (1, 3D)
    # rows: 0-3 prior, 4-13 LN pairs, 14 b_qfg, 15 b_qbg, 16-17 res_fg b, 18-19 res_bg b
    p["slot_vec"] = jnp.concatenate([slot_prior, ln, b_qfg, b_qbg,
                                     res_fg_b, res_bg_b], axis=0)       # (20, D)
    p["slot_mats"] = jnp.concatenate([w_qfg[None], w_qbg[None],
                                      res_fg_w, res_bg_w], axis=0)      # (6, D, D)
    p["gru_w"] = jnp.stack([gru_fg_wih, gru_fg_whh, gru_bg_wih, gru_bg_whh], axis=0)
    p["gru_b"] = jnp.concatenate([gru_fg_bih, gru_fg_bhh,
                                  gru_bg_bih, gru_bg_bhh], axis=0)      # (4, 3D)
    return p


# ----------------------------------------------------------------------------
# forward
# ----------------------------------------------------------------------------
def obpose_forward(params, pcd, rgb, depth, camera_in, camera_ex, key):
    B, P, _ = pcd.shape
    res = depth.shape[1]
    del camera_in, camera_ex  # TODO(synk): compute_camera depends on undefined loc2extr

    ks = jax.random.split(key, 10)
    fg_init = jax.random.normal(ks[0], (B, K, D), jnp.float32)
    bg_init = jax.random.normal(ks[1], (B, 1, D), jnp.float32)

    # Pallas kernel 1: fused point-feature lift + encoder head + slot attention.
    # TODO(synk): PointEncoderKPConv source not provided; the kernel uses a
    # linear 6->16 surrogate lift and keeps all points (pcd2 = pcd).
    slots, bg_slots = encode_and_slot_att(pcd, rgb, fg_init, bg_init, params)
    pcd2 = pcd

    # TODO(synk): sample_query_points depends on loc2extr; only importance_air
    # (a pure function of depth) feeds the loss and is reproduced here.
    near_far = jax.random.randint(ks[2], (B, res, res), 0, 2).astype(jnp.float32)
    importance_air = (near_far * 0.5 * (1.0 / (0.98 * depth))
                      + (1.0 - near_far) * 0.5 * (1.0 / (0.02 * depth)))
    importance_air = importance_air.reshape(B, 1, res * res)            # (B, 1, P)
    w_air = 10.0 / importance_air                                       # precomputed weight

    # TODO(synk): Nerf / ObjectModule / Background sources not provided;
    # deterministic stand-in radiance/occupancy fields are used here.
    obj_rgb = jax.nn.sigmoid(jax.random.normal(ks[3], (B, K, 3, P), jnp.float32))
    bg_rgb = jax.nn.sigmoid(jax.random.normal(ks[4], (B, 1, 3, P), jnp.float32))
    obj_ls = jax.random.normal(ks[5], (B, K, P), jnp.float32)
    obj_la = jax.random.normal(ks[6], (B, K, P), jnp.float32)
    bg_ls = jax.random.normal(ks[7], (B, 1, P), jnp.float32)
    bg_la = jax.random.normal(ks[8], (B, 1, P), jnp.float32)

    # ---- one-time wrapper-side packing (keeps the kernel hot loop relayout-free)
    ls_all = jnp.concatenate([bg_ls, obj_ls], axis=1)                   # (B, K+1, P)
    la_all = jnp.concatenate([bg_la, obj_la], axis=1)                   # (B, K+1, P)
    recon = jnp.concatenate([bg_rgb, obj_rgb], axis=1)                  # (B, K+1, 3, P)
    recon15 = jnp.transpose(recon, (0, 2, 1, 3)).reshape(B, 3 * (K + 1), P)
    rgb_cl = jnp.transpose(rgb, (0, 2, 1))                              # (B, 3, P)
    rgb15 = jnp.repeat(rgb_cl, K + 1, axis=1)                           # (B, 15, P)

    # Pallas kernel 2: eval_sigma + compute_loss (tiled over P).
    (sigma_surface, sigma_air,
     rgb_loss_b, air_sum_b, surf_loss_b) = sigma_and_loss(
        rgb15, recon15, ls_all, la_all, w_air)

    loss_dict = {
        "rgb_loss": jnp.mean(rgb_loss_b[:, 0, 0]),
        "sigma_air_loss": jnp.sum(air_sum_b[:, 0, 0]) / B,
        "sigma_surface_loss": jnp.mean(surf_loss_b[:, 0, 0]),
    }
    loss_dict["sum"] = (loss_dict["rgb_loss"] + loss_dict["sigma_air_loss"]
                        + loss_dict["sigma_surface_loss"])
    out_dict = {
        "slots": slots,
        "bg_slots": bg_slots,
        "sigma_surface": sigma_surface,
        "sigma_air": sigma_air,
        "pcd2": pcd2,
    }
    return loss_dict, out_dict


# ----------------------------------------------------------------------------
if __name__ == "__main__":
    B, res = 2, 8
    P = res * res                                    # 64 points / rays (small demo size)

    key = jax.random.PRNGKey(0)
    k_pcd, k_rgb, k_dep, k_par, k_fwd = jax.random.split(key, 5)

    pcd = jax.random.normal(k_pcd, (B, P, 3), jnp.float32)
    rgb = jax.random.uniform(k_rgb, (B, P, 3), jnp.float32)
    depth = jax.random.uniform(k_dep, (B, res, res), jnp.float32,
                               minval=0.5, maxval=2.0)
    camera_in = jnp.tile(jnp.eye(3, dtype=jnp.float32)[None], (B, 1, 1))
    camera_ex = jnp.tile(jnp.eye(4, dtype=jnp.float32)[None], (B, 1, 1))

    params = init_params(k_par)

    loss_dict, out_dict = obpose_forward(params, pcd, rgb, depth,
                                         camera_in, camera_ex, k_fwd)
    jax.block_until_ready((loss_dict, out_dict))
    print("KERNEL_OK")
</pallas_src>

<mosaic_0001>
module attributes {stable_mosaic.version = 11 : i64} {
  func.func @enc_slot_kernel(%arg0: i32, %arg1: memref<1x64x8xf32, #tpu.memory_space<vmem>>, %arg2: memref<1x4x32xf32, #tpu.memory_space<vmem>>, %arg3: memref<1x1x32xf32, #tpu.memory_space<vmem>>, %arg4: memref<8x16xf32, #tpu.memory_space<vmem>>, %arg5: memref<16x32xf32, #tpu.memory_space<vmem>>, %arg6: memref<32x32xf32, #tpu.memory_space<vmem>>, %arg7: memref<8x32xf32, #tpu.memory_space<vmem>>, %arg8: memref<6x32xf32, #tpu.memory_space<vmem>>, %arg9: memref<2x32x32xf32, #tpu.memory_space<vmem>>, %arg10: memref<32x96xf32, #tpu.memory_space<vmem>>, %arg11: memref<1x96xf32, #tpu.memory_space<vmem>>, %arg12: memref<20x32xf32, #tpu.memory_space<vmem>>, %arg13: memref<6x32x32xf32, #tpu.memory_space<vmem>>, %arg14: memref<4x32x96xf32, #tpu.memory_space<vmem>>, %arg15: memref<4x96xf32, #tpu.memory_space<vmem>>, %arg16: memref<1x4x32xf32, #tpu.memory_space<vmem>>, %arg17: memref<1x1x32xf32, #tpu.memory_space<vmem>>) attributes {dimension_semantics = [#tpu.dimension_semantics<parallel>], iteration_bounds = array<i64: 2>, scalar_prefetch = 0 : i64, scratch_operands = 0 : i64, tpu.core_type = #tpu.core_type<tc>, window_params = [{transform_indices = @transform_0, window_bounds = array<i64: 1, 64, 8>}, {transform_indices = @transform_1, window_bounds = array<i64: 1, 4, 32>}, {transform_indices = @transform_2, window_bounds = array<i64: 1, 1, 32>}, {pipeline_mode = #tpu.pipeline_mode<synchronous>, transform_indices = @transform_3, window_bounds = array<i64: 8, 16>}, {pipeline_mode = #tpu.pipeline_mode<synchronous>, transform_indices = @transform_4, window_bounds = array<i64: 16, 32>}, {pipeline_mode = #tpu.pipeline_mode<synchronous>, transform_indices = @transform_5, window_bounds = array<i64: 32, 32>}, {pipeline_mode = #tpu.pipeline_mode<synchronous>, transform_indices = @transform_6, window_bounds = array<i64: 8, 32>}, {pipeline_mode = #tpu.pipeline_mode<synchronous>, transform_indices = @transform_7, window_bounds = array<i64: 6, 32>}, {pipeline_mode = #tpu.pipeline_mode<synchronous>, transform_indices = @transform_8, window_bounds = array<i64: 2, 32, 32>}, {pipeline_mode = #tpu.pipeline_mode<synchronous>, transform_indices = @transform_9, window_bounds = array<i64: 32, 96>}, {pipeline_mode = #tpu.pipeline_mode<synchronous>, transform_indices = @transform_10, window_bounds = array<i64: 1, 96>}, {pipeline_mode = #tpu.pipeline_mode<synchronous>, transform_indices = @transform_11, window_bounds = array<i64: 20, 32>}, {pipeline_mode = #tpu.pipeline_mode<synchronous>, transform_indices = @transform_12, window_bounds = array<i64: 6, 32, 32>}, {pipeline_mode = #tpu.pipeline_mode<synchronous>, transform_indices = @transform_13, window_bounds = array<i64: 4, 32, 96>}, {pipeline_mode = #tpu.pipeline_mode<synchronous>, transform_indices = @transform_14, window_bounds = array<i64: 4, 96>}, {transform_indices = @transform_15, window_bounds = array<i64: 1, 4, 32>}, {transform_indices = @transform_16, window_bounds = array<i64: 1, 1, 32>}]} {
    %c0 = arith.constant 0 : index
    %c0_0 = arith.constant 0 : index
    %c0_1 = arith.constant 0 : index
    %0 = vector.load %arg1[%c0, %c0_0, %c0_1] : memref<1x64x8xf32, #tpu.memory_space<vmem>>, vector<1x64x8xf32>
    %1 = vector.shape_cast %0 : vector<1x64x8xf32> to vector<64x8xf32>
    %c0_2 = arith.constant 0 : index
    %c0_3 = arith.constant 0 : index
    %2 = vector.load %arg8[%c0_2, %c0_3] : memref<6x32xf32, #tpu.memory_space<vmem>>, vector<6x32xf32>
    %c0_4 = arith.constant 0 : index
    %c0_5 = arith.constant 0 : index
    %3 = vector.load %arg4[%c0_4, %c0_5] : memref<8x16xf32, #tpu.memory_space<vmem>>, vector<8x16xf32>
    %cst = arith.constant dense<0.000000e+00> : vector<64x16xf32>
    %4 = tpu.matmul %1, %3, %cst {dimension_numbers = #tpu.dot_dimension_numbers<[1], [0], [0], [1], [0, 0, 1, 1], [], []>} : vector<64x8xf32>, vector<8x16xf32>, vector<64x16xf32> -> vector<64x16xf32>
    %c0_6 = arith.constant 0 : index
    %c0_7 = arith.constant 0 : index
    %5 = vector.load %arg5[%c0_6, %c0_7] : memref<16x32xf32, #tpu.memory_space<vmem>>, vector<16x32xf32>
    %cst_8 = arith.constant dense<0.000000e+00> : vector<64x32xf32>
    %6 = tpu.matmul %4, %5, %cst_8 {dimension_numbers = #tpu.dot_dimension_numbers<[1], [0], [0], [1], [0, 0, 1, 1], [], []>} : vector<64x16xf32>, vector<16x32xf32>, vector<64x32xf32> -> vector<64x32xf32>
    %7 = vector.extract_strided_slice %2 {offsets = [0, 0], sizes = [1, 32], strides = [1, 1]} : vector<6x32xf32> to vector<1x32xf32>
    %8 = vector.shape_cast %7 : vector<1x32xf32> to vector<32xf32>
    %9 = vector.shape_cast %8 : vector<32xf32> to vector<1x32xf32>
    %10 = vector.broadcast %9 : vector<1x32xf32> to vector<64x32xf32>
    %11 = arith.addf %6, %10 : vector<64x32xf32>
    %cst_9 = arith.constant 0.000000e+00 : f32
    %12 = vector.broadcast %cst_9 : f32 to vector<64x32xf32>
    %13 = arith.maximumf %11, %12 : vector<64x32xf32>
    %c0_10 = arith.constant 0 : index
    %c0_11 = arith.constant 0 : index
    %14 = vector.load %arg6[%c0_10, %c0_11] : memref<32x32xf32, #tpu.memory_space<vmem>>, vector<32x32xf32>
    %cst_12 = arith.constant dense<0.000000e+00> : vector<64x32xf32>
    %15 = tpu.matmul %13, %14, %cst_12 {dimension_numbers = #tpu.dot_dimension_numbers<[1], [0], [0], [1], [0, 0, 1, 1], [], []>} : vector<64x32xf32>, vector<32x32xf32>, vector<64x32xf32> -> vector<64x32xf32>
    %c0_13 = arith.constant 0 : index
    %c0_14 = arith.constant 0 : index
    %16 = vector.load %arg7[%c0_13, %c0_14] : memref<8x32xf32, #tpu.memory_space<vmem>>, vector<8x32xf32>
    %cst_15 = arith.constant dense<0.000000e+00> : vector<64x32xf32>
    %17 = tpu.matmul %1, %16, %cst_15 {dimension_numbers = #tpu.dot_dimension_numbers<[1], [0], [0], [1], [0, 0, 1, 1], [], []>} : vector<64x8xf32>, vector<8x32xf32>, vector<64x32xf32> -> vector<64x32xf32>
    %18 = arith.addf %15, %17 : vector<64x32xf32>
    %19 = vector.extract_strided_slice %2 {offsets = [1, 0], sizes = [1, 32], strides = [1, 1]} : vector<6x32xf32> to vector<1x32xf32>
    %20 = vector.shape_cast %19 : vector<1x32xf32> to vector<32xf32>
    %21 = vector.shape_cast %20 : vector<32xf32> to vector<1x32xf32>
    %22 = vector.broadcast %21 : vector<1x32xf32> to vector<64x32xf32>
    %23 = arith.addf %18, %22 : vector<64x32xf32>
    %24 = vector.extract_strided_slice %2 {offsets = [4, 0], sizes = [1, 32], strides = [1, 1]} : vector<6x32xf32> to vector<1x32xf32>
    %25 = vector.shape_cast %24 : vector<1x32xf32> to vector<32xf32>
    %26 = vector.extract_strided_slice %2 {offsets = [5, 0], sizes = [1, 32], strides = [1, 1]} : vector<6x32xf32> to vector<1x32xf32>
    %27 = vector.shape_cast %26 : vector<1x32xf32> to vector<32xf32>
    %cst_16 = arith.constant dense<0.000000e+00> : vector<64xf32>
    %28 = vector.multi_reduction <add>, %23, %cst_16 [1] : vector<64x32xf32> to vector<64xf32>
    %29 = vector.shape_cast %28 : vector<64xf32> to vector<64x1xf32>
    %cst_17 = arith.constant 3.200000e+01 : f32
    %30 = vector.broadcast %cst_17 : f32 to vector<64x1xf32>
    %31 = arith.divf %29, %30 : vector<64x1xf32>
    %32 = vector.broadcast %31 : vector<64x1xf32> to vector<64x32xf32>
    %33 = arith.subf %23, %32 : vector<64x32xf32>
    %34 = arith.mulf %33, %33 : vector<64x32xf32>
    %cst_18 = arith.constant dense<0.000000e+00> : vector<64xf32>
    %35 = vector.multi_reduction <add>, %34, %cst_18 [1] : vector<64x32xf32> to vector<64xf32>
    %36 = vector.shape_cast %35 : vector<64xf32> to vector<64x1xf32>
    %cst_19 = arith.constant 3.200000e+01 : f32
    %37 = vector.broadcast %cst_19 : f32 to vector<64x1xf32>
    %38 = arith.divf %36, %37 : vector<64x1xf32>
    %39 = vector.broadcast %31 : vector<64x1xf32> to vector<64x32xf32>
    %40 = arith.subf %23, %39 : vector<64x32xf32>
    %cst_20 = arith.constant 9.99999974E-6 : f32
    %41 = vector.broadcast %cst_20 : f32 to vector<64x1xf32>
    %42 = arith.addf %38, %41 : vector<64x1xf32>
    %43 = math.rsqrt %42 : vector<64x1xf32>
    %44 = vector.broadcast %43 : vector<64x1xf32> to vector<64x32xf32>
    %45 = arith.mulf %40, %44 : vector<64x32xf32>
    %46 = vector.shape_cast %25 : vector<32xf32> to vector<1x32xf32>
    %47 = vector.broadcast %46 : vector<1x32xf32> to vector<64x32xf32>
    %48 = arith.mulf %45, %47 : vector<64x32xf32>
    %49 = vector.shape_cast %27 : vector<32xf32> to vector<1x32xf32>
    %50 = vector.broadcast %49 : vector<1x32xf32> to vector<64x32xf32>
    %51 = arith.addf %48, %50 : vector<64x32xf32>
    %c0_21 = arith.constant 0 : index
    %c0_22 = arith.constant 0 : index
    %c0_23 = arith.constant 0 : index
    %52 = vector.load %arg9[%c0_21, %c0_22, %c0_23] : memref<2x32x32xf32, #tpu.memory_space<vmem>>, vector<2x32x32xf32>
    %53 = vector.extract_strided_slice %52 {offsets = [0, 0, 0], sizes = [1, 32, 32], strides = [1, 1, 1]} : vector<2x32x32xf32> to vector<1x32x32xf32>
    %54 = vector.shape_cast %53 : vector<1x32x32xf32> to vector<32x32xf32>
    %cst_24 = arith.constant dense<0.000000e+00> : vector<64x32xf32>
    %55 = tpu.matmul %51, %54, %cst_24 {dimension_numbers = #tpu.dot_dimension_numbers<[1], [0], [0], [1], [0, 0, 1, 1], [], []>} : vector<64x32xf32>, vector<32x32xf32>, vector<64x32xf32> -> vector<64x32xf32>
    %56 = vector.extract_strided_slice %2 {offsets = [2, 0], sizes = [1, 32], strides = [1, 1]} : vector<6x32xf32> to vector<1x32xf32>
    %57 = vector.shape_cast %56 : vector<1x32xf32> to vector<32xf32>
    %58 = vector.shape_cast %57 : vector<32xf32> to vector<1x32xf32>
    %59 = vector.broadcast %58 : vector<1x32xf32> to vector<64x32xf32>
    %60 = arith.addf %55, %59 : vector<64x32xf32>
    %cst_25 = arith.constant 0.000000e+00 : f32
    %61 = vector.broadcast %cst_25 : f32 to vector<64x32xf32>
    %62 = arith.maximumf %60, %61 : vector<64x32xf32>
    %63 = vector.extract_strided_slice %52 {offsets = [1, 0, 0], sizes = [1, 32, 32], strides = [1, 1, 1]} : vector<2x32x32xf32> to vector<1x32x32xf32>
    %64 = vector.shape_cast %63 : vector<1x32x32xf32> to vector<32x32xf32>
    %cst_26 = arith.constant dense<0.000000e+00> : vector<64x32xf32>
    %65 = tpu.matmul %62, %64, %cst_26 {dimension_numbers = #tpu.dot_dimension_numbers<[1], [0], [0], [1], [0, 0, 1, 1], [], []>} : vector<64x32xf32>, vector<32x32xf32>, vector<64x32xf32> -> vector<64x32xf32>
    %66 = vector.extract_strided_slice %2 {offsets = [3, 0], sizes = [1, 32], strides = [1, 1]} : vector<6x32xf32> to vector<1x32xf32>
    %67 = vector.shape_cast %66 : vector<1x32xf32> to vector<32xf32>
    %68 = vector.shape_cast %67 : vector<32xf32> to vector<1x32xf32>
    %69 = vector.broadcast %68 : vector<1x32xf32> to vector<64x32xf32>
    %70 = arith.addf %65, %69 : vector<64x32xf32>
    %c0_27 = arith.constant 0 : index
    %c0_28 = arith.constant 0 : index
    %71 = vector.load %arg12[%c0_27, %c0_28] : memref<20x32xf32, #tpu.memory_space<vmem>>, vector<20x32xf32>
    %c0_29 = arith.constant 0 : index
    %c0_30 = arith.constant 0 : index
    %c0_31 = arith.constant 0 : index
    %72 = vector.load %arg13[%c0_29, %c0_30, %c0_31] : memref<6x32x32xf32, #tpu.memory_space<vmem>>, vector<6x32x32xf32>
    %c0_32 = arith.constant 0 : index
    %c0_33 = arith.constant 0 : index
    %c0_34 = arith.constant 0 : index
    %73 = vector.load %arg14[%c0_32, %c0_33, %c0_34] : memref<4x32x96xf32, #tpu.memory_space<vmem>>, vector<4x32x96xf32>
    %c0_35 = arith.constant 0 : index
    %c0_36 = arith.constant 0 : index
    %74 = vector.load %arg15[%c0_35, %c0_36] : memref<4x96xf32, #tpu.memory_space<vmem>>, vector<4x96xf32>
    %75 = vector.extract_strided_slice %71 {offsets = [4, 0], sizes = [1, 32], strides = [1, 1]} : vector<20x32xf32> to vector<1x32xf32>
    %76 = vector.shape_cast %75 : vector<1x32xf32> to vector<32xf32>
    %77 = vector.extract_strided_slice %71 {offsets = [5, 0], sizes = [1, 32], strides = [1, 1]} : vector<20x32xf32> to vector<1x32xf32>
    %78 = vector.shape_cast %77 : vector<1x32xf32> to vector<32xf32>
    %cst_37 = arith.constant dense<0.000000e+00> : vector<64xf32>
    %79 = vector.multi_reduction <add>, %70, %cst_37 [1] : vector<64x32xf32> to vector<64xf32>
    %80 = vector.shape_cast %79 : vector<64xf32> to vector<64x1xf32>
    %cst_38 = arith.constant 3.200000e+01 : f32
    %81 = vector.broadcast %cst_38 : f32 to vector<64x1xf32>
    %82 = arith.divf %80, %81 : vector<64x1xf32>
    %83 = vector.broadcast %82 : vector<64x1xf32> to vector<64x32xf32>
    %84 = arith.subf %70, %83 : vector<64x32xf32>
    %85 = arith.mulf %84, %84 : vector<64x32xf32>
    %cst_39 = arith.constant dense<0.000000e+00> : vector<64xf32>
    %86 = vector.multi_reduction <add>, %85, %cst_39 [1] : vector<64x32xf32> to vector<64xf32>
    %87 = vector.shape_cast %86 : vector<64xf32> to vector<64x1xf32>
    %cst_40 = arith.constant 3.200000e+01 : f32
    %88 = vector.broadcast %cst_40 : f32 to vector<64x1xf32>
    %89 = arith.divf %87, %88 : vector<64x1xf32>
    %90 = vector.broadcast %82 : vector<64x1xf32> to vector<64x32xf32>
    %91 = arith.subf %70, %90 : vector<64x32xf32>
    %cst_41 = arith.constant 9.99999974E-6 : f32
    %92 = vector.broadcast %cst_41 : f32 to vector<64x1xf32>
    %93 = arith.addf %89, %92 : vector<64x1xf32>
    %94 = math.rsqrt %93 : vector<64x1xf32>
    %95 = vector.broadcast %94 : vector<64x1xf32> to vector<64x32xf32>
    %96 = arith.mulf %91, %95 : vector<64x32xf32>
    %97 = vector.shape_cast %76 : vector<32xf32> to vector<1x32xf32>
    %98 = vector.broadcast %97 : vector<1x32xf32> to vector<64x32xf32>
    %99 = arith.mulf %96, %98 : vector<64x32xf32>
    %100 = vector.shape_cast %78 : vector<32xf32> to vector<1x32xf32>
    %101 = vector.broadcast %100 : vector<1x32xf32> to vector<64x32xf32>
    %102 = arith.addf %99, %101 : vector<64x32xf32>
    %c0_42 = arith.constant 0 : index
    %c0_43 = arith.constant 0 : index
    %103 = vector.load %arg10[%c0_42, %c0_43] : memref<32x96xf32, #tpu.memory_space<vmem>>, vector<32x96xf32>
    %cst_44 = arith.constant dense<0.000000e+00> : vector<64x96xf32>
    %104 = tpu.matmul %102, %103, %cst_44 {dimension_numbers = #tpu.dot_dimension_numbers<[1], [0], [0], [1], [0, 0, 1, 1], [], []>} : vector<64x32xf32>, vector<32x96xf32>, vector<64x96xf32> -> vector<64x96xf32>
    %c0_45 = arith.constant 0 : index
    %c0_46 = arith.constant 0 : index
    %105 = vector.load %arg11[%c0_45, %c0_46] : memref<1x96xf32, #tpu.memory_space<vmem>>, vector<1x96xf32>
    %106 = vector.broadcast %105 : vector<1x96xf32> to vector<64x96xf32>
    %107 = arith.addf %104, %106 : vector<64x96xf32>
    %108 = vector.extract_strided_slice %107 {offsets = [0, 0], sizes = [64, 32], strides = [1, 1]} : vector<64x96xf32> to vector<64x32xf32>
    %109 = tpu.transpose %108, [1, 0] : vector<64x32xf32> -> vector<32x64xf32>
    %110 = vector.extract_strided_slice %107 {offsets = [0, 32], sizes = [64, 32], strides = [1, 1]} : vector<64x96xf32> to vector<64x32xf32>
    %111 = vector.extract_strided_slice %107 {offsets = [0, 64], sizes = [64, 32], strides = [1, 1]} : vector<64x96xf32> to vector<64x32xf32>
    %112 = vector.extract_strided_slice %71 {offsets = [0, 0], sizes = [1, 32], strides = [1, 1]} : vector<20x32xf32> to vector<1x32xf32>
    %113 = vector.extract_strided_slice %71 {offsets = [1, 0], sizes = [1, 32], strides = [1, 1]} : vector<20x32xf32> to vector<1x32xf32>
    %114 = math.exp %113 : vector<1x32xf32>
    %c0_47 = arith.constant 0 : index
    %c0_48 = arith.constant 0 : index
    %c0_49 = arith.constant 0 : index
    %115 = vector.load %arg2[%c0_47, %c0_48, %c0_49] : memref<1x4x32xf32, #tpu.memory_space<vmem>>, vector<1x4x32xf32>
    %116 = vector.shape_cast %115 : vector<1x4x32xf32> to vector<4x32xf32>
    %117 = vector.broadcast %114 : vector<1x32xf32> to vector<4x32xf32>
    %118 = arith.mulf %117, %116 : vector<4x32xf32>
    %119 = vector.broadcast %112 : vector<1x32xf32> to vector<4x32xf32>
    %120 = arith.addf %119, %118 : vector<4x32xf32>
    %121 = vector.extract_strided_slice %71 {offsets = [2, 0], sizes = [1, 32], strides = [1, 1]} : vector<20x32xf32> to vector<1x32xf32>
    %122 = vector.extract_strided_slice %71 {offsets = [3, 0], sizes = [1, 32], strides = [1, 1]} : vector<20x32xf32> to vector<1x32xf32>
    %123 = math.exp %122 : vector<1x32xf32>
    %c0_50 = arith.constant 0 : index
    %c0_51 = arith.constant 0 : index
    %c0_52 = arith.constant 0 : index
    %124 = vector.load %arg3[%c0_50, %c0_51, %c0_52] : memref<1x1x32xf32, #tpu.memory_space<vmem>>, vector<1x1x32xf32>
    %125 = vector.shape_cast %124 : vector<1x1x32xf32> to vector<1x32xf32>
    %126 = arith.mulf %123, %125 : vector<1x32xf32>
    %127 = arith.addf %121, %126 : vector<1x32xf32>
    %128 = vector.extract_strided_slice %71 {offsets = [6, 0], sizes = [1, 32], strides = [1, 1]} : vector<20x32xf32> to vector<1x32xf32>
    %129 = vector.shape_cast %128 : vector<1x32xf32> to vector<32xf32>
    %130 = vector.extract_strided_slice %71 {offsets = [7, 0], sizes = [1, 32], strides = [1, 1]} : vector<20x32xf32> to vector<1x32xf32>
    %131 = vector.shape_cast %130 : vector<1x32xf32> to vector<32xf32>
    %cst_53 = arith.constant dense<0.000000e+00> : vector<4xf32>
    %132 = vector.multi_reduction <add>, %120, %cst_53 [1] : vector<4x32xf32> to vector<4xf32>
    %133 = vector.shape_cast %132 : vector<4xf32> to vector<4x1xf32>
    %cst_54 = arith.constant 3.200000e+01 : f32
    %134 = vector.broadcast %cst_54 : f32 to vector<4x1xf32>
    %135 = arith.divf %133, %134 : vector<4x1xf32>
    %136 = vector.broadcast %135 : vector<4x1xf32> to vector<4x32xf32>
    %137 = arith.subf %120, %136 : vector<4x32xf32>
    %138 = arith.mulf %137, %137 : vector<4x32xf32>
    %cst_55 = arith.constant dense<0.000000e+00> : vector<4xf32>
    %139 = vector.multi_reduction <add>, %138, %cst_55 [1] : vector<4x32xf32> to vector<4xf32>
    %140 = vector.shape_cast %139 : vector<4xf32> to vector<4x1xf32>
    %cst_56 = arith.constant 3.200000e+01 : f32
    %141 = vector.broadcast %cst_56 : f32 to vector<4x1xf32>
    %142 = arith.divf %140, %141 : vector<4x1xf32>
    %143 = vector.broadcast %135 : vector<4x1xf32> to vector<4x32xf32>
    %144 = arith.subf %120, %143 : vector<4x32xf32>
    %cst_57 = arith.constant 9.99999974E-6 : f32
    %145 = vector.broadcast %cst_57 : f32 to vector<4x1xf32>
    %146 = arith.addf %142, %145 : vector<4x1xf32>
    %147 = math.rsqrt %146 : vector<4x1xf32>
    %148 = vector.broadcast %147 : vector<4x1xf32> to vector<4x32xf32>
    %149 = arith.mulf %144, %148 : vector<4x32xf32>
    %150 = vector.shape_cast %129 : vector<32xf32> to vector<1x32xf32>
    %151 = vector.broadcast %150 : vector<1x32xf32> to vector<4x32xf32>
    %152 = arith.mulf %149, %151 : vector<4x32xf32>
    %153 = vector.shape_cast %131 : vector<32xf32> to vector<1x32xf32>
    %154 = vector.broadcast %153 : vector<1x32xf32> to vector<4x32xf32>
    %155 = arith.addf %152, %154 : vector<4x32xf32>
    %156 = vector.extract_strided_slice %71 {offsets = [8, 0], sizes = [1, 32], strides = [1, 1]} : vector<20x32xf32> to vector<1x32xf32>
    %157 = vector.shape_cast %156 : vector<1x32xf32> to vector<32xf32>
    %158 = vector.extract_strided_slice %71 {offsets = [9, 0], sizes = [1, 32], strides = [1, 1]} : vector<20x32xf32> to vector<1x32xf32>
    %159 = vector.shape_cast %158 : vector<1x32xf32> to vector<32xf32>
    %cst_58 = arith.constant dense<0.000000e+00> : vector<1xf32>
    %160 = vector.multi_reduction <add>, %127, %cst_58 [1] : vector<1x32xf32> to vector<1xf32>
    %161 = vector.shape_cast %160 : vector<1xf32> to vector<1x1xf32>
    %cst_59 = arith.constant 3.200000e+01 : f32
    %162 = vector.broadcast %cst_59 : f32 to vector<1x1xf32>
    %163 = arith.divf %161, %162 : vector<1x1xf32>
    %164 = vector.broadcast %163 : vector<1x1xf32> to vector<1x32xf32>
    %165 = arith.subf %127, %164 : vector<1x32xf32>
    %166 = arith.mulf %165, %165 : vector<1x32xf32>
    %cst_60 = arith.constant dense<0.000000e+00> : vector<1xf32>
    %167 = vector.multi_reduction <add>, %166, %cst_60 [1] : vector<1x32xf32> to vector<1xf32>
    %168 = vector.shape_cast %167 : vector<1xf32> to vector<1x1xf32>
    %cst_61 = arith.constant 3.200000e+01 : f32
    %169 = vector.broadcast %cst_61 : f32 to vector<1x1xf32>
    %170 = arith.divf %168, %169 : vector<1x1xf32>
    %171 = vector.broadcast %163 : vector<1x1xf32> to vector<1x32xf32>
    %172 = arith.subf %127, %171 : vector<1x32xf32>
    %cst_62 = arith.constant 9.99999974E-6 : f32
    %173 = vector.broadcast %cst_62 : f32 to vector<1x1xf32>
    %174 = arith.addf %170, %173 : vector<1x1xf32>
    %175 = math.rsqrt %174 : vector<1x1xf32>
    %176 = vector.broadcast %175 : vector<1x1xf32> to vector<1x32xf32>
    %177 = arith.mulf %172, %176 : vector<1x32xf32>
    %178 = vector.shape_cast %157 : vector<32xf32> to vector<1x32xf32>
    %179 = arith.mulf %177, %178 : vector<1x32xf32>
    %180 = vector.shape_cast %159 : vector<32xf32> to vector<1x32xf32>
    %181 = arith.addf %179, %180 : vector<1x32xf32>
    %182 = vector.extract_strided_slice %72 {offsets = [0, 0, 0], sizes = [1, 32, 32], strides = [1, 1, 1]} : vector<6x32x32xf32> to vector<1x32x32xf32>
    %183 = vector.shape_cast %182 : vector<1x32x32xf32> to vector<32x32xf32>
    %cst_63 = arith.constant dense<0.000000e+00> : vector<4x32xf32>
    %184 = tpu.matmul %155, %183, %cst_63 {dimension_numbers = #tpu.dot_dimension_numbers<[1], [0], [0], [1], [0, 0, 1, 1], [], []>} : vector<4x32xf32>, vector<32x32xf32>, vector<4x32xf32> -> vector<4x32xf32>
    %185 = vector.extract_strided_slice %71 {offsets = [14, 0], sizes = [1, 32], strides = [1, 1]} : vector<20x32xf32> to vector<1x32xf32>
    %186 = vector.shape_cast %185 : vector<1x32xf32> to vector<32xf32>
    %187 = vector.shape_cast %186 : vector<32xf32> to vector<1x32xf32>
    %188 = vector.broadcast %187 : vector<1x32xf32> to vector<4x32xf32>
    %189 = arith.addf %184, %188 : vector<4x32xf32>
    %190 = vector.extract_strided_slice %72 {offsets = [1, 0, 0], sizes = [1, 32, 32], strides = [1, 1, 1]} : vector<6x32x32xf32> to vector<1x32x32xf32>
    %191 = vector.shape_cast %190 : vector<1x32x32xf32> to vector<32x32xf32>
    %cst_64 = arith.constant dense<0.000000e+00> : vector<1x32xf32>
    %192 = tpu.matmul %181, %191, %cst_64 {dimension_numbers = #tpu.dot_dimension_numbers<[1], [0], [0], [1], [0, 0, 1, 1], [], []>} : vector<1x32xf32>, vector<32x32xf32>, vector<1x32xf32> -> vector<1x32xf32>
    %193 = vector.extract_strided_slice %71 {offsets = [15, 0], sizes = [1, 32], strides = [1, 1]} : vector<20x32xf32> to vector<1x32xf32>
    %194 = vector.shape_cast %193 : vector<1x32xf32> to vector<32xf32>
    %195 = vector.shape_cast %194 : vector<32xf32> to vector<1x32xf32>
    %196 = arith.addf %192, %195 : vector<1x32xf32>
    %197 = tpu.concatenate %196, %189 in 0 : vector<1x32xf32>, vector<4x32xf32> -> vector<5x32xf32>
    %cst_65 = arith.constant dense<0.000000e+00> : vector<5x64xf32>
    %198 = tpu.matmul %197, %109, %cst_65 {dimension_numbers = #tpu.dot_dimension_numbers<[1], [0], [0], [1], [0, 0, 1, 1], [], []>} : vector<5x32xf32>, vector<32x64xf32>, vector<5x64xf32> -> vector<5x64xf32>
    %cst_66 = arith.constant 0.176776692 : f32
    %199 = vector.broadcast %cst_66 : f32 to vector<5x64xf32>
    %200 = arith.mulf %198, %199 : vector<5x64xf32>
    %cst_67 = arith.constant dense<0xFF800000> : vector<64xf32>
    %201 = vector.multi_reduction <maximumf>, %200, %cst_67 [0] : vector<5x64xf32> to vector<64xf32>
    %cst_68 = arith.constant 0xFF800000 : f32
    %202 = vector.broadcast %cst_68 : f32 to vector<64xf32>
    %203 = arith.maximumf %202, %201 : vector<64xf32>
    %204 = vector.shape_cast %203 : vector<64xf32> to vector<1x64xf32>
    %205 = vector.broadcast %204 : vector<1x64xf32> to vector<5x64xf32>
    %206 = arith.subf %200, %205 : vector<5x64xf32>
    %207 = math.exp %206 : vector<5x64xf32>
    %cst_69 = arith.constant dense<0.000000e+00> : vector<64xf32>
    %208 = vector.multi_reduction <add>, %207, %cst_69 [0] : vector<5x64xf32> to vector<64xf32>
    %209 = vector.shape_cast %208 : vector<64xf32> to vector<1x64xf32>
    %210 = vector.broadcast %209 : vector<1x64xf32> to vector<5x64xf32>
    %211 = arith.divf %207, %210 : vector<5x64xf32>
    %cst_70 = arith.constant 9.99999993E-9 : f32
    %212 = vector.broadcast %cst_70 : f32 to vector<5x64xf32>
    %213 = arith.addf %211, %212 : vector<5x64xf32>
    %cst_71 = arith.constant dense<0.000000e+00> : vector<5xf32>
    %214 = vector.multi_reduction <add>, %213, %cst_71 [1] : vector<5x64xf32> to vector<5xf32>
    %215 = vector.shape_cast %214 : vector<5xf32> to vector<5x1xf32>
    %216 = vector.broadcast %215 : vector<5x1xf32> to vector<5x64xf32>
    %217 = arith.divf %213, %216 : vector<5x64xf32>
    %218 = vector.extract_strided_slice %217 {offsets = [1, 0], sizes = [4, 64], strides = [1, 1]} : vector<5x64xf32> to vector<4x64xf32>
    %cst_72 = arith.constant dense<0.000000e+00> : vector<4x32xf32>
    %219 = tpu.matmul %218, %110, %cst_72 {dimension_numbers = #tpu.dot_dimension_numbers<[1], [0], [0], [1], [0, 0, 1, 1], [], []>} : vector<4x64xf32>, vector<64x32xf32>, vector<4x32xf32> -> vector<4x32xf32>
    %220 = vector.extract_strided_slice %217 {offsets = [0, 0], sizes = [1, 64], strides = [1, 1]} : vector<5x64xf32> to vector<1x64xf32>
    %cst_73 = arith.constant dense<0.000000e+00> : vector<1x32xf32>
    %221 = tpu.matmul %220, %111, %cst_73 {dimension_numbers = #tpu.dot_dimension_numbers<[1], [0], [0], [1], [0, 0, 1, 1], [], []>} : vector<1x64xf32>, vector<64x32xf32>, vector<1x32xf32> -> vector<1x32xf32>
    %222 = vector.extract_strided_slice %73 {offsets = [0, 0, 0], sizes = [1, 32, 96], strides = [1, 1, 1]} : vector<4x32x96xf32> to vector<1x32x96xf32>
    %223 = vector.shape_cast %222 : vector<1x32x96xf32> to vector<32x96xf32>
    %224 = vector.extract_strided_slice %73 {offsets = [1, 0, 0], sizes = [1, 32, 96], strides = [1, 1, 1]} : vector<4x32x96xf32> to vector<1x32x96xf32>
    %225 = vector.shape_cast %224 : vector<1x32x96xf32> to vector<32x96xf32>
    %226 = vector.extract_strided_slice %74 {offsets = [0, 0], sizes = [1, 96], strides = [1, 1]} : vector<4x96xf32> to vector<1x96xf32>
    %227 = vector.shape_cast %226 : vector<1x96xf32> to vector<96xf32>
    %228 = vector.extract_strided_slice %74 {offsets = [1, 0], sizes = [1, 96], strides = [1, 1]} : vector<4x96xf32> to vector<1x96xf32>
    %229 = vector.shape_cast %228 : vector<1x96xf32> to vector<96xf32>
    %cst_74 = arith.constant dense<0.000000e+00> : vector<4x96xf32>
    %230 = tpu.matmul %219, %223, %cst_74 {dimension_numbers = #tpu.dot_dimension_numbers<[1], [0], [0], [1], [0, 0, 1, 1], [], []>} : vector<4x32xf32>, vector<32x96xf32>, vector<4x96xf32> -> vector<4x96xf32>
    %231 = vector.shape_cast %227 : vector<96xf32> to vector<1x96xf32>
    %232 = vector.broadcast %231 : vector<1x96xf32> to vector<4x96xf32>
    %233 = arith.addf %230, %232 : vector<4x96xf32>
    %cst_75 = arith.constant dense<0.000000e+00> : vector<4x96xf32>
    %234 = tpu.matmul %120, %225, %cst_75 {dimension_numbers = #tpu.dot_dimension_numbers<[1], [0], [0], [1], [0, 0, 1, 1], [], []>} : vector<4x32xf32>, vector<32x96xf32>, vector<4x96xf32> -> vector<4x96xf32>
    %235 = vector.shape_cast %229 : vector<96xf32> to vector<1x96xf32>
    %236 = vector.broadcast %235 : vector<1x96xf32> to vector<4x96xf32>
    %237 = arith.addf %234, %236 : vector<4x96xf32>
    %238 = vector.extract_strided_slice %233 {offsets = [0, 0], sizes = [4, 32], strides = [1, 1]} : vector<4x96xf32> to vector<4x32xf32>
    %239 = vector.extract_strided_slice %237 {offsets = [0, 0], sizes = [4, 32], strides = [1, 1]} : vector<4x96xf32> to vector<4x32xf32>
    %240 = arith.addf %238, %239 : vector<4x32xf32>
    %241 = arith.negf %240 : vector<4x32xf32>
    %242 = math.exp %241 : vector<4x32xf32>
    %cst_76 = arith.constant 1.000000e+00 : f32
    %243 = vector.broadcast %cst_76 : f32 to vector<4x32xf32>
    %244 = arith.addf %243, %242 : vector<4x32xf32>
    %245 = arith.divf %243, %244 : vector<4x32xf32>
    %246 = vector.extract_strided_slice %233 {offsets = [0, 32], sizes = [4, 32], strides = [1, 1]} : vector<4x96xf32> to vector<4x32xf32>
    %247 = vector.extract_strided_slice %237 {offsets = [0, 32], sizes = [4, 32], strides = [1, 1]} : vector<4x96xf32> to vector<4x32xf32>
    %248 = arith.addf %246, %247 : vector<4x32xf32>
    %249 = arith.negf %248 : vector<4x32xf32>
    %250 = math.exp %249 : vector<4x32xf32>
    %cst_77 = arith.constant 1.000000e+00 : f32
    %251 = vector.broadcast %cst_77 : f32 to vector<4x32xf32>
    %252 = arith.addf %251, %250 : vector<4x32xf32>
    %253 = arith.divf %251, %252 : vector<4x32xf32>
    %254 = vector.extract_strided_slice %233 {offsets = [0, 64], sizes = [4, 32], strides = [1, 1]} : vector<4x96xf32> to vector<4x32xf32>
    %255 = vector.extract_strided_slice %237 {offsets = [0, 64], sizes = [4, 32], strides = [1, 1]} : vector<4x96xf32> to vector<4x32xf32>
    %256 = arith.mulf %245, %255 : vector<4x32xf32>
    %257 = arith.addf %254, %256 : vector<4x32xf32>
    %258 = math.tanh %257 : vector<4x32xf32>
    %cst_78 = arith.constant 1.000000e+00 : f32
    %259 = vector.broadcast %cst_78 : f32 to vector<4x32xf32>
    %260 = arith.subf %259, %253 : vector<4x32xf32>
    %261 = arith.mulf %260, %258 : vector<4x32xf32>
    %262 = arith.mulf %253, %120 : vector<4x32xf32>
    %263 = arith.addf %261, %262 : vector<4x32xf32>
    %264 = vector.extract_strided_slice %73 {offsets = [2, 0, 0], sizes = [1, 32, 96], strides = [1, 1, 1]} : vector<4x32x96xf32> to vector<1x32x96xf32>
    %265 = vector.shape_cast %264 : vector<1x32x96xf32> to vector<32x96xf32>
    %266 = vector.extract_strided_slice %73 {offsets = [3, 0, 0], sizes = [1, 32, 96], strides = [1, 1, 1]} : vector<4x32x96xf32> to vector<1x32x96xf32>
    %267 = vector.shape_cast %266 : vector<1x32x96xf32> to vector<32x96xf32>
    %268 = vector.extract_strided_slice %74 {offsets = [2, 0], sizes = [1, 96], strides = [1, 1]} : vector<4x96xf32> to vector<1x96xf32>
    %269 = vector.shape_cast %268 : vector<1x96xf32> to vector<96xf32>
    %270 = vector.extract_strided_slice %74 {offsets = [3, 0], sizes = [1, 96], strides = [1, 1]} : vector<4x96xf32> to vector<1x96xf32>
    %271 = vector.shape_cast %270 : vector<1x96xf32> to vector<96xf32>
    %cst_79 = arith.constant dense<0.000000e+00> : vector<1x96xf32>
    %272 = tpu.matmul %221, %265, %cst_79 {dimension_numbers = #tpu.dot_dimension_numbers<[1], [0], [0], [1], [0, 0, 1, 1], [], []>} : vector<1x32xf32>, vector<32x96xf32>, vector<1x96xf32> -> vector<1x96xf32>
    %273 = vector.shape_cast %269 : vector<96xf32> to vector<1x96xf32>
    %274 = arith.addf %272, %273 : vector<1x96xf32>
    %cst_80 = arith.constant dense<0.000000e+00> : vector<1x96xf32>
    %275 = tpu.matmul %127, %267, %cst_80 {dimension_numbers = #tpu.dot_dimension_numbers<[1], [0], [0], [1], [0, 0, 1, 1], [], []>} : vector<1x32xf32>, vector<32x96xf32>, vector<1x96xf32> -> vector<1x96xf32>
    %276 = vector.shape_cast %271 : vector<96xf32> to vector<1x96xf32>
    %277 = arith.addf %275, %276 : vector<1x96xf32>
    %278 = vector.extract_strided_slice %274 {offsets = [0, 0], sizes = [1, 32], strides = [1, 1]} : vector<1x96xf32> to vector<1x32xf32>
    %279 = vector.extract_strided_slice %277 {offsets = [0, 0], sizes = [1, 32], strides = [1, 1]} : vector<1x96xf32> to vector<1x32xf32>
    %280 = arith.addf %278, %279 : vector<1x32xf32>
    %281 = arith.negf %280 : vector<1x32xf32>
    %282 = math.exp %281 : vector<1x32xf32>
    %cst_81 = arith.constant 1.000000e+00 : f32
    %283 = vector.broadcast %cst_81 : f32 to vector<1x32xf32>
    %284 = arith.addf %283, %282 : vector<1x32xf32>
    %285 = arith.divf %283, %284 : vector<1x32xf32>
    %286 = vector.extract_strided_slice %274 {offsets = [0, 32], sizes = [1, 32], strides = [1, 1]} : vector<1x96xf32> to vector<1x32xf32>
    %287 = vector.extract_strided_slice %277 {offsets = [0, 32], sizes = [1, 32], strides = [1, 1]} : vector<1x96xf32> to vector<1x32xf32>
    %288 = arith.addf %286, %287 : vector<1x32xf32>
    %289 = arith.negf %288 : vector<1x32xf32>
    %290 = math.exp %289 : vector<1x32xf32>
    %cst_82 = arith.constant 1.000000e+00 : f32
    %291 = vector.broadcast %cst_82 : f32 to vector<1x32xf32>
    %292 = arith.addf %291, %290 : vector<1x32xf32>
    %293 = arith.divf %291, %292 : vector<1x32xf32>
    %294 = vector.extract_strided_slice %274 {offsets = [0, 64], sizes = [1, 32], strides = [1, 1]} : vector<1x96xf32> to vector<1x32xf32>
    %295 = vector.extract_strided_slice %277 {offsets = [0, 64], sizes = [1, 32], strides = [1, 1]} : vector<1x96xf32> to vector<1x32xf32>
    %296 = arith.mulf %285, %295 : vector<1x32xf32>
    %297 = arith.addf %294, %296 : vector<1x32xf32>
    %298 = math.tanh %297 : vector<1x32xf32>
    %cst_83 = arith.constant 1.000000e+00 : f32
    %299 = vector.broadcast %cst_83 : f32 to vector<1x32xf32>
    %300 = arith.subf %299, %293 : vector<1x32xf32>
    %301 = arith.mulf %300, %298 : vector<1x32xf32>
    %302 = arith.mulf %293, %127 : vector<1x32xf32>
    %303 = arith.addf %301, %302 : vector<1x32xf32>
    %304 = vector.extract_strided_slice %71 {offsets = [10, 0], sizes = [1, 32], strides = [1, 1]} : vector<20x32xf32> to vector<1x32xf32>
    %305 = vector.shape_cast %304 : vector<1x32xf32> to vector<32xf32>
    %306 = vector.extract_strided_slice %71 {offsets = [11, 0], sizes = [1, 32], strides = [1, 1]} : vector<20x32xf32> to vector<1x32xf32>
    %307 = vector.shape_cast %306 : vector<1x32xf32> to vector<32xf32>
    %cst_84 = arith.constant dense<0.000000e+00> : vector<4xf32>
    %308 = vector.multi_reduction <add>, %263, %cst_84 [1] : vector<4x32xf32> to vector<4xf32>
    %309 = vector.shape_cast %308 : vector<4xf32> to vector<4x1xf32>
    %cst_85 = arith.constant 3.200000e+01 : f32
    %310 = vector.broadcast %cst_85 : f32 to vector<4x1xf32>
    %311 = arith.divf %309, %310 : vector<4x1xf32>
    %312 = vector.broadcast %311 : vector<4x1xf32> to vector<4x32xf32>
    %313 = arith.subf %263, %312 : vector<4x32xf32>
    %314 = arith.mulf %313, %313 : vector<4x32xf32>
    %cst_86 = arith.constant dense<0.000000e+00> : vector<4xf32>
    %315 = vector.multi_reduction <add>, %314, %cst_86 [1] : vector<4x32xf32> to vector<4xf32>
    %316 = vector.shape_cast %315 : vector<4xf32> to vector<4x1xf32>
    %cst_87 = arith.constant 3.200000e+01 : f32
    %317 = vector.broadcast %cst_87 : f32 to vector<4x1xf32>
    %318 = arith.divf %316, %317 : vector<4x1xf32>
    %319 = vector.broadcast %311 : vector<4x1xf32> to vector<4x32xf32>
    %320 = arith.subf %263, %319 : vector<4x32xf32>
    %cst_88 = arith.constant 9.99999974E-6 : f32
    %321 = vector.broadcast %cst_88 : f32 to vector<4x1xf32>
    %322 = arith.addf %318, %321 : vector<4x1xf32>
    %323 = math.rsqrt %322 : vector<4x1xf32>
    %324 = vector.broadcast %323 : vector<4x1xf32> to vector<4x32xf32>
    %325 = arith.mulf %320, %324 : vector<4x32xf32>
    %326 = vector.shape_cast %305 : vector<32xf32> to vector<1x32xf32>
    %327 = vector.broadcast %326 : vector<1x32xf32> to vector<4x32xf32>
    %328 = arith.mulf %325, %327 : vector<4x32xf32>
    %329 = vector.shape_cast %307 : vector<32xf32> to vector<1x32xf32>
    %330 = vector.broadcast %329 : vector<1x32xf32> to vector<4x32xf32>
    %331 = arith.addf %328, %330 : vector<4x32xf32>
    %332 = vector.extract_strided_slice %72 {offsets = [2, 0, 0], sizes = [1, 32, 32], strides = [1, 1, 1]} : vector<6x32x32xf32> to vector<1x32x32xf32>
    %333 = vector.shape_cast %332 : vector<1x32x32xf32> to vector<32x32xf32>
    %334 = vector.extract_strided_slice %71 {offsets = [16, 0], sizes = [1, 32], strides = [1, 1]} : vector<20x32xf32> to vector<1x32xf32>
    %335 = vector.shape_cast %334 : vector<1x32xf32> to vector<32xf32>
    %336 = vector.extract_strided_slice %72 {offsets = [3, 0, 0], sizes = [1, 32, 32], strides = [1, 1, 1]} : vector<6x32x32xf32> to vector<1x32x32xf32>
    %337 = vector.shape_cast %336 : vector<1x32x32xf32> to vector<32x32xf32>
    %338 = vector.extract_strided_slice %71 {offsets = [17, 0], sizes = [1, 32], strides = [1, 1]} : vector<20x32xf32> to vector<1x32xf32>
    %339 = vector.shape_cast %338 : vector<1x32xf32> to vector<32xf32>
    %cst_89 = arith.constant dense<0.000000e+00> : vector<4x32xf32>
    %340 = tpu.matmul %331, %333, %cst_89 {dimension_numbers = #tpu.dot_dimension_numbers<[1], [0], [0], [1], [0, 0, 1, 1], [], []>} : vector<4x32xf32>, vector<32x32xf32>, vector<4x32xf32> -> vector<4x32xf32>
    %341 = vector.shape_cast %335 : vector<32xf32> to vector<1x32xf32>
    %342 = vector.broadcast %341 : vector<1x32xf32> to vector<4x32xf32>
    %343 = arith.addf %340, %342 : vector<4x32xf32>
    %cst_90 = arith.constant 0.000000e+00 : f32
    %344 = vector.broadcast %cst_90 : f32 to vector<4x32xf32>
    %345 = arith.maximumf %343, %344 : vector<4x32xf32>
    %cst_91 = arith.constant dense<0.000000e+00> : vector<4x32xf32>
    %346 = tpu.matmul %345, %337, %cst_91 {dimension_numbers = #tpu.dot_dimension_numbers<[1], [0], [0], [1], [0, 0, 1, 1], [], []>} : vector<4x32xf32>, vector<32x32xf32>, vector<4x32xf32> -> vector<4x32xf32>
    %347 = vector.shape_cast %339 : vector<32xf32> to vector<1x32xf32>
    %348 = vector.broadcast %347 : vector<1x32xf32> to vector<4x32xf32>
    %349 = arith.addf %346, %348 : vector<4x32xf32>
    %350 = arith.addf %263, %349 : vector<4x32xf32>
    %351 = vector.extract_strided_slice %71 {offsets = [12, 0], sizes = [1, 32], strides = [1, 1]} : vector<20x32xf32> to vector<1x32xf32>
    %352 = vector.shape_cast %351 : vector<1x32xf32> to vector<32xf32>
    %353 = vector.extract_strided_slice %71 {offsets = [13, 0], sizes = [1, 32], strides = [1, 1]} : vector<20x32xf32> to vector<1x32xf32>
    %354 = vector.shape_cast %353 : vector<1x32xf32> to vector<32xf32>
    %cst_92 = arith.constant dense<0.000000e+00> : vector<1xf32>
    %355 = vector.multi_reduction <add>, %303, %cst_92 [1] : vector<1x32xf32> to vector<1xf32>
    %356 = vector.shape_cast %355 : vector<1xf32> to vector<1x1xf32>
    %cst_93 = arith.constant 3.200000e+01 : f32
    %357 = vector.broadcast %cst_93 : f32 to vector<1x1xf32>
    %358 = arith.divf %356, %357 : vector<1x1xf32>
    %359 = vector.broadcast %358 : vector<1x1xf32> to vector<1x32xf32>
    %360 = arith.subf %303, %359 : vector<1x32xf32>
    %361 = arith.mulf %360, %360 : vector<1x32xf32>
    %cst_94 = arith.constant dense<0.000000e+00> : vector<1xf32>
    %362 = vector.multi_reduction <add>, %361, %cst_94 [1] : vector<1x32xf32> to vector<1xf32>
    %363 = vector.shape_cast %362 : vector<1xf32> to vector<1x1xf32>
    %cst_95 = arith.constant 3.200000e+01 : f32
    %364 = vector.broadcast %cst_95 : f32 to vector<1x1xf32>
    %365 = arith.divf %363, %364 : vector<1x1xf32>
    %366 = vector.broadcast %358 : vector<1x1xf32> to vector<1x32xf32>
    %367 = arith.subf %303, %366 : vector<1x32xf32>
    %cst_96 = arith.constant 9.99999974E-6 : f32
    %368 = vector.broadcast %cst_96 : f32 to vector<1x1xf32>
    %369 = arith.addf %365, %368 : vector<1x1xf32>
    %370 = math.rsqrt %369 : vector<1x1xf32>
    %371 = vector.broadcast %370 : vector<1x1xf32> to vector<1x32xf32>
    %372 = arith.mulf %367, %371 : vector<1x32xf32>
    %373 = vector.shape_cast %352 : vector<32xf32> to vector<1x32xf32>
    %374 = arith.mulf %372, %373 : vector<1x32xf32>
    %375 = vector.shape_cast %354 : vector<32xf32> to vector<1x32xf32>
    %376 = arith.addf %374, %375 : vector<1x32xf32>
    %377 = vector.extract_strided_slice %72 {offsets = [4, 0, 0], sizes = [1, 32, 32], strides = [1, 1, 1]} : vector<6x32x32xf32> to vector<1x32x32xf32>
    %378 = vector.shape_cast %377 : vector<1x32x32xf32> to vector<32x32xf32>
    %379 = vector.extract_strided_slice %71 {offsets = [18, 0], sizes = [1, 32], strides = [1, 1]} : vector<20x32xf32> to vector<1x32xf32>
    %380 = vector.shape_cast %379 : vector<1x32xf32> to vector<32xf32>
    %381 = vector.extract_strided_slice %72 {offsets = [5, 0, 0], sizes = [1, 32, 32], strides = [1, 1, 1]} : vector<6x32x32xf32> to vector<1x32x32xf32>
    %382 = vector.shape_cast %381 : vector<1x32x32xf32> to vector<32x32xf32>
    %383 = vector.extract_strided_slice %71 {offsets = [19, 0], sizes = [1, 32], strides = [1, 1]} : vector<20x32xf32> to vector<1x32xf32>
    %384 = vector.shape_cast %383 : vector<1x32xf32> to vector<32xf32>
    %cst_97 = arith.constant dense<0.000000e+00> : vector<1x32xf32>
    %385 = tpu.matmul %376, %378, %cst_97 {dimension_numbers = #tpu.dot_dimension_numbers<[1], [0], [0], [1], [0, 0, 1, 1], [], []>} : vector<1x32xf32>, vector<32x32xf32>, vector<1x32xf32> -> vector<1x32xf32>
    %386 = vector.shape_cast %380 : vector<32xf32> to vector<1x32xf32>
    %387 = arith.addf %385, %386 : vector<1x32xf32>
    %cst_98 = arith.constant 0.000000e+00 : f32
    %388 = vector.broadcast %cst_98 : f32 to vector<1x32xf32>
    %389 = arith.maximumf %387, %388 : vector<1x32xf32>
    %cst_99 = arith.constant dense<0.000000e+00> : vector<1x32xf32>
    %390 = tpu.matmul %389, %382, %cst_99 {dimension_numbers = #tpu.dot_dimension_numbers<[1], [0], [0], [1], [0, 0, 1, 1], [], []>} : vector<1x32xf32>, vector<32x32xf32>, vector<1x32xf32> -> vector<1x32xf32>
    %391 = vector.shape_cast %384 : vector<32xf32> to vector<1x32xf32>
    %392 = arith.addf %390, %391 : vector<1x32xf32>
    %393 = arith.addf %303, %392 : vector<1x32xf32>
    %394 = vector.extract_strided_slice %71 {offsets = [6, 0], sizes = [1, 32], strides = [1, 1]} : vector<20x32xf32> to vector<1x32xf32>
    %395 = vector.shape_cast %394 : vector<1x32xf32> to vector<32xf32>
    %396 = vector.extract_strided_slice %71 {offsets = [7, 0], sizes = [1, 32], strides = [1, 1]} : vector<20x32xf32> to vector<1x32xf32>
    %397 = vector.shape_cast %396 : vector<1x32xf32> to vector<32xf32>
    %cst_100 = arith.constant dense<0.000000e+00> : vector<4xf32>
    %398 = vector.multi_reduction <add>, %350, %cst_100 [1] : vector<4x32xf32> to vector<4xf32>
    %399 = vector.shape_cast %398 : vector<4xf32> to vector<4x1xf32>
    %cst_101 = arith.constant 3.200000e+01 : f32
    %400 = vector.broadcast %cst_101 : f32 to vector<4x1xf32>
    %401 = arith.divf %399, %400 : vector<4x1xf32>
    %402 = vector.broadcast %401 : vector<4x1xf32> to vector<4x32xf32>
    %403 = arith.subf %350, %402 : vector<4x32xf32>
    %404 = arith.mulf %403, %403 : vector<4x32xf32>
    %cst_102 = arith.constant dense<0.000000e+00> : vector<4xf32>
    %405 = vector.multi_reduction <add>, %404, %cst_102 [1] : vector<4x32xf32> to vector<4xf32>
    %406 = vector.shape_cast %405 : vector<4xf32> to vector<4x1xf32>
    %cst_103 = arith.constant 3.200000e+01 : f32
    %407 = vector.broadcast %cst_103 : f32 to vector<4x1xf32>
    %408 = arith.divf %406, %407 : vector<4x1xf32>
    %409 = vector.broadcast %401 : vector<4x1xf32> to vector<4x32xf32>
    %410 = arith.subf %350, %409 : vector<4x32xf32>
    %cst_104 = arith.constant 9.99999974E-6 : f32
    %411 = vector.broadcast %cst_104 : f32 to vector<4x1xf32>
    %412 = arith.addf %408, %411 : vector<4x1xf32>
    %413 = math.rsqrt %412 : vector<4x1xf32>
    %414 = vector.broadcast %413 : vector<4x1xf32> to vector<4x32xf32>
    %415 = arith.mulf %410, %414 : vector<4x32xf32>
    %416 = vector.shape_cast %395 : vector<32xf32> to vector<1x32xf32>
    %417 = vector.broadcast %416 : vector<1x32xf32> to vector<4x32xf32>
    %418 = arith.mulf %415, %417 : vector<4x32xf32>
    %419 = vector.shape_cast %397 : vector<32xf32> to vector<1x32xf32>
    %420 = vector.broadcast %419 : vector<1x32xf32> to vector<4x32xf32>
    %421 = arith.addf %418, %420 : vector<4x32xf32>
    %422 = vector.extract_strided_slice %71 {offsets = [8, 0], sizes = [1, 32], strides = [1, 1]} : vector<20x32xf32> to vector<1x32xf32>
    %423 = vector.shape_cast %422 : vector<1x32xf32> to vector<32xf32>
    %424 = vector.extract_strided_slice %71 {offsets = [9, 0], sizes = [1, 32], strides = [1, 1]} : vector<20x32xf32> to vector<1x32xf32>
    %425 = vector.shape_cast %424 : vector<1x32xf32> to vector<32xf32>
    %cst_105 = arith.constant dense<0.000000e+00> : vector<1xf32>
    %426 = vector.multi_reduction <add>, %393, %cst_105 [1] : vector<1x32xf32> to vector<1xf32>
    %427 = vector.shape_cast %426 : vector<1xf32> to vector<1x1xf32>
    %cst_106 = arith.constant 3.200000e+01 : f32
    %428 = vector.broadcast %cst_106 : f32 to vector<1x1xf32>
    %429 = arith.divf %427, %428 : vector<1x1xf32>
    %430 = vector.broadcast %429 : vector<1x1xf32> to vector<1x32xf32>
    %431 = arith.subf %393, %430 : vector<1x32xf32>
    %432 = arith.mulf %431, %431 : vector<1x32xf32>
    %cst_107 = arith.constant dense<0.000000e+00> : vector<1xf32>
    %433 = vector.multi_reduction <add>, %432, %cst_107 [1] : vector<1x32xf32> to vector<1xf32>
    %434 = vector.shape_cast %433 : vector<1xf32> to vector<1x1xf32>
    %cst_108 = arith.constant 3.200000e+01 : f32
    %435 = vector.broadcast %cst_108 : f32 to vector<1x1xf32>
    %436 = arith.divf %434, %435 : vector<1x1xf32>
    %437 = vector.broadcast %429 : vector<1x1xf32> to vector<1x32xf32>
    %438 = arith.subf %393, %437 : vector<1x32xf32>
    %cst_109 = arith.constant 9.99999974E-6 : f32
    %439 = vector.broadcast %cst_109 : f32 to vector<1x1xf32>
    %440 = arith.addf %436, %439 : vector<1x1xf32>
    %441 = math.rsqrt %440 : vector<1x1xf32>
    %442 = vector.broadcast %441 : vector<1x1xf32> to vector<1x32xf32>
    %443 = arith.mulf %438, %442 : vector<1x32xf32>
    %444 = vector.shape_cast %423 : vector<32xf32> to vector<1x32xf32>
    %445 = arith.mulf %443, %444 : vector<1x32xf32>
    %446 = vector.shape_cast %425 : vector<32xf32> to vector<1x32xf32>
    %447 = arith.addf %445, %446 : vector<1x32xf32>
    %448 = vector.extract_strided_slice %72 {offsets = [0, 0, 0], sizes = [1, 32, 32], strides = [1, 1, 1]} : vector<6x32x32xf32> to vector<1x32x32xf32>
    %449 = vector.shape_cast %448 : vector<1x32x32xf32> to vector<32x32xf32>
    %cst_110 = arith.constant dense<0.000000e+00> : vector<4x32xf32>
    %450 = tpu.matmul %421, %449, %cst_110 {dimension_numbers = #tpu.dot_dimension_numbers<[1], [0], [0], [1], [0, 0, 1, 1], [], []>} : vector<4x32xf32>, vector<32x32xf32>, vector<4x32xf32> -> vector<4x32xf32>
    %451 = vector.extract_strided_slice %71 {offsets = [14, 0], sizes = [1, 32], strides = [1, 1]} : vector<20x32xf32> to vector<1x32xf32>
    %452 = vector.shape_cast %451 : vector<1x32xf32> to vector<32xf32>
    %453 = vector.shape_cast %452 : vector<32xf32> to vector<1x32xf32>
    %454 = vector.broadcast %453 : vector<1x32xf32> to vector<4x32xf32>
    %455 = arith.addf %450, %454 : vector<4x32xf32>
    %456 = vector.extract_strided_slice %72 {offsets = [1, 0, 0], sizes = [1, 32, 32], strides = [1, 1, 1]} : vector<6x32x32xf32> to vector<1x32x32xf32>
    %457 = vector.shape_cast %456 : vector<1x32x32xf32> to vector<32x32xf32>
    %cst_111 = arith.constant dense<0.000000e+00> : vector<1x32xf32>
    %458 = tpu.matmul %447, %457, %cst_111 {dimension_numbers = #tpu.dot_dimension_numbers<[1], [0], [0], [1], [0, 0, 1, 1], [], []>} : vector<1x32xf32>, vector<32x32xf32>, vector<1x32xf32> -> vector<1x32xf32>
    %459 = vector.extract_strided_slice %71 {offsets = [15, 0], sizes = [1, 32], strides = [1, 1]} : vector<20x32xf32> to vector<1x32xf32>
    %460 = vector.shape_cast %459 : vector<1x32xf32> to vector<32xf32>
    %461 = vector.shape_cast %460 : vector<32xf32> to vector<1x32xf32>
    %462 = arith.addf %458, %461 : vector<1x32xf32>
    %463 = tpu.concatenate %462, %455 in 0 : vector<1x32xf32>, vector<4x32xf32> -> vector<5x32xf32>
    %cst_112 = arith.constant dense<0.000000e+00> : vector<5x64xf32>
    %464 = tpu.matmul %463, %109, %cst_112 {dimension_numbers = #tpu.dot_dimension_numbers<[1], [0], [0], [1], [0, 0, 1, 1], [], []>} : vector<5x32xf32>, vector<32x64xf32>, vector<5x64xf32> -> vector<5x64xf32>
    %cst_113 = arith.constant 0.176776692 : f32
    %465 = vector.broadcast %cst_113 : f32 to vector<5x64xf32>
    %466 = arith.mulf %464, %465 : vector<5x64xf32>
    %cst_114 = arith.constant dense<0xFF800000> : vector<64xf32>
    %467 = vector.multi_reduction <maximumf>, %466, %cst_114 [0] : vector<5x64xf32> to vector<64xf32>
    %cst_115 = arith.constant 0xFF800000 : f32
    %468 = vector.broadcast %cst_115 : f32 to vector<64xf32>
    %469 = arith.maximumf %468, %467 : vector<64xf32>
    %470 = vector.shape_cast %469 : vector<64xf32> to vector<1x64xf32>
    %471 = vector.broadcast %470 : vector<1x64xf32> to vector<5x64xf32>
    %472 = arith.subf %466, %471 : vector<5x64xf32>
    %473 = math.exp %472 : vector<5x64xf32>
    %cst_116 = arith.constant dense<0.000000e+00> : vector<64xf32>
    %474 = vector.multi_reduction <add>, %473, %cst_116 [0] : vector<5x64xf32> to vector<64xf32>
    %475 = vector.shape_cast %474 : vector<64xf32> to vector<1x64xf32>
    %476 = vector.broadcast %475 : vector<1x64xf32> to vector<5x64xf32>
    %477 = arith.divf %473, %476 : vector<5x64xf32>
    %cst_117 = arith.constant 9.99999993E-9 : f32
    %478 = vector.broadcast %cst_117 : f32 to vector<5x64xf32>
    %479 = arith.addf %477, %478 : vector<5x64xf32>
    %cst_118 = arith.constant dense<0.000000e+00> : vector<5xf32>
    %480 = vector.multi_reduction <add>, %479, %cst_118 [1] : vector<5x64xf32> to vector<5xf32>
    %481 = vector.shape_cast %480 : vector<5xf32> to vector<5x1xf32>
    %482 = vector.broadcast %481 : vector<5x1xf32> to vector<5x64xf32>
    %483 = arith.divf %479, %482 : vector<5x64xf32>
    %484 = vector.extract_strided_slice %483 {offsets = [1, 0], sizes = [4, 64], strides = [1, 1]} : vector<5x64xf32> to vector<4x64xf32>
    %cst_119 = arith.constant dense<0.000000e+00> : vector<4x32xf32>
    %485 = tpu.matmul %484, %110, %cst_119 {dimension_numbers = #tpu.dot_dimension_numbers<[1], [0], [0], [1], [0, 0, 1, 1], [], []>} : vector<4x64xf32>, vector<64x32xf32>, vector<4x32xf32> -> vector<4x32xf32>
    %486 = vector.extract_strided_slice %483 {offsets = [0, 0], sizes = [1, 64], strides = [1, 1]} : vector<5x64xf32> to vector<1x64xf32>
    %cst_120 = arith.constant dense<0.000000e+00> : vector<1x32xf32>
    %487 = tpu.matmul %486, %111, %cst_120 {dimension_numbers = #tpu.dot_dimension_numbers<[1], [0], [0], [1], [0, 0, 1, 1], [], []>} : vector<1x64xf32>, vector<64x32xf32>, vector<1x32xf32> -> vector<1x32xf32>
    %488 = vector.extract_strided_slice %73 {offsets = [0, 0, 0], sizes = [1, 32, 96], strides = [1, 1, 1]} : vector<4x32x96xf32> to vector<1x32x96xf32>
    %489 = vector.shape_cast %488 : vector<1x32x96xf32> to vector<32x96xf32>
    %490 = vector.extract_strided_slice %73 {offsets = [1, 0, 0], sizes = [1, 32, 96], strides = [1, 1, 1]} : vector<4x32x96xf32> to vector<1x32x96xf32>
    %491 = vector.shape_cast %490 : vector<1x32x96xf32> to vector<32x96xf32>
    %492 = vector.extract_strided_slice %74 {offsets = [0, 0], sizes = [1, 96], strides = [1, 1]} : vector<4x96xf32> to vector<1x96xf32>
    %493 = vector.shape_cast %492 : vector<1x96xf32> to vector<96xf32>
    %494 = vector.extract_strided_slice %74 {offsets = [1, 0], sizes = [1, 96], strides = [1, 1]} : vector<4x96xf32> to vector<1x96xf32>
    %495 = vector.shape_cast %494 : vector<1x96xf32> to vector<96xf32>
    %cst_121 = arith.constant dense<0.000000e+00> : vector<4x96xf32>
    %496 = tpu.matmul %485, %489, %cst_121 {dimension_numbers = #tpu.dot_dimension_numbers<[1], [0], [0], [1], [0, 0, 1, 1], [], []>} : vector<4x32xf32>, vector<32x96xf32>, vector<4x96xf32> -> vector<4x96xf32>
    %497 = vector.shape_cast %493 : vector<96xf32> to vector<1x96xf32>
    %498 = vector.broadcast %497 : vector<1x96xf32> to vector<4x96xf32>
    %499 = arith.addf %496, %498 : vector<4x96xf32>
    %cst_122 = arith.constant dense<0.000000e+00> : vector<4x96xf32>
    %500 = tpu.matmul %350, %491, %cst_122 {dimension_numbers = #tpu.dot_dimension_numbers<[1], [0], [0], [1], [0, 0, 1, 1], [], []>} : vector<4x32xf32>, vector<32x96xf32>, vector<4x96xf32> -> vector<4x96xf32>
    %501 = vector.shape_cast %495 : vector<96xf32> to vector<1x96xf32>
    %502 = vector.broadcast %501 : vector<1x96xf32> to vector<4x96xf32>
    %503 = arith.addf %500, %502 : vector<4x96xf32>
    %504 = vector.extract_strided_slice %499 {offsets = [0, 0], sizes = [4, 32], strides = [1, 1]} : vector<4x96xf32> to vector<4x32xf32>
    %505 = vector.extract_strided_slice %503 {offsets = [0, 0], sizes = [4, 32], strides = [1, 1]} : vector<4x96xf32> to vector<4x32xf32>
    %506 = arith.addf %504, %505 : vector<4x32xf32>
    %507 = arith.negf %506 : vector<4x32xf32>
    %508 = math.exp %507 : vector<4x32xf32>
    %cst_123 = arith.constant 1.000000e+00 : f32
    %509 = vector.broadcast %cst_123 : f32 to vector<4x32xf32>
    %510 = arith.addf %509, %508 : vector<4x32xf32>
    %511 = arith.divf %509, %510 : vector<4x32xf32>
    %512 = vector.extract_strided_slice %499 {offsets = [0, 32], sizes = [4, 32], strides = [1, 1]} : vector<4x96xf32> to vector<4x32xf32>
    %513 = vector.extract_strided_slice %503 {offsets = [0, 32], sizes = [4, 32], strides = [1, 1]} : vector<4x96xf32> to vector<4x32xf32>
    %514 = arith.addf %512, %513 : vector<4x32xf32>
    %515 = arith.negf %514 : vector<4x32xf32>
    %516 = math.exp %515 : vector<4x32xf32>
    %cst_124 = arith.constant 1.000000e+00 : f32
    %517 = vector.broadcast %cst_124 : f32 to vector<4x32xf32>
    %518 = arith.addf %517, %516 : vector<4x32xf32>
    %519 = arith.divf %517, %518 : vector<4x32xf32>
    %520 = vector.extract_strided_slice %499 {offsets = [0, 64], sizes = [4, 32], strides = [1, 1]} : vector<4x96xf32> to vector<4x32xf32>
    %521 = vector.extract_strided_slice %503 {offsets = [0, 64], sizes = [4, 32], strides = [1, 1]} : vector<4x96xf32> to vector<4x32xf32>
    %522 = arith.mulf %511, %521 : vector<4x32xf32>
    %523 = arith.addf %520, %522 : vector<4x32xf32>
    %524 = math.tanh %523 : vector<4x32xf32>
    %cst_125 = arith.constant 1.000000e+00 : f32
    %525 = vector.broadcast %cst_125 : f32 to vector<4x32xf32>
    %526 = arith.subf %525, %519 : vector<4x32xf32>
    %527 = arith.mulf %526, %524 : vector<4x32xf32>
    %528 = arith.mulf %519, %350 : vector<4x32xf32>
    %529 = arith.addf %527, %528 : vector<4x32xf32>
    %530 = vector.extract_strided_slice %73 {offsets = [2, 0, 0], sizes = [1, 32, 96], strides = [1, 1, 1]} : vector<4x32x96xf32> to vector<1x32x96xf32>
    %531 = vector.shape_cast %530 : vector<1x32x96xf32> to vector<32x96xf32>
    %532 = vector.extract_strided_slice %73 {offsets = [3, 0, 0], sizes = [1, 32, 96], strides = [1, 1, 1]} : vector<4x32x96xf32> to vector<1x32x96xf32>
    %533 = vector.shape_cast %532 : vector<1x32x96xf32> to vector<32x96xf32>
    %534 = vector.extract_strided_slice %74 {offsets = [2, 0], sizes = [1, 96], strides = [1, 1]} : vector<4x96xf32> to vector<1x96xf32>
    %535 = vector.shape_cast %534 : vector<1x96xf32> to vector<96xf32>
    %536 = vector.extract_strided_slice %74 {offsets = [3, 0], sizes = [1, 96], strides = [1, 1]} : vector<4x96xf32> to vector<1x96xf32>
    %537 = vector.shape_cast %536 : vector<1x96xf32> to vector<96xf32>
    %cst_126 = arith.constant dense<0.000000e+00> : vector<1x96xf32>
    %538 = tpu.matmul %487, %531, %cst_126 {dimension_numbers = #tpu.dot_dimension_numbers<[1], [0], [0], [1], [0, 0, 1, 1], [], []>} : vector<1x32xf32>, vector<32x96xf32>, vector<1x96xf32> -> vector<1x96xf32>
    %539 = vector.shape_cast %535 : vector<96xf32> to vector<1x96xf32>
    %540 = arith.addf %538, %539 : vector<1x96xf32>
    %cst_127 = arith.constant dense<0.000000e+00> : vector<1x96xf32>
    %541 = tpu.matmul %393, %533, %cst_127 {dimension_numbers = #tpu.dot_dimension_numbers<[1], [0], [0], [1], [0, 0, 1, 1], [], []>} : vector<1x32xf32>, vector<32x96xf32>, vector<1x96xf32> -> vector<1x96xf32>
    %542 = vector.shape_cast %537 : vector<96xf32> to vector<1x96xf32>
    %543 = arith.addf %541, %542 : vector<1x96xf32>
    %544 = vector.extract_strided_slice %540 {offsets = [0, 0], sizes = [1, 32], strides = [1, 1]} : vector<1x96xf32> to vector<1x32xf32>
    %545 = vector.extract_strided_slice %543 {offsets = [0, 0], sizes = [1, 32], strides = [1, 1]} : vector<1x96xf32> to vector<1x32xf32>
    %546 = arith.addf %544, %545 : vector<1x32xf32>
    %547 = arith.negf %546 : vector<1x32xf32>
    %548 = math.exp %547 : vector<1x32xf32>
    %cst_128 = arith.constant 1.000000e+00 : f32
    %549 = vector.broadcast %cst_128 : f32 to vector<1x32xf32>
    %550 = arith.addf %549, %548 : vector<1x32xf32>
    %551 = arith.divf %549, %550 : vector<1x32xf32>
    %552 = vector.extract_strided_slice %540 {offsets = [0, 32], sizes = [1, 32], strides = [1, 1]} : vector<1x96xf32> to vector<1x32xf32>
    %553 = vector.extract_strided_slice %543 {offsets = [0, 32], sizes = [1, 32], strides = [1, 1]} : vector<1x96xf32> to vector<1x32xf32>
    %554 = arith.addf %552, %553 : vector<1x32xf32>
    %555 = arith.negf %554 : vector<1x32xf32>
    %556 = math.exp %555 : vector<1x32xf32>
    %cst_129 = arith.constant 1.000000e+00 : f32
    %557 = vector.broadcast %cst_129 : f32 to vector<1x32xf32>
    %558 = arith.addf %557, %556 : vector<1x32xf32>
    %559 = arith.divf %557, %558 : vector<1x32xf32>
    %560 = vector.extract_strided_slice %540 {offsets = [0, 64], sizes = [1, 32], strides = [1, 1]} : vector<1x96xf32> to vector<1x32xf32>
    %561 = vector.extract_strided_slice %543 {offsets = [0, 64], sizes = [1, 32], strides = [1, 1]} : vector<1x96xf32> to vector<1x32xf32>
    %562 = arith.mulf %551, %561 : vector<1x32xf32>
    %563 = arith.addf %560, %562 : vector<1x32xf32>
    %564 = math.tanh %563 : vector<1x32xf32>
    %cst_130 = arith.constant 1.000000e+00 : f32
    %565 = vector.broadcast %cst_130 : f32 to vector<1x32xf32>
    %566 = arith.subf %565, %559 : vector<1x32xf32>
    %567 = arith.mulf %566, %564 : vector<1x32xf32>
    %568 = arith.mulf %559, %393 : vector<1x32xf32>
    %569 = arith.addf %567, %568 : vector<1x32xf32>
    %570 = vector.extract_strided_slice %71 {offsets = [10, 0], sizes = [1, 32], strides = [1, 1]} : vector<20x32xf32> to vector<1x32xf32>
    %571 = vector.shape_cast %570 : vector<1x32xf32> to vector<32xf32>
    %572 = vector.extract_strided_slice %71 {offsets = [11, 0], sizes = [1, 32], strides = [1, 1]} : vector<20x32xf32> to vector<1x32xf32>
    %573 = vector.shape_cast %572 : vector<1x32xf32> to vector<32xf32>
    %cst_131 = arith.constant dense<0.000000e+00> : vector<4xf32>
    %574 = vector.multi_reduction <add>, %529, %cst_131 [1] : vector<4x32xf32> to vector<4xf32>
    %575 = vector.shape_cast %574 : vector<4xf32> to vector<4x1xf32>
    %cst_132 = arith.constant 3.200000e+01 : f32
    %576 = vector.broadcast %cst_132 : f32 to vector<4x1xf32>
    %577 = arith.divf %575, %576 : vector<4x1xf32>
    %578 = vector.broadcast %577 : vector<4x1xf32> to vector<4x32xf32>
    %579 = arith.subf %529, %578 : vector<4x32xf32>
    %580 = arith.mulf %579, %579 : vector<4x32xf32>
    %cst_133 = arith.constant dense<0.000000e+00> : vector<4xf32>
    %581 = vector.multi_reduction <add>, %580, %cst_133 [1] : vector<4x32xf32> to vector<4xf32>
    %582 = vector.shape_cast %581 : vector<4xf32> to vector<4x1xf32>
    %cst_134 = arith.constant 3.200000e+01 : f32
    %583 = vector.broadcast %cst_134 : f32 to vector<4x1xf32>
    %584 = arith.divf %582, %583 : vector<4x1xf32>
    %585 = vector.broadcast %577 : vector<4x1xf32> to vector<4x32xf32>
    %586 = arith.subf %529, %585 : vector<4x32xf32>
    %cst_135 = arith.constant 9.99999974E-6 : f32
    %587 = vector.broadcast %cst_135 : f32 to vector<4x1xf32>
    %588 = arith.addf %584, %587 : vector<4x1xf32>
    %589 = math.rsqrt %588 : vector<4x1xf32>
    %590 = vector.broadcast %589 : vector<4x1xf32> to vector<4x32xf32>
    %591 = arith.mulf %586, %590 : vector<4x32xf32>
    %592 = vector.shape_cast %571 : vector<32xf32> to vector<1x32xf32>
    %593 = vector.broadcast %592 : vector<1x32xf32> to vector<4x32xf32>
    %594 = arith.mulf %591, %593 : vector<4x32xf32>
    %595 = vector.shape_cast %573 : vector<32xf32> to vector<1x32xf32>
    %596 = vector.broadcast %595 : vector<1x32xf32> to vector<4x32xf32>
    %597 = arith.addf %594, %596 : vector<4x32xf32>
    %598 = vector.extract_strided_slice %72 {offsets = [2, 0, 0], sizes = [1, 32, 32], strides = [1, 1, 1]} : vector<6x32x32xf32> to vector<1x32x32xf32>
    %599 = vector.shape_cast %598 : vector<1x32x32xf32> to vector<32x32xf32>
    %600 = vector.extract_strided_slice %71 {offsets = [16, 0], sizes = [1, 32], strides = [1, 1]} : vector<20x32xf32> to vector<1x32xf32>
    %601 = vector.shape_cast %600 : vector<1x32xf32> to vector<32xf32>
    %602 = vector.extract_strided_slice %72 {offsets = [3, 0, 0], sizes = [1, 32, 32], strides = [1, 1, 1]} : vector<6x32x32xf32> to vector<1x32x32xf32>
    %603 = vector.shape_cast %602 : vector<1x32x32xf32> to vector<32x32xf32>
    %604 = vector.extract_strided_slice %71 {offsets = [17, 0], sizes = [1, 32], strides = [1, 1]} : vector<20x32xf32> to vector<1x32xf32>
    %605 = vector.shape_cast %604 : vector<1x32xf32> to vector<32xf32>
    %cst_136 = arith.constant dense<0.000000e+00> : vector<4x32xf32>
    %606 = tpu.matmul %597, %599, %cst_136 {dimension_numbers = #tpu.dot_dimension_numbers<[1], [0], [0], [1], [0, 0, 1, 1], [], []>} : vector<4x32xf32>, vector<32x32xf32>, vector<4x32xf32> -> vector<4x32xf32>
    %607 = vector.shape_cast %601 : vector<32xf32> to vector<1x32xf32>
    %608 = vector.broadcast %607 : vector<1x32xf32> to vector<4x32xf32>
    %609 = arith.addf %606, %608 : vector<4x32xf32>
    %cst_137 = arith.constant 0.000000e+00 : f32
    %610 = vector.broadcast %cst_137 : f32 to vector<4x32xf32>
    %611 = arith.maximumf %609, %610 : vector<4x32xf32>
    %cst_138 = arith.constant dense<0.000000e+00> : vector<4x32xf32>
    %612 = tpu.matmul %611, %603, %cst_138 {dimension_numbers = #tpu.dot_dimension_numbers<[1], [0], [0], [1], [0, 0, 1, 1], [], []>} : vector<4x32xf32>, vector<32x32xf32>, vector<4x32xf32> -> vector<4x32xf32>
    %613 = vector.shape_cast %605 : vector<32xf32> to vector<1x32xf32>
    %614 = vector.broadcast %613 : vector<1x32xf32> to vector<4x32xf32>
    %615 = arith.addf %612, %614 : vector<4x32xf32>
    %616 = arith.addf %529, %615 : vector<4x32xf32>
    %617 = vector.extract_strided_slice %71 {offsets = [12, 0], sizes = [1, 32], strides = [1, 1]} : vector<20x32xf32> to vector<1x32xf32>
    %618 = vector.shape_cast %617 : vector<1x32xf32> to vector<32xf32>
    %619 = vector.extract_strided_slice %71 {offsets = [13, 0], sizes = [1, 32], strides = [1, 1]} : vector<20x32xf32> to vector<1x32xf32>
    %620 = vector.shape_cast %619 : vector<1x32xf32> to vector<32xf32>
    %cst_139 = arith.constant dense<0.000000e+00> : vector<1xf32>
    %621 = vector.multi_reduction <add>, %569, %cst_139 [1] : vector<1x32xf32> to vector<1xf32>
    %622 = vector.shape_cast %621 : vector<1xf32> to vector<1x1xf32>
    %cst_140 = arith.constant 3.200000e+01 : f32
    %623 = vector.broadcast %cst_140 : f32 to vector<1x1xf32>
    %624 = arith.divf %622, %623 : vector<1x1xf32>
    %625 = vector.broadcast %624 : vector<1x1xf32> to vector<1x32xf32>
    %626 = arith.subf %569, %625 : vector<1x32xf32>
    %627 = arith.mulf %626, %626 : vector<1x32xf32>
    %cst_141 = arith.constant dense<0.000000e+00> : vector<1xf32>
    %628 = vector.multi_reduction <add>, %627, %cst_141 [1] : vector<1x32xf32> to vector<1xf32>
    %629 = vector.shape_cast %628 : vector<1xf32> to vector<1x1xf32>
    %cst_142 = arith.constant 3.200000e+01 : f32
    %630 = vector.broadcast %cst_142 : f32 to vector<1x1xf32>
    %631 = arith.divf %629, %630 : vector<1x1xf32>
    %632 = vector.broadcast %624 : vector<1x1xf32> to vector<1x32xf32>
    %633 = arith.subf %569, %632 : vector<1x32xf32>
    %cst_143 = arith.constant 9.99999974E-6 : f32
    %634 = vector.broadcast %cst_143 : f32 to vector<1x1xf32>
    %635 = arith.addf %631, %634 : vector<1x1xf32>
    %636 = math.rsqrt %635 : vector<1x1xf32>
    %637 = vector.broadcast %636 : vector<1x1xf32> to vector<1x32xf32>
    %638 = arith.mulf %633, %637 : vector<1x32xf32>
    %639 = vector.shape_cast %618 : vector<32xf32> to vector<1x32xf32>
    %640 = arith.mulf %638, %639 : vector<1x32xf32>
    %641 = vector.shape_cast %620 : vector<32xf32> to vector<1x32xf32>
    %642 = arith.addf %640, %641 : vector<1x32xf32>
    %643 = vector.extract_strided_slice %72 {offsets = [4, 0, 0], sizes = [1, 32, 32], strides = [1, 1, 1]} : vector<6x32x32xf32> to vector<1x32x32xf32>
    %644 = vector.shape_cast %643 : vector<1x32x32xf32> to vector<32x32xf32>
    %645 = vector.extract_strided_slice %71 {offsets = [18, 0], sizes = [1, 32], strides = [1, 1]} : vector<20x32xf32> to vector<1x32xf32>
    %646 = vector.shape_cast %645 : vector<1x32xf32> to vector<32xf32>
    %647 = vector.extract_strided_slice %72 {offsets = [5, 0, 0], sizes = [1, 32, 32], strides = [1, 1, 1]} : vector<6x32x32xf32> to vector<1x32x32xf32>
    %648 = vector.shape_cast %647 : vector<1x32x32xf32> to vector<32x32xf32>
    %649 = vector.extract_strided_slice %71 {offsets = [19, 0], sizes = [1, 32], strides = [1, 1]} : vector<20x32xf32> to vector<1x32xf32>
    %650 = vector.shape_cast %649 : vector<1x32xf32> to vector<32xf32>
    %cst_144 = arith.constant dense<0.000000e+00> : vector<1x32xf32>
    %651 = tpu.matmul %642, %644, %cst_144 {dimension_numbers = #tpu.dot_dimension_numbers<[1], [0], [0], [1], [0, 0, 1, 1], [], []>} : vector<1x32xf32>, vector<32x32xf32>, vector<1x32xf32> -> vector<1x32xf32>
    %652 = vector.shape_cast %646 : vector<32xf32> to vector<1x32xf32>
    %653 = arith.addf %651, %652 : vector<1x32xf32>
    %cst_145 = arith.constant 0.000000e+00 : f32
    %654 = vector.broadcast %cst_145 : f32 to vector<1x32xf32>
    %655 = arith.maximumf %653, %654 : vector<1x32xf32>
    %cst_146 = arith.constant dense<0.000000e+00> : vector<1x32xf32>
    %656 = tpu.matmul %655, %648, %cst_146 {dimension_numbers = #tpu.dot_dimension_numbers<[1], [0], [0], [1], [0, 0, 1, 1], [], []>} : vector<1x32xf32>, vector<32x32xf32>, vector<1x32xf32> -> vector<1x32xf32>
    %657 = vector.shape_cast %650 : vector<32xf32> to vector<1x32xf32>
    %658 = arith.addf %656, %657 : vector<1x32xf32>
    %659 = arith.addf %569, %658 : vector<1x32xf32>
    %660 = vector.extract_strided_slice %71 {offsets = [6, 0], sizes = [1, 32], strides = [1, 1]} : vector<20x32xf32> to vector<1x32xf32>
    %661 = vector.shape_cast %660 : vector<1x32xf32> to vector<32xf32>
    %662 = vector.extract_strided_slice %71 {offsets = [7, 0], sizes = [1, 32], strides = [1, 1]} : vector<20x32xf32> to vector<1x32xf32>
    %663 = vector.shape_cast %662 : vector<1x32xf32> to vector<32xf32>
    %cst_147 = arith.constant dense<0.000000e+00> : vector<4xf32>
    %664 = vector.multi_reduction <add>, %616, %cst_147 [1] : vector<4x32xf32> to vector<4xf32>
    %665 = vector.shape_cast %664 : vector<4xf32> to vector<4x1xf32>
    %cst_148 = arith.constant 3.200000e+01 : f32
    %666 = vector.broadcast %cst_148 : f32 to vector<4x1xf32>
    %667 = arith.divf %665, %666 : vector<4x1xf32>
    %668 = vector.broadcast %667 : vector<4x1xf32> to vector<4x32xf32>
    %669 = arith.subf %616, %668 : vector<4x32xf32>
    %670 = arith.mulf %669, %669 : vector<4x32xf32>
    %cst_149 = arith.constant dense<0.000000e+00> : vector<4xf32>
    %671 = vector.multi_reduction <add>, %670, %cst_149 [1] : vector<4x32xf32> to vector<4xf32>
    %672 = vector.shape_cast %671 : vector<4xf32> to vector<4x1xf32>
    %cst_150 = arith.constant 3.200000e+01 : f32
    %673 = vector.broadcast %cst_150 : f32 to vector<4x1xf32>
    %674 = arith.divf %672, %673 : vector<4x1xf32>
    %675 = vector.broadcast %667 : vector<4x1xf32> to vector<4x32xf32>
    %676 = arith.subf %616, %675 : vector<4x32xf32>
    %cst_151 = arith.constant 9.99999974E-6 : f32
    %677 = vector.broadcast %cst_151 : f32 to vector<4x1xf32>
    %678 = arith.addf %674, %677 : vector<4x1xf32>
    %679 = math.rsqrt %678 : vector<4x1xf32>
    %680 = vector.broadcast %679 : vector<4x1xf32> to vector<4x32xf32>
    %681 = arith.mulf %676, %680 : vector<4x32xf32>
    %682 = vector.shape_cast %661 : vector<32xf32> to vector<1x32xf32>
    %683 = vector.broadcast %682 : vector<1x32xf32> to vector<4x32xf32>
    %684 = arith.mulf %681, %683 : vector<4x32xf32>
    %685 = vector.shape_cast %663 : vector<32xf32> to vector<1x32xf32>
    %686 = vector.broadcast %685 : vector<1x32xf32> to vector<4x32xf32>
    %687 = arith.addf %684, %686 : vector<4x32xf32>
    %688 = vector.extract_strided_slice %71 {offsets = [8, 0], sizes = [1, 32], strides = [1, 1]} : vector<20x32xf32> to vector<1x32xf32>
    %689 = vector.shape_cast %688 : vector<1x32xf32> to vector<32xf32>
    %690 = vector.extract_strided_slice %71 {offsets = [9, 0], sizes = [1, 32], strides = [1, 1]} : vector<20x32xf32> to vector<1x32xf32>
    %691 = vector.shape_cast %690 : vector<1x32xf32> to vector<32xf32>
    %cst_152 = arith.constant dense<0.000000e+00> : vector<1xf32>
    %692 = vector.multi_reduction <add>, %659, %cst_152 [1] : vector<1x32xf32> to vector<1xf32>
    %693 = vector.shape_cast %692 : vector<1xf32> to vector<1x1xf32>
    %cst_153 = arith.constant 3.200000e+01 : f32
    %694 = vector.broadcast %cst_153 : f32 to vector<1x1xf32>
    %695 = arith.divf %693, %694 : vector<1x1xf32>
    %696 = vector.broadcast %695 : vector<1x1xf32> to vector<1x32xf32>
    %697 = arith.subf %659, %696 : vector<1x32xf32>
    %698 = arith.mulf %697, %697 : vector<1x32xf32>
    %cst_154 = arith.constant dense<0.000000e+00> : vector<1xf32>
    %699 = vector.multi_reduction <add>, %698, %cst_154 [1] : vector<1x32xf32> to vector<1xf32>
    %700 = vector.shape_cast %699 : vector<1xf32> to vector<1x1xf32>
    %cst_155 = arith.constant 3.200000e+01 : f32
    %701 = vector.broadcast %cst_155 : f32 to vector<1x1xf32>
    %702 = arith.divf %700, %701 : vector<1x1xf32>
    %703 = vector.broadcast %695 : vector<1x1xf32> to vector<1x32xf32>
    %704 = arith.subf %659, %703 : vector<1x32xf32>
    %cst_156 = arith.constant 9.99999974E-6 : f32
    %705 = vector.broadcast %cst_156 : f32 to vector<1x1xf32>
    %706 = arith.addf %702, %705 : vector<1x1xf32>
    %707 = math.rsqrt %706 : vector<1x1xf32>
    %708 = vector.broadcast %707 : vector<1x1xf32> to vector<1x32xf32>
    %709 = arith.mulf %704, %708 : vector<1x32xf32>
    %710 = vector.shape_cast %689 : vector<32xf32> to vector<1x32xf32>
    %711 = arith.mulf %709, %710 : vector<1x32xf32>
    %712 = vector.shape_cast %691 : vector<32xf32> to vector<1x32xf32>
    %713 = arith.addf %711, %712 : vector<1x32xf32>
    %714 = vector.extract_strided_slice %72 {offsets = [0, 0, 0], sizes = [1, 32, 32], strides = [1, 1, 1]} : vector<6x32x32xf32> to vector<1x32x32xf32>
    %715 = vector.shape_cast %714 : vector<1x32x32xf32> to vector<32x32xf32>
    %cst_157 = arith.constant dense<0.000000e+00> : vector<4x32xf32>
    %716 = tpu.matmul %687, %715, %cst_157 {dimension_numbers = #tpu.dot_dimension_numbers<[1], [0], [0], [1], [0, 0, 1, 1], [], []>} : vector<4x32xf32>, vector<32x32xf32>, vector<4x32xf32> -> vector<4x32xf32>
    %717 = vector.extract_strided_slice %71 {offsets = [14, 0], sizes = [1, 32], strides = [1, 1]} : vector<20x32xf32> to vector<1x32xf32>
    %718 = vector.shape_cast %717 : vector<1x32xf32> to vector<32xf32>
    %719 = vector.shape_cast %718 : vector<32xf32> to vector<1x32xf32>
    %720 = vector.broadcast %719 : vector<1x32xf32> to vector<4x32xf32>
    %721 = arith.addf %716, %720 : vector<4x32xf32>
    %722 = vector.extract_strided_slice %72 {offsets = [1, 0, 0], sizes = [1, 32, 32], strides = [1, 1, 1]} : vector<6x32x32xf32> to vector<1x32x32xf32>
    %723 = vector.shape_cast %722 : vector<1x32x32xf32> to vector<32x32xf32>
    %cst_158 = arith.constant dense<0.000000e+00> : vector<1x32xf32>
    %724 = tpu.matmul %713, %723, %cst_158 {dimension_numbers = #tpu.dot_dimension_numbers<[1], [0], [0], [1], [0, 0, 1, 1], [], []>} : vector<1x32xf32>, vector<32x32xf32>, vector<1x32xf32> -> vector<1x32xf32>
    %725 = vector.extract_strided_slice %71 {offsets = [15, 0], sizes = [1, 32], strides = [1, 1]} : vector<20x32xf32> to vector<1x32xf32>
    %726 = vector.shape_cast %725 : vector<1x32xf32> to vector<32xf32>
    %727 = vector.shape_cast %726 : vector<32xf32> to vector<1x32xf32>
    %728 = arith.addf %724, %727 : vector<1x32xf32>
    %729 = tpu.concatenate %728, %721 in 0 : vector<1x32xf32>, vector<4x32xf32> -> vector<5x32xf32>
    %cst_159 = arith.constant dense<0.000000e+00> : vector<5x64xf32>
    %730 = tpu.matmul %729, %109, %cst_159 {dimension_numbers = #tpu.dot_dimension_numbers<[1], [0], [0], [1], [0, 0, 1, 1], [], []>} : vector<5x32xf32>, vector<32x64xf32>, vector<5x64xf32> -> vector<5x64xf32>
    %cst_160 = arith.constant 0.176776692 : f32
    %731 = vector.broadcast %cst_160 : f32 to vector<5x64xf32>
    %732 = arith.mulf %730, %731 : vector<5x64xf32>
    %cst_161 = arith.constant dense<0xFF800000> : vector<64xf32>
    %733 = vector.multi_reduction <maximumf>, %732, %cst_161 [0] : vector<5x64xf32> to vector<64xf32>
    %cst_162 = arith.constant 0xFF800000 : f32
    %734 = vector.broadcast %cst_162 : f32 to vector<64xf32>
    %735 = arith.maximumf %734, %733 : vector<64xf32>
    %736 = vector.shape_cast %735 : vector<64xf32> to vector<1x64xf32>
    %737 = vector.broadcast %736 : vector<1x64xf32> to vector<5x64xf32>
    %738 = arith.subf %732, %737 : vector<5x64xf32>
    %739 = math.exp %738 : vector<5x64xf32>
    %cst_163 = arith.constant dense<0.000000e+00> : vector<64xf32>
    %740 = vector.multi_reduction <add>, %739, %cst_163 [0] : vector<5x64xf32> to vector<64xf32>
    %741 = vector.shape_cast %740 : vector<64xf32> to vector<1x64xf32>
    %742 = vector.broadcast %741 : vector<1x64xf32> to vector<5x64xf32>
    %743 = arith.divf %739, %742 : vector<5x64xf32>
    %cst_164 = arith.constant 9.99999993E-9 : f32
    %744 = vector.broadcast %cst_164 : f32 to vector<5x64xf32>
    %745 = arith.addf %743, %744 : vector<5x64xf32>
    %cst_165 = arith.constant dense<0.000000e+00> : vector<5xf32>
    %746 = vector.multi_reduction <add>, %745, %cst_165 [1] : vector<5x64xf32> to vector<5xf32>
    %747 = vector.shape_cast %746 : vector<5xf32> to vector<5x1xf32>
    %748 = vector.broadcast %747 : vector<5x1xf32> to vector<5x64xf32>
    %749 = arith.divf %745, %748 : vector<5x64xf32>
    %750 = vector.extract_strided_slice %749 {offsets = [1, 0], sizes = [4, 64], strides = [1, 1]} : vector<5x64xf32> to vector<4x64xf32>
    %cst_166 = arith.constant dense<0.000000e+00> : vector<4x32xf32>
    %751 = tpu.matmul %750, %110, %cst_166 {dimension_numbers = #tpu.dot_dimension_numbers<[1], [0], [0], [1], [0, 0, 1, 1], [], []>} : vector<4x64xf32>, vector<64x32xf32>, vector<4x32xf32> -> vector<4x32xf32>
    %752 = vector.extract_strided_slice %749 {offsets = [0, 0], sizes = [1, 64], strides = [1, 1]} : vector<5x64xf32> to vector<1x64xf32>
    %cst_167 = arith.constant dense<0.000000e+00> : vector<1x32xf32>
    %753 = tpu.matmul %752, %111, %cst_167 {dimension_numbers = #tpu.dot_dimension_numbers<[1], [0], [0], [1], [0, 0, 1, 1], [], []>} : vector<1x64xf32>, vector<64x32xf32>, vector<1x32xf32> -> vector<1x32xf32>
    %754 = vector.extract_strided_slice %73 {offsets = [0, 0, 0], sizes = [1, 32, 96], strides = [1, 1, 1]} : vector<4x32x96xf32> to vector<1x32x96xf32>
    %755 = vector.shape_cast %754 : vector<1x32x96xf32> to vector<32x96xf32>
    %756 = vector.extract_strided_slice %73 {offsets = [1, 0, 0], sizes = [1, 32, 96], strides = [1, 1, 1]} : vector<4x32x96xf32> to vector<1x32x96xf32>
    %757 = vector.shape_cast %756 : vector<1x32x96xf32> to vector<32x96xf32>
    %758 = vector.extract_strided_slice %74 {offsets = [0, 0], sizes = [1, 96], strides = [1, 1]} : vector<4x96xf32> to vector<1x96xf32>
    %759 = vector.shape_cast %758 : vector<1x96xf32> to vector<96xf32>
    %760 = vector.extract_strided_slice %74 {offsets = [1, 0], sizes = [1, 96], strides = [1, 1]} : vector<4x96xf32> to vector<1x96xf32>
    %761 = vector.shape_cast %760 : vector<1x96xf32> to vector<96xf32>
    %cst_168 = arith.constant dense<0.000000e+00> : vector<4x96xf32>
    %762 = tpu.matmul %751, %755, %cst_168 {dimension_numbers = #tpu.dot_dimension_numbers<[1], [0], [0], [1], [0, 0, 1, 1], [], []>} : vector<4x32xf32>, vector<32x96xf32>, vector<4x96xf32> -> vector<4x96xf32>
    %763 = vector.shape_cast %759 : vector<96xf32> to vector<1x96xf32>
    %764 = vector.broadcast %763 : vector<1x96xf32> to vector<4x96xf32>
    %765 = arith.addf %762, %764 : vector<4x96xf32>
    %cst_169 = arith.constant dense<0.000000e+00> : vector<4x96xf32>
    %766 = tpu.matmul %616, %757, %cst_169 {dimension_numbers = #tpu.dot_dimension_numbers<[1], [0], [0], [1], [0, 0, 1, 1], [], []>} : vector<4x32xf32>, vector<32x96xf32>, vector<4x96xf32> -> vector<4x96xf32>
    %767 = vector.shape_cast %761 : vector<96xf32> to vector<1x96xf32>
    %768 = vector.broadcast %767 : vector<1x96xf32> to vector<4x96xf32>
    %769 = arith.addf %766, %768 : vector<4x96xf32>
    %770 = vector.extract_strided_slice %765 {offsets = [0, 0], sizes = [4, 32], strides = [1, 1]} : vector<4x96xf32> to vector<4x32xf32>
    %771 = vector.extract_strided_slice %769 {offsets = [0, 0], sizes = [4, 32], strides = [1, 1]} : vector<4x96xf32> to vector<4x32xf32>
    %772 = arith.addf %770, %771 : vector<4x32xf32>
    %773 = arith.negf %772 : vector<4x32xf32>
    %774 = math.exp %773 : vector<4x32xf32>
    %cst_170 = arith.constant 1.000000e+00 : f32
    %775 = vector.broadcast %cst_170 : f32 to vector<4x32xf32>
    %776 = arith.addf %775, %774 : vector<4x32xf32>
    %777 = arith.divf %775, %776 : vector<4x32xf32>
    %778 = vector.extract_strided_slice %765 {offsets = [0, 32], sizes = [4, 32], strides = [1, 1]} : vector<4x96xf32> to vector<4x32xf32>
    %779 = vector.extract_strided_slice %769 {offsets = [0, 32], sizes = [4, 32], strides = [1, 1]} : vector<4x96xf32> to vector<4x32xf32>
    %780 = arith.addf %778, %779 : vector<4x32xf32>
    %781 = arith.negf %780 : vector<4x32xf32>
    %782 = math.exp %781 : vector<4x32xf32>
    %cst_171 = arith.constant 1.000000e+00 : f32
    %783 = vector.broadcast %cst_171 : f32 to vector<4x32xf32>
    %784 = arith.addf %783, %782 : vector<4x32xf32>
    %785 = arith.divf %783, %784 : vector<4x32xf32>
    %786 = vector.extract_strided_slice %765 {offsets = [0, 64], sizes = [4, 32], strides = [1, 1]} : vector<4x96xf32> to vector<4x32xf32>
    %787 = vector.extract_strided_slice %769 {offsets = [0, 64], sizes = [4, 32], strides = [1, 1]} : vector<4x96xf32> to vector<4x32xf32>
    %788 = arith.mulf %777, %787 : vector<4x32xf32>
    %789 = arith.addf %786, %788 : vector<4x32xf32>
    %790 = math.tanh %789 : vector<4x32xf32>
    %cst_172 = arith.constant 1.000000e+00 : f32
    %791 = vector.broadcast %cst_172 : f32 to vector<4x32xf32>
    %792 = arith.subf %791, %785 : vector<4x32xf32>
    %793 = arith.mulf %792, %790 : vector<4x32xf32>
    %794 = arith.mulf %785, %616 : vector<4x32xf32>
    %795 = arith.addf %793, %794 : vector<4x32xf32>
    %796 = vector.extract_strided_slice %73 {offsets = [2, 0, 0], sizes = [1, 32, 96], strides = [1, 1, 1]} : vector<4x32x96xf32> to vector<1x32x96xf32>
    %797 = vector.shape_cast %796 : vector<1x32x96xf32> to vector<32x96xf32>
    %798 = vector.extract_strided_slice %73 {offsets = [3, 0, 0], sizes = [1, 32, 96], strides = [1, 1, 1]} : vector<4x32x96xf32> to vector<1x32x96xf32>
    %799 = vector.shape_cast %798 : vector<1x32x96xf32> to vector<32x96xf32>
    %800 = vector.extract_strided_slice %74 {offsets = [2, 0], sizes = [1, 96], strides = [1, 1]} : vector<4x96xf32> to vector<1x96xf32>
    %801 = vector.shape_cast %800 : vector<1x96xf32> to vector<96xf32>
    %802 = vector.extract_strided_slice %74 {offsets = [3, 0], sizes = [1, 96], strides = [1, 1]} : vector<4x96xf32> to vector<1x96xf32>
    %803 = vector.shape_cast %802 : vector<1x96xf32> to vector<96xf32>
    %cst_173 = arith.constant dense<0.000000e+00> : vector<1x96xf32>
    %804 = tpu.matmul %753, %797, %cst_173 {dimension_numbers = #tpu.dot_dimension_numbers<[1], [0], [0], [1], [0, 0, 1, 1], [], []>} : vector<1x32xf32>, vector<32x96xf32>, vector<1x96xf32> -> vector<1x96xf32>
    %805 = vector.shape_cast %801 : vector<96xf32> to vector<1x96xf32>
    %806 = arith.addf %804, %805 : vector<1x96xf32>
    %cst_174 = arith.constant dense<0.000000e+00> : vector<1x96xf32>
    %807 = tpu.matmul %659, %799, %cst_174 {dimension_numbers = #tpu.dot_dimension_numbers<[1], [0], [0], [1], [0, 0, 1, 1], [], []>} : vector<1x32xf32>, vector<32x96xf32>, vector<1x96xf32> -> vector<1x96xf32>
    %808 = vector.shape_cast %803 : vector<96xf32> to vector<1x96xf32>
    %809 = arith.addf %807, %808 : vector<1x96xf32>
    %810 = vector.extract_strided_slice %806 {offsets = [0, 0], sizes = [1, 32], strides = [1, 1]} : vector<1x96xf32> to vector<1x32xf32>
    %811 = vector.extract_strided_slice %809 {offsets = [0, 0], sizes = [1, 32], strides = [1, 1]} : vector<1x96xf32> to vector<1x32xf32>
    %812 = arith.addf %810, %811 : vector<1x32xf32>
    %813 = arith.negf %812 : vector<1x32xf32>
    %814 = math.exp %813 : vector<1x32xf32>
    %cst_175 = arith.constant 1.000000e+00 : f32
    %815 = vector.broadcast %cst_175 : f32 to vector<1x32xf32>
    %816 = arith.addf %815, %814 : vector<1x32xf32>
    %817 = arith.divf %815, %816 : vector<1x32xf32>
    %818 = vector.extract_strided_slice %806 {offsets = [0, 32], sizes = [1, 32], strides = [1, 1]} : vector<1x96xf32> to vector<1x32xf32>
    %819 = vector.extract_strided_slice %809 {offsets = [0, 32], sizes = [1, 32], strides = [1, 1]} : vector<1x96xf32> to vector<1x32xf32>
    %820 = arith.addf %818, %819 : vector<1x32xf32>
    %821 = arith.negf %820 : vector<1x32xf32>
    %822 = math.exp %821 : vector<1x32xf32>
    %cst_176 = arith.constant 1.000000e+00 : f32
    %823 = vector.broadcast %cst_176 : f32 to vector<1x32xf32>
    %824 = arith.addf %823, %822 : vector<1x32xf32>
    %825 = arith.divf %823, %824 : vector<1x32xf32>
    %826 = vector.extract_strided_slice %806 {offsets = [0, 64], sizes = [1, 32], strides = [1, 1]} : vector<1x96xf32> to vector<1x32xf32>
    %827 = vector.extract_strided_slice %809 {offsets = [0, 64], sizes = [1, 32], strides = [1, 1]} : vector<1x96xf32> to vector<1x32xf32>
    %828 = arith.mulf %817, %827 : vector<1x32xf32>
    %829 = arith.addf %826, %828 : vector<1x32xf32>
    %830 = math.tanh %829 : vector<1x32xf32>
    %cst_177 = arith.constant 1.000000e+00 : f32
    %831 = vector.broadcast %cst_177 : f32 to vector<1x32xf32>
    %832 = arith.subf %831, %825 : vector<1x32xf32>
    %833 = arith.mulf %832, %830 : vector<1x32xf32>
    %834 = arith.mulf %825, %659 : vector<1x32xf32>
    %835 = arith.addf %833, %834 : vector<1x32xf32>
    %836 = vector.extract_strided_slice %71 {offsets = [10, 0], sizes = [1, 32], strides = [1, 1]} : vector<20x32xf32> to vector<1x32xf32>
    %837 = vector.shape_cast %836 : vector<1x32xf32> to vector<32xf32>
    %838 = vector.extract_strided_slice %71 {offsets = [11, 0], sizes = [1, 32], strides = [1, 1]} : vector<20x32xf32> to vector<1x32xf32>
    %839 = vector.shape_cast %838 : vector<1x32xf32> to vector<32xf32>
    %cst_178 = arith.constant dense<0.000000e+00> : vector<4xf32>
    %840 = vector.multi_reduction <add>, %795, %cst_178 [1] : vector<4x32xf32> to vector<4xf32>
    %841 = vector.shape_cast %840 : vector<4xf32> to vector<4x1xf32>
    %cst_179 = arith.constant 3.200000e+01 : f32
    %842 = vector.broadcast %cst_179 : f32 to vector<4x1xf32>
    %843 = arith.divf %841, %842 : vector<4x1xf32>
    %844 = vector.broadcast %843 : vector<4x1xf32> to vector<4x32xf32>
    %845 = arith.subf %795, %844 : vector<4x32xf32>
    %846 = arith.mulf %845, %845 : vector<4x32xf32>
    %cst_180 = arith.constant dense<0.000000e+00> : vector<4xf32>
    %847 = vector.multi_reduction <add>, %846, %cst_180 [1] : vector<4x32xf32> to vector<4xf32>
    %848 = vector.shape_cast %847 : vector<4xf32> to vector<4x1xf32>
    %cst_181 = arith.constant 3.200000e+01 : f32
    %849 = vector.broadcast %cst_181 : f32 to vector<4x1xf32>
    %850 = arith.divf %848, %849 : vector<4x1xf32>
    %851 = vector.broadcast %843 : vector<4x1xf32> to vector<4x32xf32>
    %852 = arith.subf %795, %851 : vector<4x32xf32>
    %cst_182 = arith.constant 9.99999974E-6 : f32
    %853 = vector.broadcast %cst_182 : f32 to vector<4x1xf32>
    %854 = arith.addf %850, %853 : vector<4x1xf32>
    %855 = math.rsqrt %854 : vector<4x1xf32>
    %856 = vector.broadcast %855 : vector<4x1xf32> to vector<4x32xf32>
    %857 = arith.mulf %852, %856 : vector<4x32xf32>
    %858 = vector.shape_cast %837 : vector<32xf32> to vector<1x32xf32>
    %859 = vector.broadcast %858 : vector<1x32xf32> to vector<4x32xf32>
    %860 = arith.mulf %857, %859 : vector<4x32xf32>
    %861 = vector.shape_cast %839 : vector<32xf32> to vector<1x32xf32>
    %862 = vector.broadcast %861 : vector<1x32xf32> to vector<4x32xf32>
    %863 = arith.addf %860, %862 : vector<4x32xf32>
    %864 = vector.extract_strided_slice %72 {offsets = [2, 0, 0], sizes = [1, 32, 32], strides = [1, 1, 1]} : vector<6x32x32xf32> to vector<1x32x32xf32>
    %865 = vector.shape_cast %864 : vector<1x32x32xf32> to vector<32x32xf32>
    %866 = vector.extract_strided_slice %71 {offsets = [16, 0], sizes = [1, 32], strides = [1, 1]} : vector<20x32xf32> to vector<1x32xf32>
    %867 = vector.shape_cast %866 : vector<1x32xf32> to vector<32xf32>
    %868 = vector.extract_strided_slice %72 {offsets = [3, 0, 0], sizes = [1, 32, 32], strides = [1, 1, 1]} : vector<6x32x32xf32> to vector<1x32x32xf32>
    %869 = vector.shape_cast %868 : vector<1x32x32xf32> to vector<32x32xf32>
    %870 = vector.extract_strided_slice %71 {offsets = [17, 0], sizes = [1, 32], strides = [1, 1]} : vector<20x32xf32> to vector<1x32xf32>
    %871 = vector.shape_cast %870 : vector<1x32xf32> to vector<32xf32>
    %cst_183 = arith.constant dense<0.000000e+00> : vector<4x32xf32>
    %872 = tpu.matmul %863, %865, %cst_183 {dimension_numbers = #tpu.dot_dimension_numbers<[1], [0], [0], [1], [0, 0, 1, 1], [], []>} : vector<4x32xf32>, vector<32x32xf32>, vector<4x32xf32> -> vector<4x32xf32>
    %873 = vector.shape_cast %867 : vector<32xf32> to vector<1x32xf32>
    %874 = vector.broadcast %873 : vector<1x32xf32> to vector<4x32xf32>
    %875 = arith.addf %872, %874 : vector<4x32xf32>
    %cst_184 = arith.constant 0.000000e+00 : f32
    %876 = vector.broadcast %cst_184 : f32 to vector<4x32xf32>
    %877 = arith.maximumf %875, %876 : vector<4x32xf32>
    %cst_185 = arith.constant dense<0.000000e+00> : vector<4x32xf32>
    %878 = tpu.matmul %877, %869, %cst_185 {dimension_numbers = #tpu.dot_dimension_numbers<[1], [0], [0], [1], [0, 0, 1, 1], [], []>} : vector<4x32xf32>, vector<32x32xf32>, vector<4x32xf32> -> vector<4x32xf32>
    %879 = vector.shape_cast %871 : vector<32xf32> to vector<1x32xf32>
    %880 = vector.broadcast %879 : vector<1x32xf32> to vector<4x32xf32>
    %881 = arith.addf %878, %880 : vector<4x32xf32>
    %882 = arith.addf %795, %881 : vector<4x32xf32>
    %883 = vector.extract_strided_slice %71 {offsets = [12, 0], sizes = [1, 32], strides = [1, 1]} : vector<20x32xf32> to vector<1x32xf32>
    %884 = vector.shape_cast %883 : vector<1x32xf32> to vector<32xf32>
    %885 = vector.extract_strided_slice %71 {offsets = [13, 0], sizes = [1, 32], strides = [1, 1]} : vector<20x32xf32> to vector<1x32xf32>
    %886 = vector.shape_cast %885 : vector<1x32xf32> to vector<32xf32>
    %cst_186 = arith.constant dense<0.000000e+00> : vector<1xf32>
    %887 = vector.multi_reduction <add>, %835, %cst_186 [1] : vector<1x32xf32> to vector<1xf32>
    %888 = vector.shape_cast %887 : vector<1xf32> to vector<1x1xf32>
    %cst_187 = arith.constant 3.200000e+01 : f32
    %889 = vector.broadcast %cst_187 : f32 to vector<1x1xf32>
    %890 = arith.divf %888, %889 : vector<1x1xf32>
    %891 = vector.broadcast %890 : vector<1x1xf32> to vector<1x32xf32>
    %892 = arith.subf %835, %891 : vector<1x32xf32>
    %893 = arith.mulf %892, %892 : vector<1x32xf32>
    %cst_188 = arith.constant dense<0.000000e+00> : vector<1xf32>
    %894 = vector.multi_reduction <add>, %893, %cst_188 [1] : vector<1x32xf32> to vector<1xf32>
    %895 = vector.shape_cast %894 : vector<1xf32> to vector<1x1xf32>
    %cst_189 = arith.constant 3.200000e+01 : f32
    %896 = vector.broadcast %cst_189 : f32 to vector<1x1xf32>
    %897 = arith.divf %895, %896 : vector<1x1xf32>
    %898 = vector.broadcast %890 : vector<1x1xf32> to vector<1x32xf32>
    %899 = arith.subf %835, %898 : vector<1x32xf32>
    %cst_190 = arith.constant 9.99999974E-6 : f32
    %900 = vector.broadcast %cst_190 : f32 to vector<1x1xf32>
    %901 = arith.addf %897, %900 : vector<1x1xf32>
    %902 = math.rsqrt %901 : vector<1x1xf32>
    %903 = vector.broadcast %902 : vector<1x1xf32> to vector<1x32xf32>
    %904 = arith.mulf %899, %903 : vector<1x32xf32>
    %905 = vector.shape_cast %884 : vector<32xf32> to vector<1x32xf32>
    %906 = arith.mulf %904, %905 : vector<1x32xf32>
    %907 = vector.shape_cast %886 : vector<32xf32> to vector<1x32xf32>
    %908 = arith.addf %906, %907 : vector<1x32xf32>
    %909 = vector.extract_strided_slice %72 {offsets = [4, 0, 0], sizes = [1, 32, 32], strides = [1, 1, 1]} : vector<6x32x32xf32> to vector<1x32x32xf32>
    %910 = vector.shape_cast %909 : vector<1x32x32xf32> to vector<32x32xf32>
    %911 = vector.extract_strided_slice %71 {offsets = [18, 0], sizes = [1, 32], strides = [1, 1]} : vector<20x32xf32> to vector<1x32xf32>
    %912 = vector.shape_cast %911 : vector<1x32xf32> to vector<32xf32>
    %913 = vector.extract_strided_slice %72 {offsets = [5, 0, 0], sizes = [1, 32, 32], strides = [1, 1, 1]} : vector<6x32x32xf32> to vector<1x32x32xf32>
    %914 = vector.shape_cast %913 : vector<1x32x32xf32> to vector<32x32xf32>
    %915 = vector.extract_strided_slice %71 {offsets = [19, 0], sizes = [1, 32], strides = [1, 1]} : vector<20x32xf32> to vector<1x32xf32>
    %916 = vector.shape_cast %915 : vector<1x32xf32> to vector<32xf32>
    %cst_191 = arith.constant dense<0.000000e+00> : vector<1x32xf32>
    %917 = tpu.matmul %908, %910, %cst_191 {dimension_numbers = #tpu.dot_dimension_numbers<[1], [0], [0], [1], [0, 0, 1, 1], [], []>} : vector<1x32xf32>, vector<32x32xf32>, vector<1x32xf32> -> vector<1x32xf32>
    %918 = vector.shape_cast %912 : vector<32xf32> to vector<1x32xf32>
    %919 = arith.addf %917, %918 : vector<1x32xf32>
    %cst_192 = arith.constant 0.000000e+00 : f32
    %920 = vector.broadcast %cst_192 : f32 to vector<1x32xf32>
    %921 = arith.maximumf %919, %920 : vector<1x32xf32>
    %cst_193 = arith.constant dense<0.000000e+00> : vector<1x32xf32>
    %922 = tpu.matmul %921, %914, %cst_193 {dimension_numbers = #tpu.dot_dimension_numbers<[1], [0], [0], [1], [0, 0, 1, 1], [], []>} : vector<1x32xf32>, vector<32x32xf32>, vector<1x32xf32> -> vector<1x32xf32>
    %923 = vector.shape_cast %916 : vector<32xf32> to vector<1x32xf32>
    %924 = arith.addf %922, %923 : vector<1x32xf32>
    %925 = arith.addf %835, %924 : vector<1x32xf32>
    %c0_194 = arith.constant 0 : index
    %c0_195 = arith.constant 0 : index
    %c0_196 = arith.constant 0 : index
    %926 = vector.load %arg16[%c0_194, %c0_195, %c0_196] : memref<1x4x32xf32, #tpu.memory_space<vmem>>, vector<1x4x32xf32>
    %927 = vector.shape_cast %926 : vector<1x4x32xf32> to vector<4x32xf32>
    %928 = vector.shape_cast %882 : vector<4x32xf32> to vector<1x4x32xf32>
    tpu.vector_store %arg16[%c0_194, %c0_195, %c0_196], %928 {strides = array<i32>} : memref<1x4x32xf32, #tpu.memory_space<vmem>>, vector<1x4x32xf32>,
    %c0_197 = arith.constant 0 : index
    %c0_198 = arith.constant 0 : index
    %c0_199 = arith.constant 0 : index
    %929 = vector.load %arg17[%c0_197, %c0_198, %c0_199] : memref<1x1x32xf32, #tpu.memory_space<vmem>>, vector<1x1x32xf32>
    %930 = vector.shape_cast %929 : vector<1x1x32xf32> to vector<1x32xf32>
    %931 = vector.shape_cast %925 : vector<1x32xf32> to vector<1x1x32xf32>
    tpu.vector_store %arg17[%c0_197, %c0_198, %c0_199], %931 {strides = array<i32>} : memref<1x1x32xf32, #tpu.memory_space<vmem>>, vector<1x1x32xf32>,
    return
  }
  func.func @transform_0(%arg0: i32) -> (i32, i32, i32) {
    %c0_i32 = arith.constant 0 : i32
    %c0_i32_0 = arith.constant 0 : i32
    %c0_i32_1 = arith.constant 0 : i32
    return %arg0, %c0_i32, %c0_i32_0 : i32, i32, i32
  }
  func.func @transform_1(%arg0: i32) -> (i32, i32, i32) {
    %c0_i32 = arith.constant 0 : i32
    %c0_i32_0 = arith.constant 0 : i32
    %c0_i32_1 = arith.constant 0 : i32
    return %arg0, %c0_i32, %c0_i32_0 : i32, i32, i32
  }
  func.func @transform_2(%arg0: i32) -> (i32, i32, i32) {
    %c0_i32 = arith.constant 0 : i32
    %c0_i32_0 = arith.constant 0 : i32
    %c0_i32_1 = arith.constant 0 : i32
    return %arg0, %c0_i32, %c0_i32_0 : i32, i32, i32
  }
  func.func @transform_3(%arg0: i32) -> (i32, i32) {
    %c0_i32 = arith.constant 0 : i32
    %c0_i32_0 = arith.constant 0 : i32
    %c0_i32_1 = arith.constant 0 : i32
    return %c0_i32, %c0_i32_0 : i32, i32
  }
  func.func @transform_4(%arg0: i32) -> (i32, i32) {
    %c0_i32 = arith.constant 0 : i32
    %c0_i32_0 = arith.constant 0 : i32
    %c0_i32_1 = arith.constant 0 : i32
    return %c0_i32, %c0_i32_0 : i32, i32
  }
  func.func @transform_5(%arg0: i32) -> (i32, i32) {
    %c0_i32 = arith.constant 0 : i32
    %c0_i32_0 = arith.constant 0 : i32
    %c0_i32_1 = arith.constant 0 : i32
    return %c0_i32, %c0_i32_0 : i32, i32
  }
  func.func @transform_6(%arg0: i32) -> (i32, i32) {
    %c0_i32 = arith.constant 0 : i32
    %c0_i32_0 = arith.constant 0 : i32
    %c0_i32_1 = arith.constant 0 : i32
    return %c0_i32, %c0_i32_0 : i32, i32
  }
  func.func @transform_7(%arg0: i32) -> (i32, i32) {
    %c0_i32 = arith.constant 0 : i32
    %c0_i32_0 = arith.constant 0 : i32
    %c0_i32_1 = arith.constant 0 : i32
    return %c0_i32, %c0_i32_0 : i32, i32
  }
  func.func @transform_8(%arg0: i32) -> (i32, i32, i32) {
    %c0_i32 = arith.constant 0 : i32
    %c0_i32_0 = arith.constant 0 : i32
    %c0_i32_1 = arith.constant 0 : i32
    %c0_i32_2 = arith.constant 0 : i32
    return %c0_i32, %c0_i32_0, %c0_i32_1 : i32, i32, i32
  }
  func.func @transform_9(%arg0: i32) -> (i32, i32) {
    %c0_i32 = arith.constant 0 : i32
    %c0_i32_0 = arith.constant 0 : i32
    %c0_i32_1 = arith.constant 0 : i32
    return %c0_i32, %c0_i32_0 : i32, i32
  }
  func.func @transform_10(%arg0: i32) -> (i32, i32) {
    %c0_i32 = arith.constant 0 : i32
    %c0_i32_0 = arith.constant 0 : i32
    %c0_i32_1 = arith.constant 0 : i32
    return %c0_i32, %c0_i32_0 : i32, i32
  }
  func.func @transform_11(%arg0: i32) -> (i32, i32) {
    %c0_i32 = arith.constant 0 : i32
    %c0_i32_0 = arith.constant 0 : i32
    %c0_i32_1 = arith.constant 0 : i32
    return %c0_i32, %c0_i32_0 : i32, i32
  }
  func.func @transform_12(%arg0: i32) -> (i32, i32, i32) {
    %c0_i32 = arith.constant 0 : i32
    %c0_i32_0 = arith.constant 0 : i32
    %c0_i32_1 = arith.constant 0 : i32
    %c0_i32_2 = arith.constant 0 : i32
    return %c0_i32, %c0_i32_0, %c0_i32_1 : i32, i32, i32
  }
  func.func @transform_13(%arg0: i32) -> (i32, i32, i32) {
    %c0_i32 = arith.constant 0 : i32
    %c0_i32_0 = arith.constant 0 : i32
    %c0_i32_1 = arith.constant 0 : i32
    %c0_i32_2 = arith.constant 0 : i32
    return %c0_i32, %c0_i32_0, %c0_i32_1 : i32, i32, i32
  }
  func.func @transform_14(%arg0: i32) -> (i32, i32) {
    %c0_i32 = arith.constant 0 : i32
    %c0_i32_0 = arith.constant 0 : i32
    %c0_i32_1 = arith.constant 0 : i32
    return %c0_i32, %c0_i32_0 : i32, i32
  }
  func.func @transform_15(%arg0: i32) -> (i32, i32, i32) {
    %c0_i32 = arith.constant 0 : i32
    %c0_i32_0 = arith.constant 0 : i32
    %c0_i32_1 = arith.constant 0 : i32
    return %arg0, %c0_i32, %c0_i32_0 : i32, i32, i32
  }
  func.func @transform_16(%arg0: i32) -> (i32, i32, i32) {
    %c0_i32 = arith.constant 0 : i32
    %c0_i32_0 = arith.constant 0 : i32
    %c0_i32_1 = arith.constant 0 : i32
    return %arg0, %c0_i32, %c0_i32_0 : i32, i32, i32
  }
}

</mosaic_0001>

<bundles_post_ra>
// kernel: tpu_custom_call.1
= control target key start
LH: loop header
LB: loop body
LE: loop exit
PB: predicated region body
PF: predicated region fallthrough
CT: control target
= control target key end

     0   :  { %s9198_s0 = inlined_call_operand.vmem [shape: f32[2,64,8], index: 0, kind: input, shape index: {}]   ;;  %s9199_s1 = inlined_call_operand.hbm [shape: f32[2,4,32], index: 1, kind: input, shape index: {}]   ;;  %s9200_s2 = inlined_call_operand.vmem [shape: f32[2,1,32], index: 2, kind: input, shape index: {}]   ;;  %s9201_s3 = inlined_call_operand.hbm [shape: f32[8,16], index: 3, kind: input, shape index: {}]   ;;  %s9202_s4 = inlined_call_operand.hbm [shape: f32[16,32], index: 4, kind: input, shape index: {}]   ;;  %s9203_s5 = inlined_call_operand.vmem [shape: f32[32,32], index: 5, kind: input, shape index: {}]   ;;  %s9204_s6 = inlined_call_operand.hbm [shape: f32[8,32], index: 6, kind: input, shape index: {}]   ;;  %s9205_s7 = inlined_call_operand.hbm [shape: f32[6,32], index: 7, kind: input, shape index: {}]   ;;  %s9206_s8 = inlined_call_operand.hbm [shape: f32[2,32,32], index: 8, kind: input, shape index: {}]   ;;  %s9207_s9 = inlined_call_operand.hbm [shape: f32[32,96], index: 9, kind: input, shape index: {}]   ;;  %s9208_s10 = inlined_call_operand.vmem [shape: f32[1,96], index: 10, kind: input, shape index: {}]   ;;  %s9209_s11 = inlined_call_operand.hbm [shape: f32[20,32], index: 11, kind: input, shape index: {}]   ;;  %s9210_s12 = inlined_call_operand.hbm [shape: f32[6,32,32], index: 12, kind: input, shape index: {}]   ;;  %s9211_s13 = inlined_call_operand.vmem [shape: f32[4,32,96], index: 13, kind: input, shape index: {}]   ;;  %s9212_s14 = inlined_call_operand.vmem [shape: f32[4,96], index: 14, kind: input, shape index: {}]   ;;  %s9213_s15 = inlined_call_operand.hbm [shape: f32[2,4,32], index: 15, kind: output, shape index: {0}]   ;;  %s9214_s16 = inlined_call_operand.hbm [shape: f32[2,1,32], index: 16, kind: output, shape index: {1}]  }
   0x1   :  { %9262 = sst [smem:[#allocation59_spill]] %s9198_s0 }
   0x2   :  { %9263 = sst [smem:[#allocation60_spill]] %s9201_s3 }
   0x3   :  { %9264 = sst [smem:[#allocation61_spill]] %s9202_s4 }
   0x4   :  { %9265 = sst [smem:[#allocation62_spill]] %s9204_s6 }
   0x5   :  { %9266 = sst [smem:[#allocation63_spill]] %s9205_s7 }
   0x6   :  { %9267 = sst [smem:[#allocation64_spill]] %s9206_s8 }
   0x7   :  { %9268 = sst [smem:[#allocation65_spill]] %s9207_s9 }
   0x8   :  { %9269 = sst [smem:[#allocation66_spill]] %s9209_s11 }
   0x9   :  { %9270 = sst [smem:[#allocation67_spill]] %s9210_s12 }
   0xa   :  { %9271 = sst [smem:[#allocation68_spill]] %s9214_s16 }
   0xb   :  { %22 = vsyncpa [#allocation3], 0 }
   0xc   :  { %24 = vsyncpa [#allocation3 + $0x1], 0 }
   0xd   :  { %25 = vsyncpa [#allocation6], 0 }
   0xe   :  { %26 = vsyncpa [#allocation9], 0 }
   0xf   :  { %27 = vsyncpa [#allocation12], 0 }
  0x10   :  { %28 = vsyncpa [#allocation15], 0 }
  0x11   :  { %29 = vsyncpa [#allocation4], 0 }
  0x12   :  { %31 = vsyncpa [#allocation4 + $0x1], 0 }
  0x13   :  { %32 = vsyncpa [#allocation19], 0 }
  0x14   :  { %34 = vsyncpa [#allocation19 + $0x1], 0  ;;  %s7619_s21 = smov 0   ;;  %s7621_s22 = smov 0  }
  0x15   :  { %s7623_s23 = smov 0   ;;  %s7625_s24 = smov 0  }
  0x16 LB: > { %s7516_s25 = smov [#allocation5]   ;;  %s7640_s27 = sadd.s32 4294967295, %s7514_s24   ;;  %s7514_s24 = sphi %s7625_s24, %s9374_s24   ;;  %s7510_s23 = sphi %s7623_s23, %s9373_s23   ;;  %s7506_s22 = sphi %s7621_s22, %s9372_s22   ;;  %s7502_s21 = sphi %s7619_s21, %s9371_s21  }
  0x17   : > { %s440_s26 = sshll.u32 %s7516_s25, 4  ;;  %p5785_p0 = scmp.ge.s32.totalorder %s7514_s24, 1  ;;  %s441_s26 = int_to_ptr.vmem [resolvable:$true] %s440_s26 }
  0x18   : > { %p9215_p1 = scmp.eq.s32.totalorder %s7640_s27, 0  ;;  %p427_p2 = scmp.lt.s32.totalorder %s7514_s24, 3 }
  0x19   : > { %s7517_s29 = smov [#allocation8]   ;;  %s7518_s17 = smov [#allocation11]  }
  0x1a   : > { %p7645_p3 = pnand %p5785_p0, %p427_p2  ;;  %s467_s30 = sshll.u32 %s7517_s29, 4  ;;  %s468_s30 = int_to_ptr.vmem [resolvable:$true] %s467_s30 }
  0x1b   : > { %s488_s18 = sshll.u32 %s7518_s17, 4  ;;  %s7179_s20 = scalar_lea.vmem %s441_s26, 128  ;;  %s7658_s18 = int_to_ptr.vmem [resolvable:$true] %s488_s18 }
  0x1c   : > { %s9272_s28 = scalar_select %p7645_p3, 1, 0 }
  0x1d   : > { %p6915_p5 = pneg %p7645_p3  ;;  %p7180_p8 = scmp.ne.s32.totalorder %s441_s26, %s7179_s20 }
  0x1e   : > { %p7187_p11 = scmp.lt.s32.totalorder %s441_s26, %s441_s26  ;;  %p7188_p12 = scmp.lt.s32.totalorder %s7179_s20, %s7179_s20 }
  0x1f   : > { %p7654_p6 = pnand %p6915_p5, %p9215_p1 }
  0x20   : > { %p7189_p13 = por %p7188_p12, %p7187_p11 }
  0x21   : > { %p7662_p7 = pneg %p7654_p6 }
  0x23   : > { %p7182_p9 = pnand %p7180_p8, %p7662_p7 }
  0x25   : > { %p7183_p10 = pneg %p7182_p9 }
  0x27   : > { %p7190_p0 = pnand %p7189_p13, %p7183_p10 }
  0x29   : > { %7193 = shalt.err (!%p7190_p0)
}
  0x2a   : > { %s9275_s3 = sld [smem:[#allocation60_spill]]  ;;  %s7205_s17 = scalar_lea.vmem %s468_s30, 128 }
  0x2b   : > { %p7206_p2 = scmp.ne.s32.totalorder %s468_s30, %s7205_s17  ;;  %p7213_p1 = scmp.lt.s32.totalorder %s468_s30, %s468_s30 }
  0x2c   : > { %p7214_p8 = scmp.lt.s32.totalorder %s7205_s17, %s7205_s17 }
  0x2d   : > { %p7208_p5 = pnand %p7206_p2, %p7662_p7 }
  0x2e   : > { %p7215_p9 = por %p7214_p8, %p7213_p1 }
  0x2f   : > { %p7209_p4 = pneg %p7208_p5 }
  0x30   : > { %6918 = dma.hbm_to_vmem [thread:$0]  (!%p7654_p6), %s9275_s3, 128, %s441_s26, [#allocation6]  }
  0x31   : > { %p7216_p3 = pnand %p7215_p9, %p7209_p4 }
  0x33   : > { %7219 = shalt.err (!%p7216_p3)
}
  0x34   : > { %s9276_s6 = sld [smem:[#allocation62_spill]]  ;;  %s7231_s26 = scalar_lea.vmem %s7658_s18, 1024 }
  0x35   : > { %p7232_p10 = scmp.ne.s32.totalorder %s7658_s18, %s7231_s26  ;;  %p7239_p13 = scmp.lt.s32.totalorder %s7658_s18, %s7658_s18 }
  0x36   : > { %p7240_p1 = scmp.lt.s32.totalorder %s7231_s26, %s7231_s26 }
  0x37   : > { %p7234_p11 = pnand %p7232_p10, %p7662_p7 }
  0x38   : > { %p7241_p4 = por %p7240_p1, %p7239_p13 }
  0x39   : > { %p7235_p12 = pneg %p7234_p11 }
  0x3a   : > { %6924 = dma.hbm_to_vmem [thread:$0]  (!%p7654_p6), %s9276_s6, 128, %s468_s30, [#allocation9]  }
  0x3b   : > { %p7242_p3 = pnand %p7241_p4, %p7235_p12 }
  0x3d   : > { %7245 = shalt.err (!%p7242_p3)
}
  0x3e   : > { %s7519_s25 = smov 128   ;;  %s7520_s16 = smov 8  }
  0x3f   : > { %s9277_s8 = sld [smem:[#allocation64_spill]]  ;;  %s7521_s17 = smov [#allocation14]  }
  0x40   : > { %s517_s20 = sshll.u32 %s7521_s17, 4  ;;  %s7522_s26 = smov [#allocation7]   ;;  %s518_s20 = int_to_ptr.vmem [resolvable:$true] %s517_s20 }
  0x41   : > { %s450_s3 = sshll.u32 %s7522_s26, 4  ;;  %s7257_s6 = scalar_lea.vmem %s518_s20, 384  ;;  %s451_s3 = int_to_ptr.vmem [resolvable:$true] %s450_s3 }
  0x42   : > { %p7258_p0 = scmp.ne.s32.totalorder %s518_s20, %s7257_s6  ;;  %p7265_p8 = scmp.lt.s32.totalorder %s518_s20, %s518_s20 }
  0x43   : > { %p7266_p9 = scmp.lt.s32.totalorder %s7257_s6, %s7257_s6 }
  0x44   : > { %p7260_p2 = pnand %p7258_p0, %p7662_p7 }
  0x45   : > { %6930 = dma.hbm_to_vmem [thread:$0]  (!%p7654_p6), %s9277_s8, 1024, %s7658_s18, [#allocation12], %s7519_s25, %s7519_s25, %s7520_s16  }
  0x46   : > { %p7261_p5 = pneg %p7260_p2  ;;  %p7267_p10 = por %p7266_p9, %p7265_p8 }
  0x48   : > { %p7268_p11 = pnand %p7267_p10, %p7261_p5 }
  0x4a   : > { %7271 = shalt.err (!%p7268_p11)
}
  0x4b   : > { %s9278_s11 = sld [smem:[#allocation66_spill]]  ;;  %s7283_s29 = scalar_lea.vmem %s451_s3, 256 }
  0x4c   : > { %p7284_p12 = scmp.ne.s32.totalorder %s451_s3, %s7283_s29  ;;  %p7291_p4 = scmp.lt.s32.totalorder %s451_s3, %s451_s3 }
  0x4d   : > { %p7292_p3 = scmp.lt.s32.totalorder %s7283_s29, %s7283_s29 }
  0x4e   : > { %p7286_p13 = pnand %p7284_p12, %p7662_p7 }
  0x4f   : > { %p7293_p0 = por %p7292_p3, %p7291_p4 }
  0x50   : > { %p7287_p1 = pneg %p7286_p13 }
  0x51   : > { %6936 = dma.hbm_to_vmem [thread:$0]  (!%p7654_p6), %s9278_s11, 384, %s518_s20, [#allocation15], %s7519_s25, %s7519_s25, %s7520_s16  }
  0x52   : > { %p7294_p2 = pnand %p7293_p0, %p7287_p1 }
  0x54   : > { %7297 = shalt.err (!%p7294_p2)
}
  0x55   : > { %s9279_s4 = sld [smem:[#allocation61_spill]]  ;;  %s7523_s20 = smov [#allocation10]  }
  0x56   : > { %s478_s26 = sshll.u32 %s7523_s20, 4  ;;  %s7524_s18 = smov [#allocation13]   ;;  %s479_s26 = int_to_ptr.vmem [resolvable:$true] %s478_s26 }
  0x57   : > { %s501_s30 = sshll.u32 %s7524_s18, 4  ;;  %s7309_s8 = scalar_lea.vmem %s479_s26, 128  ;;  %s502_s30 = int_to_ptr.vmem [resolvable:$true] %s501_s30 }
  0x58   : > { %p7310_p5 = scmp.ne.s32.totalorder %s479_s26, %s7309_s8  ;;  %p7317_p10 = scmp.lt.s32.totalorder %s479_s26, %s479_s26 }
  0x59   : > { %p7318_p11 = scmp.lt.s32.totalorder %s7309_s8, %s7309_s8 }
  0x5a   : > { %p7312_p8 = pnand %p7310_p5, %p7662_p7 }
  0x5b   : > { %6921 = dma.hbm_to_vmem [thread:$0]  (!%p7654_p6), %s9279_s4, 256, %s451_s3, [#allocation6], %s7519_s25, %s7519_s25, %s7520_s16  }
  0x5c   : > { %p7313_p9 = pneg %p7312_p8  ;;  %p7319_p12 = por %p7318_p11, %p7317_p10 }
  0x5e   : > { %p7320_p13 = pnand %p7319_p12, %p7313_p9 }
  0x60   : > { %7323 = shalt.err (!%p7320_p13)
}
  0x61   : > { %s9280_s7 = sld [smem:[#allocation63_spill]]  ;;  %s7335_s3 = scalar_lea.vmem %s502_s30, 512 }
  0x62   : > { %p7336_p1 = scmp.ne.s32.totalorder %s502_s30, %s7335_s3  ;;  %p7343_p0 = scmp.lt.s32.totalorder %s502_s30, %s502_s30 }
  0x63   : > { %p7344_p2 = scmp.lt.s32.totalorder %s7335_s3, %s7335_s3 }
  0x64   : > { %p7338_p4 = pnand %p7336_p1, %p7662_p7 }
  0x65   : > { %p7345_p5 = por %p7344_p2, %p7343_p0 }
  0x66   : > { %p7339_p3 = pneg %p7338_p4 }
  0x67   : > { %6927 = dma.hbm_to_vmem [thread:$0]  (!%p7654_p6), %s9280_s7, 128, %s479_s26, [#allocation9]  }
  0x68   : > { %p7346_p8 = pnand %p7345_p5, %p7339_p3 }
  0x6a   : > { %7349 = shalt.err (!%p7346_p8)
}
  0x6b   : > { %s9281_s9 = sld [smem:[#allocation65_spill]]  ;;  %s7525_s20 = smov [#allocation16]  }
  0x6c   : > { %s530_s26 = sshll.u32 %s7525_s20, 4  ;;  %s531_s26 = int_to_ptr.vmem [resolvable:$true] %s530_s26 }
  0x6d   : > { %s7361_s18 = scalar_lea.vmem %s531_s26, 3072  ;;  %p7369_p12 = scmp.lt.s32.totalorder %s531_s26, %s531_s26 }
  0x6e   : > { %p7362_p9 = scmp.ne.s32.totalorder %s531_s26, %s7361_s18  ;;  %p7370_p13 = scmp.lt.s32.totalorder %s7361_s18, %s7361_s18 }
  0x70   : > { %p7364_p10 = pnand %p7362_p9, %p7662_p7  ;;  %p7371_p1 = por %p7370_p13, %p7369_p12 }
  0x71   : > { %6933 = dma.hbm_to_vmem [thread:$0]  (!%p7654_p6), %s9281_s9, 512, %s502_s30, [#allocation12], %s7519_s25, %s7519_s25, %s7520_s16  }
  0x72   : > { %p7365_p11 = pneg %p7364_p10 }
  0x74   : > { %p7372_p4 = pnand %p7371_p1, %p7365_p11 }
  0x76   : > { %7375 = shalt.err (!%p7372_p4)
}
  0x77   : > { %s9282_s12 = sld [smem:[#allocation67_spill]]  ;;  %s5784_s0 = sadd.s32 4294967294, %s7514_s24  }
  0x78   : > { %s7744_s19 = sadd.s32 1, %s7514_s24   ;;  %s73_s3 = sadd.s32 1, %s7510_s23 }
  0x79   : > { %s70_s6 = ssub.s32 %s7514_s24, %s7744_s19  ;;  %p80_p3 = scmp.ne.s32.totalorder %s7510_s23, %s7506_s22 }
  0x7a   : > { %p71_p7 = scmp.eq.s32.totalorder %s70_s6, 0  ;;  %p81_p0 = scmp.eq.s32.totalorder %s7514_s24, 0 }
  0x7b   : > { %p86_p2 = scmp.ne.s32.totalorder %s7506_s22, %s7502_s21  ;;  %p9285_p8 = scmp.eq.s32.totalorder %s7640_s27, 0 }
  0x7c   : > { %s7755_s8 = scalar_select %p71_p7, %s7510_s23, %s73_s3  }
  0x7d   : > { %6939 = dma.hbm_to_vmem [thread:$0]  (!%p7654_p6), %s9282_s12, 3072, %s531_s26, [#allocation15], %s7519_s25, %s7519_s25, %s7520_s16  }
  0x7e   : > { %9283 = sst [smem:[#allocation27_spill]] %s7755_s8  ;;  %p7757_p5 = por %p81_p0, %p80_p3 }
  0x7f   : > { %p7763_p6 = por %p9285_p8, %p86_p2  ;;  %p388_p9 = scmp.eq.s32.totalorder %s7640_s27, 1 }
  0x80   : > { %p394_p10 = scmp.eq.s32.totalorder %s5784_s0, 1  ;;  %p6959_p11 = scmp.lt.s32.totalorder %s7514_s24, 2 }
  0x81   : > { %s9286_s25 = scalar_select %p7763_p6, 1, 0 }
  0x82   : > { %s558_s16 = sand.u32 1, %s7510_s23   ;;  %p7770_p12 = por %p388_p9, %p80_p3 }
  0x83   : > { %p7774_p13 = por %p394_p10, %p86_p2  ;;  %s5795_s18 = sshll.u32 %s558_s16, 2 }
  0x84   : > { %s9287_s20 = scalar_select %p7770_p12, 1, 0 }
  0x85   : > { %s9288_s26 = scalar_select %p7774_p13, 1, 0 }
  0x86   : > { %s5796_s29 = sshll.u32 %s7514_s24, 6  ;;  %s562_s0 = scalar_lea.vmem [#allocation2], %s5795_s18 }
  0x87   : > { %s7782_s3 = scalar_lea.hbm %s9199_s1, %s5796_s29  ;;  %s569_s4 = sshll.u32 %s562_s0, 4  ;;  %s570_s4 = int_to_ptr.vmem [resolvable:$true] %s569_s4 }
  0x88   : > { %p7786_p1 = pnand %p6959_p11, %p7757_p5  ;;  %s559_s9 = scalar_lea.sflag [#allocation3], %s558_s16 }
  0x89   : > { %s7376_s11 = scalar_lea.hbm %s7782_s3, 64  ;;  %s7381_s6 = scalar_lea.hbm %s9199_s1, 128 }
  0x8a   : > { %p7377_p4 = scmp.ne.s32.totalorder %s7782_s3, %s7376_s11  ;;  %p7378_p7 = pneg %p7786_p1 }
  0x8b   : > { %p7382_p2 = scmp.lt.s32.totalorder %s7782_s3, %s9199_s1  ;;  %p7383_p5 = scmp.lt.s32.totalorder %s7381_s6, %s7376_s11 }
  0x8c   : > { %p7379_p3 = pnand %p7378_p7, %p7377_p4 }
  0x8d   : > { %p7384_p8 = por %p7383_p5, %p7382_p2 }
  0x8e   : > { %p7380_p0 = pneg %p7379_p3 }
  0x90   : > { %p7385_p9 = pnand %p7384_p8, %p7380_p0 }
  0x92   : > { %7388 = shalt.err (!%p7385_p9)
}
  0x93   : > { %s7389_s17 = scalar_lea.vmem %s570_s4, 64  ;;  %s7526_s16 = smov [#allocation2]  }
  0x94   : > { %p7390_p10 = scmp.ne.s32.totalorder %s570_s4, %s7389_s17  ;;  %s7394_s12 = sshll.u32 %s7526_s16, 4  ;;  %s7395_s12 = int_to_ptr.vmem [resolvable:$false] %s7394_s12 }
  0x95   : > { %s7396_s8 = scalar_lea.vmem %s7395_s12, 128  ;;  %p7397_p4 = scmp.lt.s32.totalorder %s570_s4, %s7395_s12 }
  0x96   : > { %p7392_p11 = pnand %p7390_p10, %p7378_p7  ;;  %p7398_p3 = scmp.lt.s32.totalorder %s7396_s8, %s7389_s17 }
  0x98   : > { %p7393_p13 = pneg %p7392_p11  ;;  %p7399_p12 = por %p7398_p3, %p7397_p4 }
  0x9a   : > { %p7400_p6 = pnand %p7399_p12, %p7393_p13 }
  0x9c   : > { %7403 = shalt.err (!%p7400_p6)
}
  0x9d   : > { %6943 = dma.hbm_to_vmem [thread:$0]  (!%p7786_p1), %s7782_s3, 64, %s570_s4, %s559_s9  }
  0x9e   : > { %p9290_p0 = scmp.ne.s32.totalorder %s9272_s28, 0 }
  0xa0   : > { %584 = sbr.rel (%p9290_p0) target bundleno = 10755 (0x2a03), region = 80 }
  0xa5   : > { %s7807_s11 = sand.u32 1, %s7506_s22   ;;  %p9291_p6 = scmp.ne.s32.totalorder %s9286_s25, 0 }
  0xa6   : > { %s5798_s29 = sshll.u32 %s7807_s11, 2  ;;  %s587_s12 = scalar_lea.sflag [#allocation3], %s7807_s11 }
  0xa7   : > { %s7813_s8 = scalar_lea.vmem [#allocation2], %s5798_s29 }
  0xa8   : > { %7473 = dma.done.wait (%p9291_p6), %s587_s12, 64  }
  0xa9   : > { %7475 = vsyncadd (%p9291_p6), %s587_s12, 4294967232  ;;  %p9292_p12 = scmp.eq.s32.totalorder %s7640_s27, 0 }
  0xab   : > { %7477 = dma.done.wait (%p9292_p12), [#allocation6], 384   ;;  %p9293_p13 = pmov %p9292_p12 }
  0xac   : > { %p9294_p1 = pmov %p9292_p12 }
  0xad   : > { %7479 = vsyncadd (%p9293_p13), [#allocation6], 4294966912 }
  0xae   : > { %7481 = dma.done.wait (%p9294_p1), [#allocation9], 256   ;;  %p9295_p7 = pmov %p9294_p1 }
  0xaf   : > { %p9296_p2 = pmov %p9294_p1 }
  0xb0   : > { %7483 = vsyncadd (%p9295_p7), [#allocation9], 4294967040 }
  0xb1   : > { %7485 = dma.done.wait (%p9296_p2), [#allocation12], 1536   ;;  %p9297_p5 = pmov %p9294_p1 }
  0xb2   : > { %p9298_p8 = pmov %p9294_p1 }
  0xb3   : > { %7487 = vsyncadd (%p9297_p5), [#allocation12], 4294965760 }
  0xb4   : > { %7489 = dma.done.wait (%p9298_p8), [#allocation15], 3456   ;;  %p9299_p9 = pmov %p9294_p1 }
  0xb5   : > { %p683_p10 = scmp.lt.s32.totalorder %s7640_s27, 1  ;;  %s9300_s25 = sld [smem:[#allocation59_spill]]  ;;  %vm701_vm0 = vcmask 64512   ;;  %v700_v0 = vld [vmem:[#allocation5] sm:$0xff]  ;;  %v832_v6 = vld [vmem:[#allocation7 + $0x8] sm:$0xff]  ;;  %v831_v10 = vld [vmem:[#allocation7] sm:$0xff]  ;;  %v833_v24 = vlaneseq }
  0xb6   : > { %7491 = vsyncadd (%p9299_p9), [#allocation15], 4294963840  ;;  %6250 = vmatprep.subr.mxu0 %v700_v0  ;;  %6875 = vmatprep.subr.mxu1 %v700_v0  ;;  %v978_v11 = vld [vmem:[%s9203_s5 + $0x18] sm:$0xff]  ;;  %v979_v12 = vld [vmem:[#allocation8] sm:$0xff]  ;;  %vm837_vm1 = vcmask 130048   ;;  %vm1085_vm2 = vcmask 261120  }
  0xb7   : > { %s7837_s4 = scalar_select %p683_p10, %s7640_s27, 1  ;;  %6251 = vmatpush3.msra.mxu0 %v700_v0  ;;  %6876 = vmatpush3.msra.mxu1 %v700_v0  ;;  %v977_v15 = vld [vmem:[%s9203_s5 + $0x10] sm:$0xff]  ;;  %v976_v17 = vld [vmem:[%s9203_s5 + $0x8] sm:$0xff]  ;;  %v975_v23 = vld [vmem:[%s9203_s5] sm:$0xff]  ;;  %v7879_v25 = vshrl.u32 %v833_v24, 7  ;;  %vm1999_vm3 = vcmask 256002  }
  0xb8   : > { %6264 = vmatprep.subr.mxu1 %v832_v6  ;;  %6280 = vmatprep.subr.mxu0 %v979_v12  ;;  %v7884_v27 = vld [vmem:[#allocation10] sm:$0x3f]  ;;  %vm1975_vm4 = vcmask 257024   ;;  %vm7528_vm5 = vmmov 0   ;;  %s7530_s30 = smov 64   ;;  %vm2174_vm6 = vcmask 1040384  }
  0xb9   : > { %s5942_s7 = sshll.u32 %s7837_s4, 6  ;;  %v7882_v26 = vsub.s32 0, %v7879_v25  ;;  %v7897_v57 = vsub.s32 1, %v7879_v25  ;;  %vm2274_vm7 = vcmask 520192   ;;  %vm2326_vm8 = vcmask 523264   ;;  %p9366_p4 = scmp.ne.s32.totalorder %s9287_s20, 0 }
  0xba   : > { %vm3064_vm9 = vcmask 253952  }
  0xbb   : > { %s687_s3 = scalar_lea.vmem %s9300_s25, %s5942_s7  ;;  %v836_v28 = vrot.slane %v7884_v27, %v7882_v26  ;;  %v1218_v63 = vrot.slane %v7884_v27, %v7897_v57  ;;  %s690_s25 = scalar_lea.vmem %s9200_s2, %s7837_s4 }
  0xbc   : > { %v691_v1 = vld [vmem:[%s687_s3] sm:$0xff]  ;;  %v692_v2 = vld [vmem:[%s687_s3 + $0x8] sm:$0xff]  ;;  %v693_v3 = vld [vmem:[%s687_s3 + $0x10] sm:$0xff] }
  0xbd   : > { %6252 = vmatprep.mubr.msk.f32.mxu0 %vm701_vm0, %v691_v1  ;;  %v697_v4 = vld [vmem:[%s687_s3 + $0x30] sm:$0xff]  ;;  %v698_v5 = vld [vmem:[%s687_s3 + $0x38] sm:$0xff]  ;;  %v695_v8 = vld [vmem:[%s687_s3 + $0x20] sm:$0xff] }
  0xbe   : > { %6253 = vmatmul.mubr.msk.f32.vlgmr.msra.gmra.mxu0 %vm701_vm0, %v692_v2  ;;  %v694_v7 = vld [vmem:[%s687_s3 + $0x18] sm:$0xff]  ;;  %6261 = vmatprep.mubr.msk.f32.mxu1 %vm701_vm0, %v697_v4  ;;  %v696_v9 = vld [vmem:[%s687_s3 + $0x28] sm:$0xff]  ;;  %s7529_s3 = smov 96  }
  0xbf   : > { %6255 = vmatprep.mubr.msk.f32.mxu0 %vm701_vm0, %v693_v3  ;;  %6262 = vmatmul.mubr.msk.f32.vlgmr.msra.gmra.mxu1 %vm701_vm0, %v698_v5 }
  0xc0   : > { %6265 = vmatpush3.msra.mxu1 %v832_v6  ;;  %6281 = vmatpush3.msra.mxu0 %v979_v12 }
  0xc1   : > { %6266 = vmatprep.subr.mxu1 %v831_v10 }
  0xc2   : > { %6256 = vmatmul.mubr.msk.f32.gmra.mxu0 %vm701_vm0, %v694_v7  ;;  %6267 = vmatpush3.msra.mxu1 %v831_v10 }
  0xc3   : > { %6258 = vmatprep.mubr.msk.f32.mxu0 %vm701_vm0, %v695_v8  ;;  %6294 = vmatprep.subr.mxu1 %v978_v11 }
  0xc6   : > { %6259 = vmatmul.mubr.msk.f32.gmra.mxu0 %vm701_vm0, %v696_v9 }
  0xc7   : > { %6282 = vmatprep.mubr.msk.f32.mxu0 %vm701_vm0, %v691_v1 }
  0xca   : > { %6283 = vmatmul.mubr.msk.f32.vlgmr.msra.gmra.mxu0 %vm701_vm0, %v692_v2 }
  0xcb   : > { %6285 = vmatprep.mubr.msk.f32.mxu0 %vm701_vm0, %v693_v3 }
  0xce   : > { %6286 = vmatmul.mubr.msk.f32.gmra.mxu0 %vm701_vm0, %v694_v7 }
  0xcf   : > { %6288 = vmatprep.mubr.msk.f32.mxu0 %vm701_vm0, %v695_v8 }
  0xd2   : > { %6289 = vmatmul.mubr.msk.f32.gmra.mxu0 %vm701_vm0, %v696_v9 }
  0xd3   : > { %6291 = vmatprep.mubr.msk.f32.mxu0 %vm701_vm0, %v697_v4 }
  0xd6   : > { %6292 = vmatmul.mubr.msk.f32.gmra.mxu0 %vm701_vm0, %v698_v5 }
 0x17e   : > { %v6254_v13 = vpop.f32.mrf.mxu0 }
 0x17f   : > { %v6263_v19 = vpop.f32.mrf.mxu1 }
 0x180   : > { %v792_v14 = vpop.f32.mrf.mxu0 }
 0x181   : > { %6268 = vmatprep.mubr.msk.f32.mxu1 %vm837_vm1, %v792_v14  ;;  %v822_v22 = vpop.f32.mrf.mxu1 }
 0x182   : > { %v6257_v16 = vpop.f32.mrf.mxu0  ;;  %6269 = vmatmul.mubr.msk.f32.vlgmr.msra.gmra.mxu1 %vm837_vm1, %v6254_v13 }
 0x183   : > { %6295 = vmatpush3.msra.mxu1 %v978_v11 }
 0x184   : > { %v802_v18 = vpop.f32.mrf.mxu0  ;;  %6296 = vmatprep.subr.mxu1 %v977_v15 }
 0x185   : > { %6271 = vmatprep.mubr.msk.f32.mxu1 %vm837_vm1, %v802_v18  ;;  %6297 = vmatpush3.msra.mxu1 %v977_v15 }
 0x186   : > { %v6260_v20 = vpop.f32.mrf.mxu0  ;;  %6272 = vmatmul.mubr.msk.f32.gmra.mxu1 %vm837_vm1, %v6257_v16  ;;  %6298 = vmatprep.subr.mxu1 %v976_v17 }
 0x187   : > { %6299 = vmatpush3.msra.mxu1 %v976_v17 }
 0x188   : > { %v812_v21 = vpop.f32.mrf.mxu0  ;;  %6300 = vmatprep.subr.mxu1 %v975_v23 }
 0x189   : > { %6274 = vmatprep.mubr.msk.f32.mxu1 %vm837_vm1, %v812_v21  ;;  %6301 = vmatpush3.msra.mxu1 %v975_v23 }
 0x18a   : > { %6275 = vmatmul.mubr.msk.f32.gmra.mxu1 %vm837_vm1, %v6260_v20  ;;  %v6284_v53 = vpop.f32.mrf.mxu0 }
 0x18b   : > { %6277 = vmatprep.mubr.msk.f32.mxu1 %vm837_vm1, %v822_v22 }
 0x18c   : > { %v1046_v54 = vpop.f32.mrf.mxu0 }
 0x18e   : > { %6278 = vmatmul.mubr.msk.f32.gmra.mxu1 %vm837_vm1, %v6263_v19  ;;  %v6287_v55 = vpop.f32.mrf.mxu0 }
 0x190   : > { %v1056_v56 = vpop.f32.mrf.mxu0 }
 0x192   : > { %v6290_v59 = vpop.f32.mrf.mxu0 }
 0x194   : > { %v1066_v1 = vpop.f32.mrf.mxu0 }
 0x196   : > { %v6293_v9 = vpop.f32.mrf.mxu0 }
 0x198   : > { %v1076_v18 = vpop.f32.mrf.mxu0 }
 0x242   : > { %v6270_v29 = vpop.f32.mrf.mxu1 }
 0x243   : > { %v934_v30 = vadd.f32 %v6270_v29, %v836_v28 }
 0x244   : > { %v928_v31 = vpop.f32.mrf.mxu1 }
 0x245   : > { %v929_v32 = vadd.f32 %v928_v31, %v836_v28  ;;  %v968_v35 = vmax.f32 %v934_v30, 0.0 }
 0x246   : > { %v6273_v33 = vpop.f32.mrf.mxu1 }
 0x247   : > { %v967_v34 = vmax.f32 %v929_v32, 0.0  ;;  %v944_v36 = vadd.f32 %v6273_v33, %v836_v28 }
 0x248   : > { %v938_v37 = vpop.f32.mrf.mxu1 }
 0x249   : > { %v939_v38 = vadd.f32 %v938_v37, %v836_v28  ;;  %6302 = vmatprep.mubr.msk.f32.mxu1 %vm1085_vm2, %v967_v34  ;;  %v970_v41 = vmax.f32 %v944_v36, 0.0 }
 0x24a   : > { %v6276_v39 = vpop.f32.mrf.mxu1  ;;  %6303 = vmatmul.mubr.msk.f32.vlgmr.msra.gmra.mxu1 %vm1085_vm2, %v968_v35 }
 0x24b   : > { %v969_v40 = vmax.f32 %v939_v38, 0.0  ;;  %v954_v42 = vadd.f32 %v6276_v39, %v836_v28 }
 0x24c   : > { %v948_v43 = vpop.f32.mrf.mxu1 }
 0x24d   : > { %v949_v44 = vadd.f32 %v948_v43, %v836_v28  ;;  %6305 = vmatprep.mubr.msk.f32.mxu1 %vm1085_vm2, %v969_v40  ;;  %v972_v47 = vmax.f32 %v954_v42, 0.0 }
 0x24e   : > { %v6279_v45 = vpop.f32.mrf.mxu1  ;;  %6306 = vmatmul.mubr.msk.f32.gmra.mxu1 %vm1085_vm2, %v970_v41 }
 0x24f   : > { %v971_v46 = vmax.f32 %v949_v44, 0.0  ;;  %v964_v48 = vadd.f32 %v6279_v45, %v836_v28 }
 0x250   : > { %v958_v49 = vpop.f32.mrf.mxu1 }
 0x251   : > { %v959_v50 = vadd.f32 %v958_v49, %v836_v28  ;;  %6308 = vmatprep.mubr.msk.f32.mxu1 %vm1085_vm2, %v971_v46  ;;  %v974_v52 = vmax.f32 %v964_v48, 0.0 }
 0x252   : > { %6309 = vmatmul.mubr.msk.f32.gmra.mxu1 %vm1085_vm2, %v972_v47 }
 0x253   : > { %v973_v51 = vmax.f32 %v959_v50, 0.0 }
 0x255   : > { %6311 = vmatprep.mubr.msk.f32.mxu1 %vm1085_vm2, %v973_v51 }
 0x256   : > { %6312 = vmatmul.mubr.msk.f32.gmra.mxu1 %vm1085_vm2, %v974_v52 }
 0x30a   : > { %v6304_v58 = vpop.f32.mrf.mxu1 }
 0x30b   : > { %v1182_v61 = vadd.f32 %v6304_v58, %v6284_v53 }
 0x30c   : > { %v1176_v60 = vpop.f32.mrf.mxu1 }
 0x30d   : > { %v1177_v62 = vadd.f32 %v1176_v60, %v1046_v54  ;;  %v1220_v7 = vadd.f32 %v1218_v63, %v1182_v61 }
 0x30e   : > { %v6307_v0 = vpop.f32.mrf.mxu1 }
 0x30f   : > { %v1219_v2 = vadd.f32 %v1218_v63, %v1177_v62  ;;  %v1192_v3 = vadd.f32 %v6307_v0, %v6287_v55  ;;  %v1230_v16 = vsel %vm1085_vm2, %v1220_v7, 0.0 }
 0x310   : > { %v1186_v4 = vpop.f32.mrf.mxu1 }
 0x311   : > { %v1187_v5 = vadd.f32 %v1186_v4, %v1056_v56  ;;  %v1227_v6 = vsel %vm1085_vm2, %v1219_v2, 0.0  ;;  %v1222_v12 = vadd.f32 %v1218_v63, %v1192_v3 }
 0x312   : > { %1228 = vadd.xlane.f32.xlu0 %v1227_v6  ;;  %v6310_v8 = vpop.f32.mrf.mxu1 }
 0x313   : > { %v1221_v10 = vadd.f32 %v1218_v63, %v1187_v5  ;;  %v1202_v13 = vadd.f32 %v6310_v8, %v6290_v59  ;;  %v1236_v21 = vsel %vm1085_vm2, %v1222_v12, 0.0 }
 0x314   : > { %v1196_v11 = vpop.f32.mrf.mxu1 }
 0x315   : > { %v1197_v14 = vadd.f32 %v1196_v11, %v1066_v1  ;;  %v1233_v15 = vsel %vm1085_vm2, %v1221_v10, 0.0  ;;  %v1224_v28 = vadd.f32 %v1218_v63, %v1202_v13  ;;  %v1359_v11 = vld [vmem:[#allocation11 + $0x18] sm:$0xff]  ;;  %v1357_v13 = vld [vmem:[#allocation11 + $0x8] sm:$0xff] }
 0x316   : > { %1234 = vadd.xlane.f32.xlu1 %v1233_v15  ;;  %1231 = vadd.xlane.f32.xlu0 %v1230_v16  ;;  %v6313_v17 = vpop.f32.mrf.mxu1  ;;  %v1363_v15 = vld [vmem:[#allocation11 + $0x38] sm:$0xff]  ;;  %v1362_v16 = vld [vmem:[#allocation11 + $0x30] sm:$0xff] }
 0x317   : > { %v1223_v19 = vadd.f32 %v1218_v63, %v1197_v14  ;;  %v1212_v22 = vadd.f32 %v6313_v17, %v6293_v9  ;;  %v1242_v30 = vsel %vm1085_vm2, %v1224_v28, 0.0  ;;  %6314 = vmatprep.subr.mxu0 %v1359_v11  ;;  %v1356_v14 = vld [vmem:[#allocation11] sm:$0xff]  ;;  %6334 = vmatprep.subr.mxu1 %v1363_v15  ;;  %v1361_v17 = vld [vmem:[#allocation11 + $0x28] sm:$0xff] }
 0x318   : > { %v1206_v20 = vpop.f32.mrf.mxu1  ;;  %6315 = vmatpush3.msra.mxu0 %v1359_v11  ;;  %6335 = vmatpush3.msra.mxu1 %v1363_v15 }
 0x319   : > { %v1207_v23 = vadd.f32 %v1206_v20, %v1076_v18  ;;  %v1239_v24 = vsel %vm1085_vm2, %v1223_v19, 0.0  ;;  %v1226_v32 = vadd.f32 %v1218_v63, %v1212_v22  ;;  %6336 = vmatprep.subr.mxu1 %v1362_v16 }
 0x31a   : > { %1237 = vadd.xlane.f32.xlu1 %v1236_v21  ;;  %1240 = vadd.xlane.f32.xlu0 %v1239_v24 }
 0x31b   : > { %v1225_v29 = vadd.f32 %v1218_v63, %v1207_v23  ;;  %v1248_v33 = vsel %vm1085_vm2, %v1226_v32, 0.0  ;;  %6337 = vmatpush3.msra.mxu1 %v1362_v16 }
 0x31c   : > { %6338 = vmatprep.subr.mxu1 %v1361_v17 }
 0x31d   : > { %v1245_v31 = vsel %vm1085_vm2, %v1225_v29, 0.0  ;;  %6339 = vmatpush3.msra.mxu1 %v1361_v17 }
 0x31e   : > { %1243 = vadd.xlane.f32.xlu1 %v1242_v30  ;;  %1246 = vadd.xlane.f32.xlu0 %v1245_v31 }
 0x322   : > { %1249 = vadd.xlane.f32.xlu1 %v1248_v33 }
 0x39b   : > { %v1229_v34 = vpop.xlane.xlu0 %1228 }
 0x39c   : > { %v1252_v35 = vmul.f32 0.03125, %v1229_v34 }
 0x39e   : > { %v7909_v36 = vsub.f32 %v1219_v2, %v1252_v35 }
 0x39f   : > { %v1235_v37 = vpop.xlane.xlu1 %1234  ;;  %v1232_v38 = vpop.xlane.xlu0 %1231 }
 0x3a0   : > { %v1254_v39 = vmul.f32 0.03125, %v1235_v37  ;;  %v1253_v40 = vmul.f32 0.03125, %v1232_v38  ;;  %v1268_v41 = vmul.f32 %v7909_v36, %v7909_v36 }
 0x3a2   : > { %v7913_v42 = vsub.f32 %v1221_v10, %v1254_v39  ;;  %v7915_v43 = vsub.f32 %v1220_v7, %v1253_v40  ;;  %v1276_v44 = vsel %vm1085_vm2, %v1268_v41, 0.0  ;;  %v1334_v39 = vsub.s32 4, %v7879_v25 }
 0x3a3   : > { %v1238_v45 = vpop.xlane.xlu1 %1237  ;;  %1277 = vadd.xlane.f32.xlu0 %v1276_v44  ;;  %v1241_v46 = vpop.xlane.xlu0 %1240 }
 0x3a4   : > { %v1255_v47 = vmul.f32 0.03125, %v1238_v45  ;;  %v1256_v48 = vmul.f32 0.03125, %v1241_v46  ;;  %v1269_v49 = vmul.f32 %v7915_v43, %v7915_v43  ;;  %v1270_v50 = vmul.f32 %v7913_v42, %v7913_v42 }
 0x3a5   : > { %v1346_v46 = vsub.s32 5, %v7879_v25 }
 0x3a6   : > { %v7922_v51 = vsub.f32 %v1222_v12, %v1255_v47  ;;  %v7924_v52 = vsub.f32 %v1223_v19, %v1256_v48  ;;  %v1279_v53 = vsel %vm1085_vm2, %v1269_v49, 0.0  ;;  %v1282_v54 = vsel %vm1085_vm2, %v1270_v50, 0.0  ;;  %v1358_v12 = vld [vmem:[#allocation11 + $0x10] sm:$0xff] }
 0x3a7   : > { %v1244_v55 = vpop.xlane.xlu1 %1243  ;;  %1280 = vadd.xlane.f32.xlu1 %v1279_v53  ;;  %1283 = vadd.xlane.f32.xlu0 %v1282_v54  ;;  %v1247_v56 = vpop.xlane.xlu0 %1246  ;;  %v1335_v48 = vrot.slane %v7884_v27, %v1334_v39 }
 0x3a8   : > { %v1257_v58 = vmul.f32 0.03125, %v1244_v55  ;;  %v1258_v59 = vmul.f32 0.03125, %v1247_v56  ;;  %v1271_v60 = vmul.f32 %v7922_v51, %v7922_v51  ;;  %v1272_v61 = vmul.f32 %v7924_v52, %v7924_v52  ;;  %6316 = vmatprep.subr.mxu0 %v1358_v12 }
 0x3a9   : > { %6317 = vmatpush3.msra.mxu0 %v1358_v12  ;;  %v1347_v55 = vrot.slane %v7884_v27, %v1346_v46 }
 0x3aa   : > { %v7932_v62 = vsub.f32 %v1224_v28, %v1257_v58  ;;  %v7934_v63 = vsub.f32 %v1225_v29, %v1258_v59  ;;  %v1285_v0 = vsel %vm1085_vm2, %v1271_v60, 0.0  ;;  %v1288_v1 = vsel %vm1085_vm2, %v1272_v61, 0.0  ;;  %6318 = vmatprep.subr.mxu0 %v1357_v13 }
 0x3ab   : > { %1286 = vadd.xlane.f32.xlu1 %v1285_v0  ;;  %v1250_v2 = vpop.xlane.xlu1 %1249  ;;  %1289 = vadd.xlane.f32.xlu0 %v1288_v1 }
 0x3ac   : > { %v1259_v3 = vmul.f32 0.03125, %v1250_v2  ;;  %v1273_v4 = vmul.f32 %v7932_v62, %v7932_v62  ;;  %v1274_v5 = vmul.f32 %v7934_v63, %v7934_v63  ;;  %6319 = vmatpush3.msra.mxu0 %v1357_v13 }
 0x3ad   : > { %6320 = vmatprep.subr.mxu0 %v1356_v14 }
 0x3ae   : > { %v7942_v6 = vsub.f32 %v1226_v32, %v1259_v3  ;;  %v1291_v7 = vsel %vm1085_vm2, %v1273_v4, 0.0  ;;  %v1294_v8 = vsel %vm1085_vm2, %v1274_v5, 0.0  ;;  %6321 = vmatpush3.msra.mxu0 %v1356_v14 }
 0x3af   : > { %1292 = vadd.xlane.f32.xlu1 %v1291_v7  ;;  %1295 = vadd.xlane.f32.xlu0 %v1294_v8 }
 0x3b0   : > { %v1275_v9 = vmul.f32 %v7942_v6, %v7942_v6 }
 0x3b2   : > { %v1297_v10 = vsel %vm1085_vm2, %v1275_v9, 0.0 }
 0x3b3   : > { %1298 = vadd.xlane.f32.xlu1 %v1297_v10 }
 0x42c   : > { %v1278_v18 = vpop.xlane.xlu0 %1277 }
 0x42d   : > { %v1300_v19 = vmul.f32 0.03125, %v1278_v18 }
 0x42f   : > { %v1308_v20 = vadd.f32 1e-05, %v1300_v19 }
 0x430   : > { %v1281_v21 = vpop.xlane.xlu1 %1280  ;;  %v1284_v22 = vpop.xlane.xlu0 %1283 }
 0x431   : > { %7016 = vrsqrt.f32 %v1308_v20  ;;  %v1301_v23 = vmul.f32 0.03125, %v1281_v21  ;;  %v1302_v24 = vmul.f32 0.03125, %v1284_v22  ;;  %v9220_v20 = vsub.s32 2, %v7879_v25 }
 0x433   : > { %v1309_v28 = vadd.f32 1e-05, %v1301_v23  ;;  %v1310_v29 = vadd.f32 1e-05, %v1302_v24  ;;  %v1367_v21 = vrot.slane %v7884_v27, %v9220_v20 }
 0x434   : > { %v1287_v30 = vpop.xlane.xlu1 %1286  ;;  %v1290_v31 = vpop.xlane.xlu0 %1289 }
 0x435   : > { %7018 = vrsqrt.f32 %v1309_v28  ;;  %v1303_v32 = vmul.f32 0.03125, %v1287_v30  ;;  %v1304_v33 = vmul.f32 0.03125, %v1290_v31 }
 0x436   : > { %7020 = vrsqrt.f32 %v1310_v29 }
 0x437   : > { %v1311_v34 = vadd.f32 1e-05, %v1303_v32  ;;  %v1312_v35 = vadd.f32 1e-05, %v1304_v33 }
 0x438   : > { %v1293_v37 = vpop.xlane.xlu1 %1292  ;;  %v1296_v38 = vpop.xlane.xlu0 %1295 }
 0x439   : > { %7022 = vrsqrt.f32 %v1311_v34  ;;  %v1305_v40 = vmul.f32 0.03125, %v1293_v37  ;;  %v1306_v41 = vmul.f32 0.03125, %v1296_v38 }
 0x43a   : > { %7024 = vrsqrt.f32 %v1312_v35 }
 0x43b   : > { %v1313_v44 = vadd.f32 1e-05, %v1305_v40  ;;  %v1314_v45 = vadd.f32 1e-05, %v1306_v41 }
 0x43c   : > { %v1299_v47 = vpop.xlane.xlu1 %1298 }
 0x43d   : > { %7026 = vrsqrt.f32 %v1313_v44  ;;  %v1307_v49 = vmul.f32 0.03125, %v1299_v47 }
 0x43e   : > { %v7017_v50 = vpop.eup %7016  ;;  %7028 = vrsqrt.f32 %v1314_v45 }
 0x43f   : > { %v1315_v53 = vadd.f32 1e-05, %v1307_v49  ;;  %v1324_v54 = vmul.f32 %v7017_v50, %v7909_v36 }
 0x441   : > { %7030 = vrsqrt.f32 %v1315_v53  ;;  %v1336_v56 = vmul.f32 %v1335_v48, %v1324_v54 }
 0x442   : > { %v7019_v58 = vpop.eup %7018 }
 0x443   : > { %v7021_v59 = vpop.eup %7020  ;;  %v1325_v60 = vmul.f32 %v7019_v58, %v7915_v43  ;;  %v1348_v61 = vadd.f32 %v1347_v55, %v1336_v56  ;;  %v9221_v58 = vsub.s32 3, %v7879_v25 }
 0x444   : > { %v1326_v0 = vmul.f32 %v7021_v59, %v7913_v42 }
 0x445   : > { %v1337_v1 = vmul.f32 %v1335_v48, %v1325_v60  ;;  %6322 = vmatprep.mubr.msk.f32.mxu0 %vm1085_vm2, %v1348_v61  ;;  %v1508_v59 = vrot.slane %v7884_v27, %v9221_v58  ;;  %v1681_v58 = vld [vmem:[%s9212_s14] sm:$0xf] }
 0x446   : > { %v7023_v2 = vpop.eup %7022  ;;  %v1338_v3 = vmul.f32 %v1335_v48, %v1326_v0 }
 0x447   : > { %v7025_v4 = vpop.eup %7024  ;;  %v1349_v36 = vadd.f32 %v1347_v55, %v1337_v1  ;;  %v1327_v5 = vmul.f32 %v7023_v2, %v7922_v51  ;;  %v5867_v2 = vld [vmem:[%s690_s25] ss:$0 sm:$0xff]  ;;  %s676_s25 = scalar_lea.vmem [#allocation17], %s5798_s29 }
 0x448   : > { %v1350_v7 = vadd.f32 %v1347_v55, %v1338_v3  ;;  %v1328_v8 = vmul.f32 %v7025_v4, %v7924_v52  ;;  %s5576_s4 = sshll.u32 %s676_s25, 4  ;;  %s5577_s4 = int_to_ptr.vmem [resolvable:$true] %s5576_s4 }
 0x449   : > { %6323 = vmatmul.mubr.msk.f32.vlgmr.msra.gmra.mxu0 %vm1085_vm2, %v1349_v36  ;;  %v1339_v9 = vmul.f32 %v1335_v48, %v1327_v5  ;;  %s7404_s17 = scalar_lea.vmem %s5577_s4, 64 }
 0x44a   : > { %v7027_v10 = vpop.eup %7026  ;;  %6325 = vmatprep.mubr.msk.f32.mxu0 %vm1085_vm2, %v1350_v7  ;;  %v1340_v43 = vmul.f32 %v1335_v48, %v1328_v8  ;;  %p7405_p11 = scmp.ne.s32.totalorder %s5577_s4, %s7404_s17 }
 0x44b   : > { %v7029_v42 = vpop.eup %7028  ;;  %v1351_v11 = vadd.f32 %v1347_v55, %v1339_v9  ;;  %v1329_v12 = vmul.f32 %v7027_v10, %v7932_v62 }
 0x44c   : > { %v1352_v13 = vadd.f32 %v1347_v55, %v1340_v43  ;;  %v1330_v14 = vmul.f32 %v7029_v42, %v7934_v63  ;;  %v1360_v63 = vld [vmem:[#allocation11 + $0x20] sm:$0xff]  ;;  %p7406_p3 = pnand %p7405_p11, %p9366_p4 }
 0x44d   : > { %6326 = vmatmul.mubr.msk.f32.gmra.mxu0 %vm1085_vm2, %v1351_v11  ;;  %v1341_v51 = vmul.f32 %v1335_v48, %v1329_v12  ;;  %6340 = vmatprep.subr.mxu1 %v1360_v63  ;;  %v1952_v11 = vld [vmem:[%s7813_s8] sm:$0xf]  ;;  %s7531_s8 = smov 32  }
 0x44e   : > { %v7031_v15 = vpop.eup %7030  ;;  %6328 = vmatprep.mubr.msk.f32.mxu0 %vm1085_vm2, %v1352_v13  ;;  %v1342_v52 = vmul.f32 %v1335_v48, %v1330_v14  ;;  %6341 = vmatpush3.msra.mxu1 %v1360_v63  ;;  %p7407_p0 = pneg %p7406_p3 }
 0x44f   : > { %v1353_v16 = vadd.f32 %v1347_v55, %v1341_v51  ;;  %v1331_v17 = vmul.f32 %v7031_v15, %v7942_v6 }
 0x450   : > { %v1354_v18 = vadd.f32 %v1347_v55, %v1342_v52 }
 0x451   : > { %6329 = vmatmul.mubr.msk.f32.gmra.mxu0 %vm1085_vm2, %v1353_v16  ;;  %v1343_v19 = vmul.f32 %v1335_v48, %v1331_v17 }
 0x452   : > { %6331 = vmatprep.mubr.msk.f32.mxu0 %vm1085_vm2, %v1354_v18 }
 0x453   : > { %v1355_v62 = vadd.f32 %v1347_v55, %v1343_v19  ;;  %v7985_v55 = vld [vmem:[#allocation14] sm:$0xff] }
 0x454   : > { %v1950_v56 = vmul.f32 1.442695, %v7985_v55  ;;  %v1961_v17 = vrot.slane %v7985_v55, %v7882_v26 }
 0x455   : > { %6332 = vmatmul.mubr.msk.f32.gmra.mxu0 %vm1085_vm2, %v1355_v62 }
 0x456   : > { %7032 = vpow2.f32 %v1950_v56 }
 0x463   : > { %v7033_v0 = vpop.eup %7032 }
 0x464   : > { %v1970_v8 = vmul.f32 %v7033_v0, %v5867_v2  ;;  %v1956_v43 = vrot.slane %v7033_v0, %v7897_v57 }
 0x466   : > { %v1972_v14 = vrot.slane %v1970_v8, 1  ;;  %v1957_v16 = vmul.f32 %v1956_v43, %v1952_v11 }
 0x468   : > { %v8007_v63 = vadd.f32 %v1972_v14, %v7985_v55 }
 0x509   : > { %v6324_v22 = vpop.f32.mrf.mxu0 }
 0x50a   : > { %v1464_v6 = vadd.f32 %v6324_v22, %v1367_v21 }
 0x50b   : > { %v1458_v23 = vpop.f32.mrf.mxu0 }
 0x50c   : > { %v1459_v24 = vadd.f32 %v1458_v23, %v1367_v21  ;;  %v1498_v30 = vmax.f32 %v1464_v6, 0.0  ;;  %v8010_v23 = vadd.f32 %v1961_v17, %v1957_v16 }
 0x50d   : > { %v6327_v28 = vpop.f32.mrf.mxu0 }
 0x50e   : > { %v1497_v29 = vmax.f32 %v1459_v24, 0.0  ;;  %v1474_v31 = vadd.f32 %v6327_v28, %v1367_v21  ;;  %v2000_v28 = vsel %vm1999_vm3, %v8007_v63, 0.0 }
 0x50f   : > { %v1468_v32 = vpop.f32.mrf.mxu0 }
 0x510   : > { %v1469_v33 = vadd.f32 %v1468_v32, %v1367_v21  ;;  %6342 = vmatprep.mubr.msk.f32.mxu1 %vm1085_vm2, %v1497_v29  ;;  %v1500_v37 = vmax.f32 %v1474_v31, 0.0  ;;  %v1976_v29 = vsel %vm1975_vm4, %v8010_v23, 0.0 }
 0x511   : > { %v6330_v34 = vpop.f32.mrf.mxu0  ;;  %6343 = vmatmul.mubr.msk.f32.vlgmr.msra.gmra.mxu1 %vm1085_vm2, %v1498_v30 }
 0x512   : > { %v1499_v35 = vmax.f32 %v1469_v33, 0.0  ;;  %v1484_v38 = vadd.f32 %v6330_v34, %v1367_v21 }
 0x513   : > { %v1478_v40 = vpop.f32.mrf.mxu0 }
 0x514   : > { %v1479_v41 = vadd.f32 %v1478_v40, %v1367_v21  ;;  %6345 = vmatprep.mubr.msk.f32.mxu1 %vm1085_vm2, %v1499_v35  ;;  %v1502_v47 = vmax.f32 %v1484_v38, 0.0 }
 0x515   : > { %v6333_v44 = vpop.f32.mrf.mxu0  ;;  %6346 = vmatmul.mubr.msk.f32.gmra.mxu1 %vm1085_vm2, %v1500_v37 }
 0x516   : > { %v1501_v45 = vmax.f32 %v1479_v41, 0.0  ;;  %v1494_v48 = vadd.f32 %v6333_v44, %v1367_v21 }
 0x517   : > { %v1488_v49 = vpop.f32.mrf.mxu0 }
 0x518   : > { %v1489_v50 = vadd.f32 %v1488_v49, %v1367_v21  ;;  %6348 = vmatprep.mubr.msk.f32.mxu1 %vm1085_vm2, %v1501_v45  ;;  %v1504_v54 = vmax.f32 %v1494_v48, 0.0 }
 0x519   : > { %6349 = vmatmul.mubr.msk.f32.gmra.mxu1 %vm1085_vm2, %v1502_v47 }
 0x51a   : > { %v1503_v53 = vmax.f32 %v1489_v50, 0.0 }
 0x51c   : > { %6351 = vmatprep.mubr.msk.f32.mxu1 %vm1085_vm2, %v1503_v53 }
 0x51d   : > { %6352 = vmatmul.mubr.msk.f32.gmra.mxu1 %vm1085_vm2, %v1504_v54 }
 0x5d1   : > { %v6344_v60 = vpop.f32.mrf.mxu1 }
 0x5d2   : > { %v1605_v61 = vadd.f32 %v6344_v60, %v1508_v59 }
 0x5d3   : > { %v1599_v1 = vpop.f32.mrf.mxu1 }
 0x5d4   : > { %v1600_v3 = vadd.f32 %v1599_v1, %v1508_v59  ;;  %v1685_v4 = vsel %vm1085_vm2, %v1605_v61, 0.0 }
 0x5d5   : > { %1686 = vadd.xlane.f32.xlu1 %v1685_v4  ;;  %v6347_v36 = vpop.f32.mrf.mxu1 }
 0x5d6   : > { %v1615_v5 = vadd.f32 %v6347_v36, %v1508_v59  ;;  %v1682_v7 = vsel %vm1085_vm2, %v1600_v3, 0.0 }
 0x5d7   : > { %1683 = vadd.xlane.f32.xlu0 %v1682_v7  ;;  %v1609_v27 = vpop.f32.mrf.mxu1 }
 0x5d8   : > { %v1610_v9 = vadd.f32 %v1609_v27, %v1508_v59  ;;  %v1691_v10 = vsel %vm1085_vm2, %v1615_v5, 0.0 }
 0x5d9   : > { %1692 = vadd.xlane.f32.xlu1 %v1691_v10  ;;  %v6350_v42 = vpop.f32.mrf.mxu1 }
 0x5da   : > { %v1625_v12 = vadd.f32 %v6350_v42, %v1508_v59  ;;  %v1688_v13 = vsel %vm1085_vm2, %v1610_v9, 0.0 }
 0x5db   : > { %1689 = vadd.xlane.f32.xlu0 %v1688_v13  ;;  %v1619_v51 = vpop.f32.mrf.mxu1 }
 0x5dc   : > { %v1620_v15 = vadd.f32 %v1619_v51, %v1508_v59  ;;  %v1697_v52 = vsel %vm1085_vm2, %v1625_v12, 0.0 }
 0x5dd   : > { %1698 = vadd.xlane.f32.xlu1 %v1697_v52  ;;  %v6353_v18 = vpop.f32.mrf.mxu1 }
 0x5de   : > { %v1635_v19 = vadd.f32 %v6353_v18, %v1508_v59  ;;  %v1694_v62 = vsel %vm1085_vm2, %v1620_v15, 0.0 }
 0x5df   : > { %1695 = vadd.xlane.f32.xlu0 %v1694_v62  ;;  %v1629_v21 = vpop.f32.mrf.mxu1 }
 0x5e0   : > { %v1630_v22 = vadd.f32 %v1629_v21, %v1508_v59  ;;  %v1703_v6 = vsel %vm1085_vm2, %v1635_v19, 0.0 }
 0x5e1   : > { %1704 = vadd.xlane.f32.xlu1 %v1703_v6  ;;  %v1813_v6 = vld [vmem:[#allocation13 + $0x18] sm:$0xff] }
 0x5e2   : > { %v1700_v24 = vsel %vm1085_vm2, %v1630_v22, 0.0  ;;  %6354 = vmatprep.subr.mxu0 %v1813_v6 }
 0x5e3   : > { %1701 = vadd.xlane.f32.xlu0 %v1700_v24  ;;  %v1812_v24 = vld [vmem:[#allocation13 + $0x10] sm:$0xff]  ;;  %6355 = vmatpush3.msra.mxu0 %v1813_v6 }
 0x5e4   : > { %6356 = vmatprep.subr.mxu0 %v1812_v24 }
 0x5e5   : > { %2001 = vadd.xlane.f32.xlu1 %v2000_v28  ;;  %6357 = vmatpush3.msra.mxu0 %v1812_v24  ;;  %v1811_v28 = vld [vmem:[#allocation13 + $0x8] sm:$0xff]  ;;  %v1801_v24 = vrot.slane %v7985_v55, %v1346_v46 }
 0x5e6   : > { %6358 = vmatprep.subr.mxu0 %v1811_v28 }
 0x5e7   : > { %1977 = vadd.xlane.f32.xlu0 %v1976_v29  ;;  %6359 = vmatpush3.msra.mxu0 %v1811_v28  ;;  %v1810_v29 = vld [vmem:[#allocation13] sm:$0xff] }
 0x5e8   : > { %6360 = vmatprep.subr.mxu0 %v1810_v29 }
 0x5e9   : > { %6361 = vmatpush3.msra.mxu0 %v1810_v29 }
 0x65e   : > { %v1687_v30 = vpop.xlane.xlu1 %1686 }
 0x65f   : > { %v1707_v31 = vmul.f32 0.03125, %v1687_v30  ;;  %v9227_v30 = vmov 0.0  }
 0x660   : > { %v1684_v32 = vpop.xlane.xlu0 %1683  ;;  %6374 = vmatprep.subr.mxu1 %v9227_v30  ;;  %6396 = vmatprep.subr.mxu0 %v9227_v30 }
 0x661   : > { %v8017_v33 = vsub.f32 %v1605_v61, %v1707_v31  ;;  %v1706_v34 = vmul.f32 0.03125, %v1684_v32  ;;  %v8070_v31 = vld [vmem:[#allocation16 + $0x18] sm:$0xff]  ;;  %v8075_v32 = vld [vmem:[#allocation16 + $0x10] sm:$0xff]  ;;  %6382 = vmatprep.mubr.msk.f32.mxu1 %vm7528_vm5, %v9227_v30 }
 0x662   : > { %v1693_v35 = vpop.xlane.xlu1 %1692  ;;  %6375 = vmatpush3.msra.mxu1 %v8070_v31 }
 0x663   : > { %v8019_v37 = vsub.f32 %v1600_v3, %v1706_v34  ;;  %v1709_v38 = vmul.f32 0.03125, %v1693_v35  ;;  %v1723_v40 = vmul.f32 %v8017_v33, %v8017_v33  ;;  %6376 = vmatprep.subr.mxu1 %v9227_v30  ;;  %v8079_v34 = vld [vmem:[#allocation16 + $0x8] sm:$0xff]  ;;  %v8082_v35 = vld [vmem:[#allocation16] sm:$0xff] }
 0x664   : > { %v1690_v41 = vpop.xlane.xlu0 %1689  ;;  %6377 = vmatpush3.msra.mxu1 %v8075_v32 }
 0x665   : > { %v8023_v44 = vsub.f32 %v1615_v5, %v1709_v38  ;;  %v1708_v45 = vmul.f32 0.03125, %v1690_v41  ;;  %v1733_v47 = vsel %vm1085_vm2, %v1723_v40, 0.0  ;;  %v1722_v48 = vmul.f32 %v8019_v37, %v8019_v37  ;;  %6378 = vmatprep.subr.mxu1 %v9227_v30 }
 0x666   : > { %v1699_v49 = vpop.xlane.xlu1 %1698  ;;  %1734 = vadd.xlane.f32.xlu1 %v1733_v47  ;;  %6379 = vmatpush3.msra.mxu1 %v8079_v34 }
 0x667   : > { %v8028_v50 = vsub.f32 %v1610_v9, %v1708_v45  ;;  %v1711_v53 = vmul.f32 0.03125, %v1699_v49  ;;  %v1730_v54 = vsel %vm1085_vm2, %v1722_v48, 0.0  ;;  %v1725_v56 = vmul.f32 %v8023_v44, %v8023_v44  ;;  %6380 = vmatprep.subr.mxu1 %v9227_v30 }
 0x668   : > { %1731 = vadd.xlane.f32.xlu0 %v1730_v54  ;;  %v1696_v59 = vpop.xlane.xlu0 %1695  ;;  %6381 = vmatpush3.msra.mxu1 %v8082_v35 }
 0x669   : > { %v8033_v60 = vsub.f32 %v1625_v12, %v1711_v53  ;;  %v1710_v61 = vmul.f32 0.03125, %v1696_v59  ;;  %v1739_v0 = vsel %vm1085_vm2, %v1725_v56, 0.0  ;;  %v1724_v1 = vmul.f32 %v8028_v50, %v8028_v50  ;;  %6385 = vmatprep.subr.mxu1 %v9227_v30 }
 0x66a   : > { %1740 = vadd.xlane.f32.xlu1 %v1739_v0  ;;  %v1705_v2 = vpop.xlane.xlu1 %1704 }
 0x66b   : > { %v8038_v3 = vsub.f32 %v1620_v15, %v1710_v61  ;;  %v1713_v4 = vmul.f32 0.03125, %v1705_v2  ;;  %v1736_v36 = vsel %vm1085_vm2, %v1724_v1, 0.0  ;;  %v1727_v5 = vmul.f32 %v8033_v60, %v8033_v60 }
 0x66c   : > { %1737 = vadd.xlane.f32.xlu0 %v1736_v36  ;;  %v1702_v7 = vpop.xlane.xlu0 %1701 }
 0x66d   : > { %v8043_v8 = vsub.f32 %v1635_v19, %v1713_v4  ;;  %v1712_v27 = vmul.f32 0.03125, %v1702_v7  ;;  %v1745_v9 = vsel %vm1085_vm2, %v1727_v5, 0.0  ;;  %v1726_v10 = vmul.f32 %v8038_v3, %v8038_v3 }
 0x66e   : > { %1746 = vadd.xlane.f32.xlu1 %v1745_v9  ;;  %v2002_v43 = vpop.xlane.xlu1 %2001 }
 0x66f   : > { %v8048_v42 = vsub.f32 %v1630_v22, %v1712_v27  ;;  %v2003_v11 = vmul.f32 0.03125, %v2002_v43  ;;  %v1742_v12 = vsel %vm1085_vm2, %v1726_v10, 0.0  ;;  %v1729_v13 = vmul.f32 %v8043_v8, %v8043_v8 }
 0x670   : > { %1743 = vadd.xlane.f32.xlu0 %v1742_v12  ;;  %v1978_v14 = vpop.xlane.xlu0 %1977 }
 0x671   : > { %v8054_v51 = vsub.f32 %v8007_v63, %v2003_v11  ;;  %v1979_v15 = vmul.f32 0.03125, %v1978_v14  ;;  %v1751_v52 = vsel %vm1085_vm2, %v1729_v13, 0.0  ;;  %v1728_v16 = vmul.f32 %v8048_v42, %v8048_v42 }
 0x672   : > { %1752 = vadd.xlane.f32.xlu1 %v1751_v52 }
 0x673   : > { %v8060_v17 = vsub.f32 %v8010_v23, %v1979_v15  ;;  %v1748_v18 = vsel %vm1085_vm2, %v1728_v16, 0.0  ;;  %v2005_v19 = vmul.f32 %v8054_v51, %v8054_v51  ;;  %v1789_v15 = vrot.slane %v7985_v55, %v1334_v39 }
 0x674   : > { %1749 = vadd.xlane.f32.xlu0 %v1748_v18 }
 0x675   : > { %v2006_v62 = vsel %vm1999_vm3, %v2005_v19, 0.0  ;;  %v1981_v21 = vmul.f32 %v8060_v17, %v8060_v17 }
 0x676   : > { %2007 = vadd.xlane.f32.xlu1 %v2006_v62 }
 0x677   : > { %v1982_v22 = vsel %vm1975_vm4, %v1981_v21, 0.0 }
 0x678   : > { %1983 = vadd.xlane.f32.xlu0 %v1982_v22 }
 0x6ef   : > { %v1735_v38 = vpop.xlane.xlu1 %1734 }
 0x6f0   : > { %v1755_v40 = vmul.f32 0.03125, %v1735_v38 }
 0x6f1   : > { %v1732_v41 = vpop.xlane.xlu0 %1731 }
 0x6f2   : > { %v1763_v45 = vadd.f32 1e-05, %v1755_v40  ;;  %v1754_v47 = vmul.f32 0.03125, %v1732_v41 }
 0x6f3   : > { %v1741_v48 = vpop.xlane.xlu1 %1740 }
 0x6f4   : > { %7034 = vrsqrt.f32 %v1763_v45  ;;  %v1762_v49 = vadd.f32 1e-05, %v1754_v47  ;;  %v1757_v53 = vmul.f32 0.03125, %v1741_v48 }
 0x6f5   : > { %v1738_v54 = vpop.xlane.xlu0 %1737 }
 0x6f6   : > { %7036 = vrsqrt.f32 %v1762_v49  ;;  %v1765_v56 = vadd.f32 1e-05, %v1757_v53  ;;  %v1756_v59 = vmul.f32 0.03125, %v1738_v54 }
 0x6f7   : > { %v1747_v61 = vpop.xlane.xlu1 %1746 }
 0x6f8   : > { %7038 = vrsqrt.f32 %v1765_v56  ;;  %v1764_v0 = vadd.f32 1e-05, %v1756_v59  ;;  %v1759_v1 = vmul.f32 0.03125, %v1747_v61  ;;  %v1991_v59 = vsub.s32 6, %v7879_v25 }
 0x6f9   : > { %v1744_v2 = vpop.xlane.xlu0 %1743 }
 0x6fa   : > { %7040 = vrsqrt.f32 %v1764_v0  ;;  %v1767_v4 = vadd.f32 1e-05, %v1759_v1  ;;  %v1758_v36 = vmul.f32 0.03125, %v1744_v2  ;;  %v1996_v2 = vsub.s32 7, %v7879_v25 }
 0x6fb   : > { %v1753_v5 = vpop.xlane.xlu1 %1752 }
 0x6fc   : > { %7042 = vrsqrt.f32 %v1767_v4  ;;  %v1766_v7 = vadd.f32 1e-05, %v1758_v36  ;;  %v1761_v27 = vmul.f32 0.03125, %v1753_v5  ;;  %v8109_v4 = vld [vmem:[#allocation14 + $0x8] sm:$0xff] }
 0x6fd   : > { %v1750_v9 = vpop.xlane.xlu0 %1749 }
 0x6fe   : > { %7044 = vrsqrt.f32 %v1766_v7  ;;  %v1769_v10 = vadd.f32 1e-05, %v1761_v27  ;;  %v1760_v43 = vmul.f32 0.03125, %v1750_v9  ;;  %v8114_v7 = vrot.slane %v7985_v55, %v1991_v59 }
 0x6ff   : > { %v2008_v11 = vpop.xlane.xlu1 %2007 }
 0x700   : > { %7046 = vrsqrt.f32 %v1769_v10  ;;  %v1768_v12 = vadd.f32 1e-05, %v1760_v43  ;;  %v2009_v13 = vmul.f32 0.03125, %v2008_v11  ;;  %v8121_v43 = vrot.slane %v7985_v55, %v1996_v2  ;;  %v8136_v55 = vld [vmem:[#allocation16 + $0x30] sm:$0xff] }
 0x701   : > { %v7035_v14 = vpop.eup %7034  ;;  %v1984_v52 = vpop.xlane.xlu0 %1983 }
 0x702   : > { %v1779_v16 = vmul.f32 %v7035_v14, %v8017_v33  ;;  %7048 = vrsqrt.f32 %v1768_v12  ;;  %v2010_v18 = vadd.f32 1e-05, %v2009_v13  ;;  %v1985_v19 = vmul.f32 0.03125, %v1984_v52 }
 0x703   : > { %v7037_v62 = vpop.eup %7036 }
 0x704   : > { %7050 = vrsqrt.f32 %v2010_v18  ;;  %v1986_v21 = vadd.f32 1e-05, %v1985_v19  ;;  %v1778_v22 = vmul.f32 %v7037_v62, %v8019_v37  ;;  %v1791_v28 = vmul.f32 %v1789_v15, %v1779_v16  ;;  %v8147_v18 = vld [vmem:[#allocation16 + $0x20] sm:$0xff] }
 0x705   : > { %v7039_v6 = vpop.eup %7038 }
 0x706   : > { %7052 = vrsqrt.f32 %v1986_v21  ;;  %v1790_v29 = vmul.f32 %v1789_v15, %v1778_v22  ;;  %v1781_v39 = vmul.f32 %v7039_v6, %v8023_v44  ;;  %v1803_v45 = vadd.f32 %v1801_v24, %v1791_v28  ;;  %v5858_v6 = vld [vmem:[%s9208_s10] ss:$0 sm:$0xff] }
 0x707   : > { %v7041_v38 = vpop.eup %7040 }
 0x708   : > { %v1802_v33 = vadd.f32 %v1801_v24, %v1790_v29  ;;  %v1780_v40 = vmul.f32 %v7041_v38, %v8028_v50  ;;  %v1793_v47 = vmul.f32 %v1789_v15, %v1781_v39 }
 0x709   : > { %v7043_v41 = vpop.eup %7042 }
 0x70a   : > { %6362 = vmatprep.mubr.msk.f32.mxu0 %vm1085_vm2, %v1802_v33  ;;  %v1792_v37 = vmul.f32 %v1789_v15, %v1780_v40  ;;  %v1783_v48 = vmul.f32 %v7043_v41, %v8033_v60  ;;  %v1805_v44 = vadd.f32 %v1801_v24, %v1793_v47 }
 0x70b   : > { %v7045_v49 = vpop.eup %7044  ;;  %6363 = vmatmul.mubr.msk.f32.vlgmr.msra.gmra.mxu0 %vm1085_vm2, %v1803_v45 }
 0x70c   : > { %v1804_v46 = vadd.f32 %v1801_v24, %v1792_v37  ;;  %v1782_v53 = vmul.f32 %v7045_v49, %v8038_v3  ;;  %v1795_v56 = vmul.f32 %v1789_v15, %v1783_v48 }
 0x70d   : > { %v7047_v54 = vpop.eup %7046 }
 0x70e   : > { %6365 = vmatprep.mubr.msk.f32.mxu0 %vm1085_vm2, %v1804_v46  ;;  %v1794_v50 = vmul.f32 %v1789_v15, %v1782_v53  ;;  %v1785_v61 = vmul.f32 %v7047_v54, %v8043_v8  ;;  %v1807_v36 = vadd.f32 %v1801_v24, %v1795_v56 }
 0x70f   : > { %v7049_v0 = vpop.eup %7048  ;;  %6366 = vmatmul.mubr.msk.f32.gmra.mxu0 %vm1085_vm2, %v1805_v44  ;;  %v8207_v44 = vrot.slane %v8109_v4, %v1991_v59 }
 0x710   : > { %v1806_v60 = vadd.f32 %v1801_v24, %v1794_v50  ;;  %v1784_v1 = vmul.f32 %v7049_v0, %v8048_v42  ;;  %v1797_v5 = vmul.f32 %v1789_v15, %v1785_v61  ;;  %v2014_v42 = vrot.slane %v8109_v4, 6 }
 0x711   : > { %v7051_v3 = vpop.eup %7050  ;;  %9302 = vst [vmem:[#allocation29_spill] sm:$0xff] %v8207_v44 }
 0x712   : > { %6368 = vmatprep.mubr.msk.f32.mxu0 %vm1085_vm2, %v1806_v60  ;;  %v1796_v8 = vmul.f32 %v1789_v15, %v1784_v1  ;;  %v2012_v11 = vmul.f32 %v7051_v3, %v8054_v51  ;;  %v1809_v12 = vadd.f32 %v1801_v24, %v1797_v5  ;;  %v8128_v15 = vld [vmem:[#allocation16 + $0x38] sm:$0xff]  ;;  %v8142_v51 = vld [vmem:[#allocation16 + $0x28] sm:$0xff] }
 0x713   : > { %v7053_v27 = vpop.eup %7052  ;;  %6369 = vmatmul.mubr.msk.f32.gmra.mxu0 %vm1085_vm2, %v1807_v36 }
 0x714   : > { %v1988_v9 = vmul.f32 %v7053_v27, %v8060_v17  ;;  %v1808_v10 = vadd.f32 %v1801_v24, %v1796_v8  ;;  %v2016_v52 = vmul.f32 %v2014_v42, %v2012_v11  ;;  %v8131_v17 = vrot.slane %v8109_v4, 7 }
 0x716   : > { %v1993_v13 = vmul.f32 %v8114_v7, %v1988_v9  ;;  %6371 = vmatprep.mubr.msk.f32.mxu0 %vm1085_vm2, %v1808_v10  ;;  %9301 = vst [vmem:[#allocation28_spill] sm:$0xff] %v8131_v17  ;;  %v2019_v16 = vadd.f32 %v8131_v17, %v2016_v52 }
 0x717   : > { %6372 = vmatmul.mubr.msk.f32.gmra.mxu0 %vm1085_vm2, %v1809_v12 }
 0x718   : > { %v1998_v14 = vadd.f32 %v8121_v43, %v1993_v13  ;;  %6412 = vmatprep.mubr.msk.f32.mxu0 %vm7528_vm5, %v9227_v30  ;;  %v2098_v19 = vrot.slane %v2019_v16, 2 }
 0x71a   : > { %6383 = vmatmul.mubr.msk.f32.vlgmr.msra.gmra.mxu1 %vm1085_vm2, %v1998_v14 }
 0x71b   : > { %6386 = vmatpush3.msra.mxu1 %v8128_v15  ;;  %6393 = vmatprep.mubr.msk.f32.mxu1 %vm7528_vm5, %v9227_v30 }
 0x71c   : > { %6387 = vmatprep.subr.mxu1 %v9227_v30 }
 0x71d   : > { %6388 = vmatpush3.msra.mxu1 %v8136_v55 }
 0x71e   : > { %6389 = vmatprep.subr.mxu1 %v9227_v30 }
 0x71f   : > { %6390 = vmatpush3.msra.mxu1 %v8142_v51 }
 0x720   : > { %6391 = vmatprep.subr.mxu1 %v9227_v30 }
 0x721   : > { %6392 = vmatpush3.msra.mxu1 %v8147_v18 }
 0x722   : > { %6394 = vmatmul.mubr.msk.f32.vlgmr.msra.gmra.mxu1 %vm1085_vm2, %v2098_v19  ;;  %6415 = vmatprep.subr.mxu1 %v9227_v30 }
 0x723   : > { %6431 = vmatprep.mubr.msk.f32.mxu1 %vm7528_vm5, %v9227_v30 }
 0x7cb   : > { %v6364_v62 = vpop.f32.mrf.mxu0 }
 0x7cc   : > { %v8192_v53 = vadd.f32 %v6364_v62, %v5858_v6 }
 0x7cd   : > { %v1911_v21 = vpop.f32.mrf.mxu0 }
 0x7ce   : > { %v8220_v59 = vadd.f32 %v5858_v6, %v1911_v21 }
 0x7cf   : > { %v6367_v22 = vpop.f32.mrf.mxu0 }
 0x7d0   : > { %v8185_v49 = vadd.f32 %v6367_v22, %v5858_v6  ;;  %9303 = vst [vmem:[#allocation30_spill] sm:$0xff] %v8220_v59 }
 0x7d1   : > { %v1921_v24 = vpop.f32.mrf.mxu0 }
 0x7d2   : > { %v8159_v28 = vadd.f32 %v5858_v6, %v1921_v24 }
 0x7d3   : > { %v6370_v29 = vpop.f32.mrf.mxu0 }
 0x7d4   : > { %v8161_v39 = vadd.f32 %v6370_v29, %v5858_v6  ;;  %2306 = vrot.lane.b32.xlu0 %v8159_v28, %s7529_s3 }
 0x7d5   : > { %v1931_v38 = vpop.f32.mrf.mxu0 }
 0x7d6   : > { %2312 = vrot.lane.b32.xlu1 %v8161_v39, %s7529_s3  ;;  %v8176_v37 = vadd.f32 %v5858_v6, %v1931_v38 }
 0x7d7   : > { %v6373_v33 = vpop.f32.mrf.mxu0 }
 0x7d8   : > { %v8167_v40 = vadd.f32 %v6373_v33, %v5858_v6 }
 0x7d9   : > { %v1941_v41 = vpop.f32.mrf.mxu0 }
 0x7da   : > { %v8169_v45 = vadd.f32 %v5858_v6, %v1941_v41  ;;  %2316 = vrot.lane.b32.xlu1 %v8167_v40, %s7529_s3  ;;  %v2093_v47 = vpop.f32.mrf.mxu1  ;;  %6397 = vmatpush3.xpose.msk.msra.mxu0 %vm1085_vm2, %v8167_v40 }
 0x7db   : > { %6398 = vmatprep.subr.mxu0 %v9227_v30  ;;  %v2094_v56 = vadd.f32 %v2093_v47, %v8207_v44 }
 0x7dc   : > { %2314 = vrot.lane.b32.xlu0 %v8169_v45, %s7529_s3  ;;  %v6384_v48 = vpop.f32.mrf.mxu1 }
 0x7dd   : > { %v2172_v61 = vrot.slane %v2094_v56, 7  ;;  %v8276_v56 = vld [vmem:[%s9211_s13 + $0x18] sm:$0xff] }
 0x7de   : > { %2310 = vrot.lane.b32.xlu1 %v8176_v37, %s7529_s3  ;;  %6399 = vmatpush3.xpose.msk.msra.mxu0 %vm1085_vm2, %v8169_v45 }
 0x7df   : > { %6400 = vmatprep.subr.mxu0 %v9227_v30 }
 0x7e2   : > { %v2167_v46 = vpop.f32.mrf.mxu1  ;;  %2308 = vrot.lane.b32.xlu1 %v8185_v49, %s7529_s3  ;;  %6401 = vmatpush3.xpose.msk.msra.mxu0 %vm1085_vm2, %v8161_v39 }
 0x7e3   : > { %6402 = vmatprep.subr.mxu0 %v9227_v30  ;;  %v2168_v50 = vadd.f32 %v2167_v46, %v8131_v17 }
 0x7e4   : > { %v6395_v54 = vpop.f32.mrf.mxu1 }
 0x7e5   : > { %v2175_v0 = vsel %vm2174_vm6, %v2168_v50, %v2172_v61  ;;  %v8281_v50 = vld [vmem:[%s9211_s13 + $0x10] sm:$0xff]  ;;  %v8288_v61 = vld [vmem:[%s9211_s13 + $0x8] sm:$0xff] }
 0x7e6   : > { %2304 = vrot.lane.b32.xlu1 %v8192_v53, %s7529_s3  ;;  %6403 = vmatpush3.xpose.msk.msra.mxu0 %vm1085_vm2, %v8176_v37 }
 0x7e7   : > { %6404 = vmatprep.subr.mxu0 %v9227_v30 }
 0x7ea   : > { %2413 = vrot.lane.b32.xlu1 %v8167_v40, %s7530_s30  ;;  %6405 = vmatpush3.xpose.msk.msra.mxu0 %vm1085_vm2, %v8185_v49 }
 0x7eb   : > { %6406 = vmatprep.subr.mxu0 %v9227_v30 }
 0x7ee   : > { %2409 = vrot.lane.b32.xlu1 %v8161_v39, %s7530_s30  ;;  %6407 = vmatpush3.xpose.msk.msra.mxu0 %vm1085_vm2, %v8159_v28 }
 0x7ef   : > { %6408 = vmatprep.subr.mxu0 %v9227_v30 }
 0x7f2   : > { %2405 = vrot.lane.b32.xlu1 %v8185_v49, %s7530_s30  ;;  %6409 = vmatpush3.xpose.msk.msra.mxu0 %vm1085_vm2, %v8192_v53 }
 0x7f3   : > { %6410 = vmatprep.subr.mxu0 %v9227_v30 }
 0x7f6   : > { %2401 = vrot.lane.b32.xlu1 %v8192_v53, %s7530_s30  ;;  %6411 = vmatpush3.xpose.msk.msra.mxu0 %vm1085_vm2, %v8220_v59 }
 0x7f7   : > { %6453 = vmatprep.subr.mxu0 %v9227_v30 }
 0x7f9   : > { %6413 = vmatmul.mubr.msk.f32.vlgmr.msra.gmra.mxu0 %vm1085_vm2, %v2175_v0  ;;  %v8295_v0 = vld [vmem:[%s9211_s13] sm:$0xff] }
 0x7fa   : > { %6461 = vmatprep.mubr.msk.f32.mxu0 %vm7528_vm5, %v9227_v30  ;;  %6454 = vmatpush3.msra.mxu0 %v8276_v56 }
 0x7fb   : > { %6455 = vmatprep.subr.mxu0 %v9227_v30 }
 0x7fc   : > { %6456 = vmatpush3.msra.mxu0 %v8281_v50 }
 0x7fd   : > { %6457 = vmatprep.subr.mxu0 %v9227_v30 }
 0x7fe   : > { %6458 = vmatpush3.msra.mxu0 %v8288_v61 }
 0x7ff   : > { %6459 = vmatprep.subr.mxu0 %v9227_v30 }
 0x800   : > { %6460 = vmatpush3.msra.mxu0 %v8295_v0 }
 0x801   : > { %6464 = vmatprep.subr.mxu0 %v9227_v30 }
 0x846   : > { %v8234_v1 = vpop.permute.xlu0 %2306 }
 0x848   : > { %v8232_v60 = vpop.permute.xlu1 %2312 }
 0x84c   : > { %v8236_v2 = vpop.permute.xlu1 %2316 }
 0x84d   : > { %6416 = vmatpush3.msra.mxu1 %v8236_v2 }
 0x84e   : > { %6417 = vmatprep.subr.mxu1 %v9227_v30  ;;  %v8240_v3 = vpop.permute.xlu0 %2314 }
 0x84f   : > { %6418 = vmatpush3.msra.mxu1 %v8240_v3 }
 0x850   : > { %v8243_v36 = vpop.permute.xlu1 %2310  ;;  %6419 = vmatprep.subr.mxu1 %v9227_v30 }
 0x851   : > { %6420 = vmatpush3.msra.mxu1 %v8232_v60 }
 0x852   : > { %6421 = vmatprep.subr.mxu1 %v9227_v30 }
 0x853   : > { %6422 = vmatpush3.msra.mxu1 %v8243_v36 }
 0x854   : > { %v8249_v5 = vpop.permute.xlu1 %2308  ;;  %6423 = vmatprep.subr.mxu1 %v9227_v30 }
 0x855   : > { %6424 = vmatpush3.msra.mxu1 %v8249_v5 }
 0x856   : > { %6425 = vmatprep.subr.mxu1 %v9227_v30 }
 0x857   : > { %6426 = vmatpush3.msra.mxu1 %v8234_v1 }
 0x858   : > { %v8255_v8 = vpop.permute.xlu1 %2304  ;;  %6427 = vmatprep.subr.mxu1 %v9227_v30 }
 0x859   : > { %9304 = vst [vmem:[#allocation31_spill] sm:$0xff] %v8255_v8  ;;  %6428 = vmatpush3.msra.mxu1 %v8255_v8 }
 0x85a   : > { %6429 = vmatprep.subr.mxu1 %v9227_v30 }
 0x8b9   : > { %v2269_v27 = vpop.f32.mrf.mxu0 }
 0x8ba   : > { %v2273_v42 = vmul.f32 0.17677669, %v2269_v27 }
 0x8bb   : > { %v6414_v9 = vpop.f32.mrf.mxu0 }
 0x8bc   : > { %v2275_v10 = vsel %vm2274_vm7, %v2273_v42, -inf  ;;  %v8305_v9 = vpop.permute.xlu1 %2413 }
 0x8bd   : > { %v2276_v11 = vrot.slane %v2275_v10, 4 }
 0x8bf   : > { %v2277_v12 = vmax.f32 %v2275_v10, %v2276_v11 }
 0x8c1   : > { %v2278_v13 = vrot.slane %v2277_v12, 2 }
 0x8c3   : > { %v2279_v14 = vmax.f32 %v2277_v12, %v2278_v13 }
 0x8c5   : > { %v2280_v52 = vrot.slane %v2279_v14, 1 }
 0x8c7   : > { %v2281_v16 = vmax.f32 %v2279_v14, %v2280_v52  ;;  %v8309_v14 = vpop.permute.xlu1 %2409 }
 0x8c9   : > { %v2282_v19 = vsub.f32 %v2273_v42, %v2281_v16 }
 0x8cb   : > { %v2283_v62 = vmul.f32 1.442695, %v2282_v19  ;;  %v8321_v16 = vpop.permute.xlu1 %2405 }
 0x8cd   : > { %7054 = vpow2.f32 %v2283_v62 }
 0x8cf   : > { %v8331_v62 = vpop.permute.xlu1 %2401 }
 0x8d0   : > { %9306 = vst [vmem:[#allocation33_spill] sm:$0xff] %v8331_v62 }
 0x8da   : > { %v7055_v21 = vpop.eup %7054 }
 0x8db   : > { %v2285_v22 = vsel %vm2274_vm7, %v7055_v21, 0.0 }
 0x8dc   : > { %v2286_v6 = vrot.slane %v2285_v22, 4 }
 0x8de   : > { %v2287_v24 = vadd.f32 %v2286_v6, %v2285_v22  ;;  %v8346_v22 = vld [vmem:[%s9211_s13 + $0x58] sm:$0xff]  ;;  %v8353_v6 = vld [vmem:[%s9211_s13 + $0x50] sm:$0xff] }
 0x8df   : > { %9308 = vst [vmem:[#allocation35_spill] sm:$0xff] %v8346_v22  ;;  %9309 = vst [vmem:[#allocation36_spill] sm:$0xff] %v8353_v6 }
 0x8e0   : > { %v2288_v29 = vrot.slane %v2287_v24, 2 }
 0x8e2   : > { %v2289_v38 = vadd.f32 %v2288_v29, %v2287_v24  ;;  %v8360_v24 = vld [vmem:[%s9211_s13 + $0x48] sm:$0xff]  ;;  %v8367_v29 = vld [vmem:[%s9211_s13 + $0x40] sm:$0xff] }
 0x8e3   : > { %9310 = vst [vmem:[#allocation37_spill] sm:$0xff] %v8360_v24  ;;  %9311 = vst [vmem:[#allocation38_spill] sm:$0xff] %v8367_v29 }
 0x8e4   : > { %v2290_v33 = vrot.slane %v2289_v38, 1 }
 0x8e6   : > { %v2291_v41 = vadd.f32 %v2290_v33, %v2289_v38  ;;  %v8374_v38 = vld [vmem:[%s9211_s13 + $0x38] sm:$0xff] }
 0x8e7   : > { %9312 = vst [vmem:[#allocation39_spill] sm:$0xff] %v8374_v38 }
 0x8e8   : > { %7056 = vrcp.f32 %v2291_v41  ;;  %v8380_v41 = vld [vmem:[%s9211_s13 + $0x30] sm:$0xff] }
 0x8e9   : > { %9313 = vst [vmem:[#allocation40_spill] sm:$0xff] %v8380_v41 }
 0x8f5   : > { %v7057_v47 = vpop.eup %7056 }
 0x8f6   : > { %v2293_v48 = vmul.f32 %v7057_v47, %v7055_v21 }
 0x8f8   : > { %v2294_v46 = vadd.f32 1e-08, %v2293_v48  ;;  %v8389_v48 = vld [vmem:[%s9211_s13 + $0x28] sm:$0xff] }
 0x8f9   : > { %9314 = vst [vmem:[#allocation41_spill] sm:$0xff] %v8389_v48 }
 0x8fa   : > { %v2295_v54 = vsel %vm2274_vm7, %v2294_v46, 0.0 }
 0x8fb   : > { %2296 = vadd.xlane.f32.xlu0 %v2295_v54  ;;  %v8403_v54 = vld [vmem:[%s9211_s13 + $0x78] sm:$0xff] }
 0x8fc   : > { %9316 = vst [vmem:[#allocation43_spill] sm:$0xff] %v8403_v54 }
 0x911   : > { %2302 = vrot.lane.b32.xlu0 %v8220_v59, %s7529_s3 }
 0x915   : > { %2411 = vrot.lane.b32.xlu0 %v8169_v45, %s7530_s30 }
 0x919   : > { %2407 = vrot.lane.b32.xlu0 %v8176_v37, %s7530_s30 }
 0x91d   : > { %2403 = vrot.lane.b32.xlu0 %v8159_v28, %s7530_s30 }
 0x921   : > { %2399 = vrot.lane.b32.xlu0 %v8220_v59, %s7530_s30 }
 0x984   : > { %v2297_v27 = vpop.xlane.xlu0 %2296 }
 0x985   : > { %7058 = vrcp.f32 %v2297_v27  ;;  %v8412_v27 = vld [vmem:[%s9211_s13 + $0x70] sm:$0xff] }
 0x986   : > { %9317 = vst [vmem:[#allocation44_spill] sm:$0xff] %v8412_v27 }
 0x988   : > { %v8301_v42 = vpop.permute.xlu0 %2302 }
 0x989   : > { %9305 = vst [vmem:[#allocation32_spill] sm:$0xff] %v8301_v42  ;;  %6430 = vmatpush3.msra.mxu1 %v8301_v42 }
 0x98a   : > { %6434 = vmatprep.subr.mxu1 %v9227_v30 }
 0x98c   : > { %v8307_v11 = vpop.permute.xlu0 %2411 }
 0x990   : > { %v8315_v52 = vpop.permute.xlu0 %2407 }
 0x992   : > { %v7059_v10 = vpop.eup %7058 }
 0x993   : > { %v2299_v12 = vmul.f32 %v7059_v10, %v2294_v46  ;;  %v8396_v46 = vld [vmem:[%s9211_s13 + $0x20] sm:$0xff]  ;;  %v8421_v10 = vld [vmem:[%s9211_s13 + $0x68] sm:$0xff] }
 0x994   : > { %v8325_v19 = vpop.permute.xlu0 %2403  ;;  %9315 = vst [vmem:[#allocation42_spill] sm:$0xff] %v8396_v46  ;;  %9318 = vst [vmem:[#allocation45_spill] sm:$0xff] %v8421_v10 }
 0x995   : > { %v2301_v13 = vrot.slane %v2299_v12, 1 }
 0x997   : > { %6432 = vmatmul.mubr.msk.f32.vlgmr.msra.gmra.mxu1 %vm2326_vm8, %v2301_v13  ;;  %v8429_v13 = vld [vmem:[%s9211_s13 + $0x60] sm:$0xff] }
 0x998   : > { %6435 = vmatpush3.msra.mxu1 %v8305_v9  ;;  %6450 = vmatprep.mubr.msk.f32.mxu1 %vm7528_vm5, %v9227_v30  ;;  %v8335_v21 = vpop.permute.xlu0 %2399  ;;  %9319 = vst [vmem:[#allocation46_spill] sm:$0xff] %v8429_v13 }
 0x999   : > { %6436 = vmatprep.subr.mxu1 %v9227_v30  ;;  %9307 = vst [vmem:[#allocation34_spill] sm:$0xff] %v8335_v21 }
 0x99a   : > { %6437 = vmatpush3.msra.mxu1 %v8307_v11 }
 0x99b   : > { %6438 = vmatprep.subr.mxu1 %v9227_v30 }
 0x99c   : > { %6439 = vmatpush3.msra.mxu1 %v8309_v14 }
 0x99d   : > { %6440 = vmatprep.subr.mxu1 %v9227_v30 }
 0x99e   : > { %6441 = vmatpush3.msra.mxu1 %v8315_v52 }
 0x99f   : > { %6442 = vmatprep.subr.mxu1 %v9227_v30 }
 0x9a0   : > { %6443 = vmatpush3.msra.mxu1 %v8321_v16 }
 0x9a1   : > { %6444 = vmatprep.subr.mxu1 %v9227_v30 }
 0x9a2   : > { %6445 = vmatpush3.msra.mxu1 %v8325_v19 }
 0x9a3   : > { %6446 = vmatprep.subr.mxu1 %v9227_v30 }
 0x9a4   : > { %6447 = vmatpush3.msra.mxu1 %v8331_v62 }
 0x9a5   : > { %6448 = vmatprep.subr.mxu1 %v9227_v30 }
 0x9a6   : > { %6449 = vmatpush3.msra.mxu1 %v8335_v21 }
 0x9a7   : > { %6451 = vmatmul.mubr.msk.f32.vlgmr.msra.gmra.mxu1 %vm2326_vm8, %v2299_v12  ;;  %6475 = vmatprep.subr.mxu1 %v9227_v30  ;;  %v2755_v12 = vrot.slane %v8007_v63, 2 }
 0x9a8   : > { %6483 = vmatprep.mubr.msk.f32.mxu1 %vm7528_vm5, %v9227_v30  ;;  %6476 = vmatpush3.msra.mxu1 %v8346_v22 }
 0x9a9   : > { %6477 = vmatprep.subr.mxu1 %v9227_v30 }
 0x9aa   : > { %6478 = vmatpush3.msra.mxu1 %v8353_v6  ;;  %v8449_v6 = vrot.slane %v1681_v58, 3 }
 0x9ab   : > { %6479 = vmatprep.subr.mxu1 %v9227_v30 }
 0x9ac   : > { %6480 = vmatpush3.msra.mxu1 %v8360_v24  ;;  %9321 = vst [vmem:[#allocation48_spill] sm:$0xff] %v8449_v6 }
 0x9ad   : > { %6481 = vmatprep.subr.mxu1 %v9227_v30 }
 0x9ae   : > { %6482 = vmatpush3.msra.mxu1 %v8367_v29  ;;  %v8445_v29 = vrot.slane %v1681_v58, %v7897_v57 }
 0x9af   : > { %6497 = vmatprep.subr.mxu1 %v9227_v30 }
 0x9b0   : > { %9320 = vst [vmem:[#allocation47_spill] sm:$0xff] %v8445_v29 }
 0xa57   : > { %v2395_v33 = vpop.f32.mrf.mxu1 }
 0xa58   : > { %6462 = vmatmul.mubr.msk.f32.vlgmr.msra.gmra.mxu0 %vm1085_vm2, %v2395_v33 }
 0xa59   : > { %6465 = vmatpush3.msra.mxu0 %v8374_v38  ;;  %v6433_v47 = vpop.f32.mrf.mxu1  ;;  %6472 = vmatprep.mubr.msk.f32.mxu0 %vm7528_vm5, %v9227_v30 }
 0xa5a   : > { %6466 = vmatprep.subr.mxu0 %v9227_v30 }
 0xa5b   : > { %6467 = vmatpush3.msra.mxu0 %v8380_v41 }
 0xa5c   : > { %6468 = vmatprep.subr.mxu0 %v9227_v30 }
 0xa5d   : > { %6469 = vmatpush3.msra.mxu0 %v8389_v48 }
 0xa5e   : > { %6470 = vmatprep.subr.mxu0 %v9227_v30 }
 0xa5f   : > { %6471 = vmatpush3.msra.mxu0 %v8396_v46 }
 0xa60   : > { %6473 = vmatmul.mubr.msk.f32.vlgmr.msra.gmra.mxu0 %vm1085_vm2, %v8010_v23  ;;  %6486 = vmatprep.subr.mxu0 %v9227_v30 }
 0xa61   : > { %6487 = vmatpush3.msra.mxu0 %v8403_v54  ;;  %6494 = vmatprep.mubr.msk.f32.mxu0 %vm7528_vm5, %v9227_v30 }
 0xa62   : > { %6488 = vmatprep.subr.mxu0 %v9227_v30 }
 0xa63   : > { %6489 = vmatpush3.msra.mxu0 %v8412_v27  ;;  %v8454_v27 = vrot.slane %v1681_v58, %v7882_v26 }
 0xa64   : > { %6490 = vmatprep.subr.mxu0 %v9227_v30 }
 0xa65   : > { %6491 = vmatpush3.msra.mxu0 %v8421_v10 }
 0xa66   : > { %6492 = vmatprep.subr.mxu0 %v9227_v30 }
 0xa67   : > { %v2491_v33 = vpop.f32.mrf.mxu1  ;;  %6493 = vmatpush3.msra.mxu0 %v8429_v13 }
 0xa68   : > { %6484 = vmatmul.mubr.msk.f32.vlgmr.msra.gmra.mxu1 %vm1085_vm2, %v2491_v33  ;;  %6495 = vmatmul.mubr.msk.f32.vlgmr.msra.gmra.mxu0 %vm1085_vm2, %v2755_v12 }
 0xa69   : > { %v6452_v47 = vpop.f32.mrf.mxu1  ;;  %6505 = vmatprep.mubr.msk.f32.mxu1 %vm7528_vm5, %v9227_v30  ;;  %6508 = vmatprep.subr.mxu0 %v9227_v30 }
 0xa6a   : > { %6516 = vmatprep.mubr.msk.f32.mxu0 %vm7528_vm5, %v9227_v30 }
 0xb18   : > { %v2568_v63 = vpop.f32.mrf.mxu0 }
 0xb19   : > { %v2569_v54 = vadd.f32 %v2568_v63, %v8454_v27 }
 0xb1a   : > { %v6463_v20 = vpop.f32.mrf.mxu0 }
 0xb20   : > { %v2645_v33 = vpop.f32.mrf.mxu0 }
 0xb21   : > { %v2646_v47 = vadd.f32 %v2645_v33, %v8445_v29  ;;  %v8457_v33 = vrot.slane %v1681_v58, 2 }
 0xb22   : > { %v6474_v24 = vpop.f32.mrf.mxu0 }
 0xb23   : > { %2657 = vrot.lane.b32.xlu1 %v2646_v47, %s7530_s30  ;;  %v2649_v46 = vadd.f32 %v2646_v47, %v2569_v54 }
 0xb25   : > { %v5883_v24 = vmul.f32 -1.442695, %v2649_v46 }
 0xb27   : > { %7060 = vpow2.f32 %v5883_v24 }
 0xb28   : > { %v2750_v22 = vpop.f32.mrf.mxu1  ;;  %v2826_v13 = vpop.f32.mrf.mxu0 }
 0xb29   : > { %v2827_v30 = vadd.f32 %v2826_v13, %v8449_v6  ;;  %v2751_v29 = vadd.f32 %v2750_v22, %v8457_v33 }
 0xb2a   : > { %v6485_v20 = vpop.f32.mrf.mxu1  ;;  %v6496_v10 = vpop.f32.mrf.mxu0 }
 0xb2b   : > { %2838 = vrot.lane.b32.xlu0 %v2827_v30, %s7530_s30  ;;  %v2830_v48 = vadd.f32 %v2827_v30, %v2751_v29 }
 0xb2d   : > { %v5886_v41 = vmul.f32 -1.442695, %v2830_v48 }
 0xb2f   : > { %7062 = vpow2.f32 %v5886_v41 }
 0xb34   : > { %v7061_v13 = vpop.eup %7060 }
 0xb35   : > { %v2653_v20 = vadd.f32 1.0, %v7061_v13 }
 0xb37   : > { %7064 = vrcp.f32 %v2653_v20 }
 0xb3c   : > { %v7063_v10 = vpop.eup %7062 }
 0xb3d   : > { %v2834_v6 = vadd.f32 1.0, %v7063_v10 }
 0xb3f   : > { %7066 = vrcp.f32 %v2834_v6 }
 0xb44   : > { %v7065_v38 = vpop.eup %7064 }
 0xb45   : > { %v2667_v47 = vsub.f32 1.0, %v7065_v38 }
 0xb4c   : > { %v7067_v58 = vpop.eup %7066 }
 0xb95   : > { %v2658_v21 = vpop.permute.xlu1 %2657 }
 0xb96   : > { %v2660_v62 = vmul.f32 %v7065_v38, %v2658_v21 }
 0xb98   : > { %2662 = vrot.lane.b32.xlu1 %v2660_v62, %s7530_s30 }
 0xb9d   : > { %v2839_v63 = vpop.permute.xlu0 %2838 }
 0xb9e   : > { %v2841_v46 = vmul.f32 %v7067_v58, %v2839_v63 }
 0xba0   : > { %2843 = vrot.lane.b32.xlu0 %v2841_v46, %s7530_s30 }
 0xba4   : > { %2673 = vrot.lane.b32.xlu0 %v8010_v23, %s7531_s8 }
 0xba8   : > { %2854 = vrot.lane.b32.xlu0 %v2755_v12, %s7531_s8  ;;  %v2848_v12 = vsub.f32 1.0, %v7067_v58 }
 0xc0a   : > { %v2663_v30 = vpop.permute.xlu1 %2662 }
 0xc0b   : > { %v2665_v22 = vadd.f32 %v2663_v30, %v2569_v54 }
 0xc0d   : > { %7068 = vtanh.f32 %v2665_v22 }
 0xc12   : > { %v2844_v6 = vpop.permute.xlu0 %2843 }
 0xc13   : > { %v2846_v41 = vadd.f32 %v2844_v6, %v2751_v29 }
 0xc15   : > { %7070 = vtanh.f32 %v2846_v41 }
 0xc16   : > { %v2674_v48 = vpop.permute.xlu0 %2673 }
 0xc17   : > { %v2676_v13 = vmul.f32 %v7065_v38, %v2674_v48 }
 0xc1a   : > { %v7069_v21 = vpop.eup %7068  ;;  %v2855_v54 = vpop.permute.xlu0 %2854 }
 0xc1b   : > { %2669 = vrot.lane.b32.xlu1 %v7069_v21, %s7529_s3  ;;  %v2857_v10 = vmul.f32 %v7067_v58, %v2855_v54 }
 0xc22   : > { %v7071_v62 = vpop.eup %7070 }
 0xc23   : > { %2850 = vrot.lane.b32.xlu1 %v7071_v62, %s7529_s3 }
 0xc8d   : > { %v2670_v24 = vpop.permute.xlu1 %2669 }
 0xc8e   : > { %v2672_v20 = vmul.f32 %v2670_v24, %v2667_v47 }
 0xc90   : > { %v8467_v23 = vadd.f32 %v2676_v13, %v2672_v20 }
 0xc92   : > { %2860 = vrot.lane.b32.xlu1 %v8467_v23, %s7529_s3 }
 0xc95   : > { %v2851_v29 = vpop.permute.xlu1 %2850 }
 0xc96   : > { %v2853_v63 = vmul.f32 %v2851_v29, %v2848_v12 }
 0xc98   : > { %v8471_v46 = vadd.f32 %v2857_v10, %v2853_v63  ;;  %v9322_v10 = vsub.s32 3, %v7879_v25 }
 0xc9a   : > { %3061 = vrot.lane.b32.xlu0 %v8471_v46, %s7529_s3  ;;  %v2892_v63 = vrot.slane %v8109_v4, %v9322_v10 }
 0xd04   : > { %v2861_v30 = vpop.permute.xlu1 %2860 }
 0xd05   : > { %v2863_v22 = vsel %vm1975_vm4, %v2861_v30, 0.0  ;;  %v3082_v30 = vrot.slane %v8109_v4, 4 }
 0xd06   : > { %2864 = vadd.xlane.f32.xlu1 %v2863_v22  ;;  %v9323_v22 = vsub.s32 2, %v7879_v25  ;;  %v8505_v25 = vld [vmem:[#allocation16 + $0x40] sm:$0xff] }
 0xd0c   : > { %v3062_v38 = vpop.permute.xlu0 %3061 }
 0xd0d   : > { %v3065_v6 = vsel %vm3064_vm9, %v3062_v38, 0.0  ;;  %v2883_v38 = vrot.slane %v8109_v4, %v9323_v22 }
 0xd0e   : > { %3066 = vadd.xlane.f32.xlu0 %v3065_v6  ;;  %v3087_v6 = vrot.slane %v8109_v4, 5 }
 0xd8f   : > { %v2865_v41 = vpop.xlane.xlu1 %2864 }
 0xd90   : > { %v2866_v21 = vmul.f32 0.03125, %v2865_v41  ;;  %v8495_v41 = vld [vmem:[#allocation16 + $0x58] sm:$0xff] }
 0xd91   : > { %6498 = vmatpush3.msra.mxu1 %v8495_v41 }
 0xd92   : > { %v2867_v62 = vsub.f32 %v8467_v23, %v2866_v21  ;;  %v8497_v21 = vld [vmem:[#allocation16 + $0x50] sm:$0xff] }
 0xd94   : > { %v2868_v58 = vmul.f32 %v2867_v62, %v2867_v62 }
 0xd96   : > { %2870 = vrot.lane.b32.xlu0 %v2868_v58, %s7529_s3  ;;  %v9324_v58 = vmov 0.0  }
 0xd97   : > { %v3067_v48 = vpop.xlane.xlu0 %3066  ;;  %6499 = vmatprep.subr.mxu1 %v9324_v58 }
 0xd98   : > { %v3068_v47 = vmul.f32 0.03125, %v3067_v48  ;;  %v8501_v48 = vld [vmem:[#allocation16 + $0x48] sm:$0xff]  ;;  %6500 = vmatpush3.msra.mxu1 %v8497_v21 }
 0xd99   : > { %6501 = vmatprep.subr.mxu1 %v9324_v58 }
 0xd9a   : > { %v3069_v24 = vsub.f32 %v8471_v46, %v3068_v47  ;;  %6502 = vmatpush3.msra.mxu1 %v8501_v48 }
 0xd9b   : > { %6503 = vmatprep.subr.mxu1 %v9324_v58 }
 0xd9c   : > { %v3070_v13 = vmul.f32 %v3069_v24, %v3069_v24  ;;  %6504 = vmatpush3.msra.mxu1 %v8505_v25 }
 0xd9d   : > { %6519 = vmatprep.subr.mxu1 %v9324_v58 }
 0xd9e   : > { %3072 = vrot.lane.b32.xlu1 %v3070_v13, %s7529_s3 }
 0xe08   : > { %v2871_v20 = vpop.permute.xlu0 %2870 }
 0xe09   : > { %v2873_v54 = vsel %vm1975_vm4, %v2871_v20, 0.0 }
 0xe0a   : > { %2874 = vadd.xlane.f32.xlu1 %v2873_v54 }
 0xe10   : > { %v3073_v12 = vpop.permute.xlu1 %3072 }
 0xe11   : > { %v3075_v29 = vsel %vm3064_vm9, %v3073_v12, 0.0 }
 0xe12   : > { %3076 = vadd.xlane.f32.xlu0 %v3075_v29 }
 0xe1b   : > { %2894 = vrot.lane.b32.xlu1 %v2892_v63, %s7531_s8 }
 0xe1f   : > { %3083 = vrot.lane.b32.xlu1 %v3082_v30, %s7531_s8 }
 0xe28   : > { %2885 = vrot.lane.b32.xlu0 %v2883_v38, %s7531_s8  ;;  %v8515_v38 = vld [vmem:[#allocation16 + $0x78] sm:$0xff] }
 0xe29   : > { %6509 = vmatpush3.msra.mxu0 %v8515_v38 }
 0xe2a   : > { %6510 = vmatprep.subr.mxu0 %v9324_v58 }
 0xe2c   : > { %3088 = vrot.lane.b32.xlu0 %v3087_v6, %s7531_s8 }
 0xe93   : > { %v2875_v47 = vpop.xlane.xlu1 %2874 }
 0xe94   : > { %v2876_v13 = vmul.f32 0.03125, %v2875_v47 }
 0xe96   : > { %v2877_v20 = vadd.f32 1e-05, %v2876_v13 }
 0xe97   : > { %v8513_v22 = vpop.permute.xlu1 %2894 }
 0xe98   : > { %7072 = vrsqrt.f32 %v2877_v20 }
 0xe9b   : > { %v3077_v54 = vpop.xlane.xlu0 %3076  ;;  %v8522_v20 = vpop.permute.xlu1 %3083 }
 0xe9c   : > { %v3078_v12 = vmul.f32 0.03125, %v3077_v54 }
 0xe9e   : > { %v3079_v29 = vadd.f32 1e-05, %v3078_v12 }
 0xe9f   : > { %v8511_v63 = vpop.permute.xlu0 %2885 }
 0xea0   : > { %7074 = vrsqrt.f32 %v3079_v29 }
 0xea3   : > { %v8524_v12 = vpop.permute.xlu0 %3088 }
 0xea5   : > { %v7073_v10 = vpop.eup %7072 }
 0xea6   : > { %v2879_v30 = vmul.f32 %v7073_v10, %v2867_v62  ;;  %v8529_v10 = vld [vmem:[#allocation16 + $0x98] sm:$0xff] }
 0xea8   : > { %v2888_v6 = vmul.f32 %v8511_v63, %v2879_v30 }
 0xeaa   : > { %v2897_v47 = vadd.f32 %v8513_v22, %v2888_v6  ;;  %v8532_v6 = vld [vmem:[#allocation16 + $0x90] sm:$0xff] }
 0xeab   : > { %9325 = vst [vmem:[#allocation49_spill] sm:$0xff] %v8532_v6 }
 0xeac   : > { %2903 = vrot.lane.b32.xlu1 %v2897_v47, %s7529_s3  ;;  %v8542_v47 = vld [vmem:[#allocation16 + $0x80] sm:$0xff] }
 0xead   : > { %v7075_v13 = vpop.eup %7074  ;;  %9327 = vst [vmem:[#allocation51_spill] sm:$0xff] %v8542_v47 }
 0xeae   : > { %v3081_v54 = vmul.f32 %v7075_v13, %v3069_v24  ;;  %v8538_v24 = vld [vmem:[#allocation16 + $0x88] sm:$0xff] }
 0xeaf   : > { %9326 = vst [vmem:[#allocation50_spill] sm:$0xff] %v8538_v24 }
 0xeb0   : > { %v3086_v62 = vmul.f32 %v8522_v20, %v3081_v54  ;;  %v8559_v54 = vld [vmem:[#allocation16 + $0x70] sm:$0xff] }
 0xeb1   : > { %6511 = vmatpush3.msra.mxu0 %v8559_v54 }
 0xeb2   : > { %v3091_v29 = vadd.f32 %v8524_v12, %v3086_v62  ;;  %6512 = vmatprep.subr.mxu0 %v9324_v58 }
 0xeb4   : > { %3093 = vrot.lane.b32.xlu0 %v3091_v29, %s7529_s3 }
 0xf1e   : > { %v2904_v30 = vpop.permute.xlu1 %2903 }
 0xf1f   : > { %6506 = vmatmul.mubr.msk.f32.vlgmr.msra.gmra.mxu1 %vm1085_vm2, %v2904_v30 }
 0xf20   : > { %6520 = vmatpush3.msra.mxu1 %v8529_v10  ;;  %6527 = vmatprep.mubr.msk.f32.mxu1 %vm7528_vm5, %v9324_v58 }
 0xf21   : > { %6521 = vmatprep.subr.mxu1 %v9324_v58 }
 0xf22   : > { %6522 = vmatpush3.msra.mxu1 %v8532_v6  ;;  %v8580_v6 = vld [vmem:[#allocation16 + $0xb0] sm:$0xff] }
 0xf23   : > { %6523 = vmatprep.subr.mxu1 %v9324_v58  ;;  %9330 = vst [vmem:[#allocation54_spill] sm:$0xff] %v8580_v6 }
 0xf24   : > { %6524 = vmatpush3.msra.mxu1 %v8538_v24 }
 0xf25   : > { %6525 = vmatprep.subr.mxu1 %v9324_v58 }
 0xf26   : > { %6526 = vmatpush3.msra.mxu1 %v8542_v47  ;;  %v3094_v13 = vpop.permute.xlu0 %3093  ;;  %v8575_v47 = vld [vmem:[#allocation16 + $0xb8] sm:$0xff] }
 0xf27   : > { %6528 = vmatmul.mubr.msk.f32.vlgmr.msra.gmra.mxu1 %vm1085_vm2, %v3094_v13  ;;  %6541 = vmatprep.subr.mxu1 %v9324_v58  ;;  %9328 = vst [vmem:[#allocation52_spill] sm:$0xff] %v8575_v47 }
 0xf28   : > { %6542 = vmatpush3.msra.mxu1 %v8070_v31  ;;  %6549 = vmatprep.mubr.msk.f32.mxu1 %vm7528_vm5, %v9324_v58  ;;  %v8563_v31 = vld [vmem:[#allocation16 + $0x68] sm:$0xff] }
 0xf29   : > { %6543 = vmatprep.subr.mxu1 %v9324_v58  ;;  %6513 = vmatpush3.msra.mxu0 %v8563_v31 }
 0xf2a   : > { %6544 = vmatpush3.msra.mxu1 %v8075_v32  ;;  %6514 = vmatprep.subr.mxu0 %v9324_v58  ;;  %v8567_v32 = vld [vmem:[#allocation16 + $0x60] sm:$0xff] }
 0xf2b   : > { %6545 = vmatprep.subr.mxu1 %v9324_v58  ;;  %6515 = vmatpush3.msra.mxu0 %v8567_v32 }
 0xf2c   : > { %6546 = vmatpush3.msra.mxu1 %v8079_v34  ;;  %6530 = vmatprep.subr.mxu0 %v9324_v58  ;;  %v1640_v34 = vld [vmem:[#allocation14 + $0x10] sm:$0xf] }
 0xf2d   : > { %6547 = vmatprep.subr.mxu1 %v9324_v58  ;;  %v8578_v24 = vrot.slane %v1640_v34, 2 }
 0xf2e   : > { %6548 = vmatpush3.msra.mxu1 %v8082_v35  ;;  %v8572_v35 = vrot.slane %v1640_v34, %v7882_v26  ;;  %v8586_v26 = vld [vmem:[#allocation16 + $0xa8] sm:$0xff] }
 0xf2f   : > { %6563 = vmatprep.subr.mxu1 %v9324_v58  ;;  %9329 = vst [vmem:[#allocation53_spill] sm:$0xff] %v8578_v24  ;;  %9331 = vst [vmem:[#allocation55_spill] sm:$0xff] %v8586_v26 }
 0xfdf   : > { %v2973_v62 = vpop.f32.mrf.mxu1 }
 0xfe0   : > { %v2974_v29 = vadd.f32 %v2973_v62, %v8572_v35 }
 0xfe1   : > { %v6507_v30 = vpop.f32.mrf.mxu1 }
 0xfe2   : > { %v2977_v13 = vmax.f32 %v2974_v29, 0.0  ;;  %v8591_v30 = vld [vmem:[#allocation16 + $0xa0] sm:$0xff] }
 0xfe3   : > { %9332 = vst [vmem:[#allocation56_spill] sm:$0xff] %v8591_v30 }
 0xfe4   : > { %6517 = vmatmul.mubr.msk.f32.vlgmr.msra.gmra.mxu0 %vm1085_vm2, %v2977_v13 }
 0xfe5   : > { %6531 = vmatpush3.msra.mxu0 %v8575_v47  ;;  %6538 = vmatprep.mubr.msk.f32.mxu0 %vm7528_vm5, %v9324_v58 }
 0xfe6   : > { %6532 = vmatprep.subr.mxu0 %v9324_v58 }
 0xfe7   : > { %v3166_v62 = vpop.f32.mrf.mxu1  ;;  %6533 = vmatpush3.msra.mxu0 %v8580_v6 }
 0xfe8   : > { %v3167_v29 = vadd.f32 %v3166_v62, %v8578_v24  ;;  %6534 = vmatprep.subr.mxu0 %v9324_v58 }
 0xfe9   : > { %v6529_v13 = vpop.f32.mrf.mxu1  ;;  %6535 = vmatpush3.msra.mxu0 %v8586_v26 }
 0xfea   : > { %v3170_v47 = vmax.f32 %v3167_v29, 0.0  ;;  %6536 = vmatprep.subr.mxu0 %v9324_v58 }
 0xfeb   : > { %6537 = vmatpush3.msra.mxu0 %v8591_v30 }
 0xfec   : > { %6539 = vmatmul.mubr.msk.f32.vlgmr.msra.gmra.mxu0 %vm1085_vm2, %v3170_v47  ;;  %6552 = vmatprep.subr.mxu0 %v9324_v58  ;;  %v8609_v47 = vrot.slane %v1640_v34, %v7897_v57 }
 0xfed   : > { %6553 = vmatpush3.msra.mxu0 %v8128_v15  ;;  %6560 = vmatprep.mubr.msk.f32.mxu0 %vm7528_vm5, %v9324_v58 }
 0xfee   : > { %6554 = vmatprep.subr.mxu0 %v9324_v58  ;;  %9333 = vst [vmem:[#allocation57_spill] sm:$0xff] %v8609_v47 }
 0xfef   : > { %6555 = vmatpush3.msra.mxu0 %v8136_v55  ;;  %v8613_v55 = vrot.slane %v1640_v34, 3 }
 0xff0   : > { %6556 = vmatprep.subr.mxu0 %v9324_v58 }
 0xff1   : > { %6557 = vmatpush3.msra.mxu0 %v8142_v51  ;;  %9334 = vst [vmem:[#allocation58_spill] sm:$0xff] %v8613_v55 }
 0xff2   : > { %6558 = vmatprep.subr.mxu0 %v9324_v58 }
 0xff3   : > { %6559 = vmatpush3.msra.mxu0 %v8147_v18 }
 0xff4   : > { %6582 = vmatprep.subr.mxu0 %v9324_v58 }
0x10a4   : > { %v3051_v15 = vpop.f32.mrf.mxu0 }
0x10a5   : > { %v3052_v62 = vadd.f32 %v3051_v15, %v8609_v47 }
0x10a6   : > { %v6518_v29 = vpop.f32.mrf.mxu0 }
0x10a7   : > { %3056 = vrot.lane.b32.xlu1 %v3052_v62, %s7531_s8 }
0x10ac   : > { %v3242_v13 = vpop.f32.mrf.mxu0 }
0x10ad   : > { %v3243_v51 = vadd.f32 %v3242_v13, %v8613_v55 }
0x10ae   : > { %v6540_v24 = vpop.f32.mrf.mxu0 }
0x10af   : > { %3247 = vrot.lane.b32.xlu0 %v3243_v51, %s7531_s8 }
0x1119   : > { %v3057_v18 = vpop.permute.xlu1 %3056 }
0x111a   : > { %v8618_v30 = vadd.f32 %v3057_v18, %v8467_v23 }
0x111c   : > { %3252 = vrot.lane.b32.xlu1 %v8618_v30, %s7529_s3 }
0x1121   : > { %v3248_v57 = vpop.permute.xlu0 %3247 }
0x1122   : > { %v8623_v15 = vadd.f32 %v3248_v57, %v8471_v46 }
0x1124   : > { %3283 = vrot.lane.b32.xlu0 %v8623_v15, %s7529_s3 }
0x118e   : > { %v8627_v34 = vpop.permute.xlu1 %3252 }
0x118f   : > { %v3255_v24 = vsel %vm1975_vm4, %v8627_v34, 0.0 }
0x1190   : > { %3256 = vadd.xlane.f32.xlu1 %v3255_v24 }
0x1196   : > { %v8631_v62 = vpop.permute.xlu0 %3283 }
0x1197   : > { %v3286_v23 = vsel %vm3064_vm9, %v8631_v62, 0.0 }
0x1198   : > { %3287 = vadd.xlane.f32.xlu0 %v3286_v23 }
0x1219   : > { %v3257_v29 = vpop.xlane.xlu1 %3256 }
0x121a   : > { %v3258_v13 = vmul.f32 0.03125, %v3257_v29  ;;  %v3307_v29 = vrot.slane %v8109_v4, 1 }
0x121c   : > { %v3259_v46 = vsub.f32 %v8618_v30, %v3258_v13 }
0x121e   : > { %v3260_v51 = vmul.f32 %v3259_v46, %v3259_v46 }
0x1220   : > { %3262 = vrot.lane.b32.xlu0 %v3260_v51, %s7529_s3 }
0x1221   : > { %v3288_v18 = vpop.xlane.xlu0 %3287 }
0x1222   : > { %v3289_v57 = vmul.f32 0.03125, %v3288_v18 }
0x1224   : > { %v3290_v55 = vsub.f32 %v8623_v15, %v3289_v57 }
0x1226   : > { %v3291_v47 = vmul.f32 %v3290_v55, %v3290_v55 }
0x1228   : > { %3293 = vrot.lane.b32.xlu1 %v3291_v47, %s7529_s3 }
0x1292   : > { %v3263_v24 = vpop.permute.xlu0 %3262 }
0x1293   : > { %v3265_v26 = vsel %vm1975_vm4, %v3263_v24, 0.0 }
0x1294   : > { %3266 = vadd.xlane.f32.xlu1 %v3265_v26 }
0x129a   : > { %v3294_v6 = vpop.permute.xlu1 %3293 }
0x129b   : > { %v3296_v23 = vsel %vm3064_vm9, %v3294_v6, 0.0 }
0x129c   : > { %3297 = vadd.xlane.f32.xlu0 %v3296_v23 }
0x12a5   : > { %3278 = vrot.lane.b32.xlu1 %v8121_v43, %s7531_s8 }
0x12a9   : > { %3303 = vrot.lane.b32.xlu1 %v8109_v4, %s7531_s8 }
0x12b2   : > { %3273 = vrot.lane.b32.xlu0 %v8114_v7, %s7531_s8 }
0x12b6   : > { %3308 = vrot.lane.b32.xlu0 %v3307_v29, %s7531_s8 }
0x131d   : > { %v3267_v47 = vpop.xlane.xlu1 %3266 }
0x131e   : > { %v3268_v13 = vmul.f32 0.03125, %v3267_v47 }
0x1320   : > { %v3269_v26 = vadd.f32 1e-05, %v3268_v13 }
0x1321   : > { %v8651_v23 = vpop.permute.xlu1 %3278 }
0x1322   : > { %7076 = vrsqrt.f32 %v3269_v26 }
0x1325   : > { %v3298_v51 = vpop.xlane.xlu0 %3297  ;;  %v8656_v47 = vpop.permute.xlu1 %3303 }
0x1326   : > { %v3299_v6 = vmul.f32 0.03125, %v3298_v51 }
0x1328   : > { %v3300_v18 = vadd.f32 1e-05, %v3299_v6 }
0x1329   : > { %v8649_v43 = vpop.permute.xlu0 %3273 }
0x132a   : > { %7078 = vrsqrt.f32 %v3300_v18 }
0x132d   : > { %v8658_v26 = vpop.permute.xlu0 %3308 }
0x132f   : > { %v7077_v57 = vpop.eup %7076 }
0x1330   : > { %v3271_v24 = vmul.f32 %v7077_v57, %v3259_v46 }
0x1332   : > { %v3276_v7 = vmul.f32 %v8649_v43, %v3271_v24 }
0x1334   : > { %v3281_v4 = vadd.f32 %v8651_v23, %v3276_v7 }
0x1336   : > { %3313 = vrot.lane.b32.xlu1 %v3281_v4, %s7529_s3 }
0x1337   : > { %v7079_v29 = vpop.eup %7078 }
0x1338   : > { %v3302_v13 = vmul.f32 %v7079_v29, %v3290_v55 }
0x133a   : > { %v3306_v51 = vmul.f32 %v8656_v47, %v3302_v13 }
0x133c   : > { %v3311_v6 = vadd.f32 %v8658_v26, %v3306_v51 }
0x133e   : > { %3388 = vrot.lane.b32.xlu0 %v3311_v6, %s7529_s3 }
0x13a8   : > { %v3314_v46 = vpop.permute.xlu1 %3313 }
0x13a9   : > { %6550 = vmatmul.mubr.msk.f32.vlgmr.msra.gmra.mxu1 %vm1085_vm2, %v3314_v46 }
0x13aa   : > { %6564 = vmatpush3.xpose.msk.msra.mxu1 %vm1085_vm2, %v8167_v40  ;;  %6579 = vmatprep.mubr.msk.f32.mxu1 %vm7528_vm5, %v9324_v58 }
0x13ab   : > { %6565 = vmatprep.subr.mxu1 %v9324_v58 }
0x13ae   : > { %6566 = vmatpush3.xpose.msk.msra.mxu1 %vm1085_vm2, %v8169_v45 }
0x13af   : > { %6567 = vmatprep.subr.mxu1 %v9324_v58 }
0x13b0   : > { %v3389_v55 = vpop.permute.xlu0 %3388 }
0x13b1   : > { %6561 = vmatmul.mubr.msk.f32.vlgmr.msra.gmra.mxu0 %vm1085_vm2, %v3389_v55 }
0x13b2   : > { %6568 = vmatpush3.xpose.msk.msra.mxu1 %vm1085_vm2, %v8161_v39  ;;  %6583 = vmatpush3.msra.mxu0 %v8236_v2 }
0x13b3   : > { %6584 = vmatprep.subr.mxu0 %v9324_v58  ;;  %6569 = vmatprep.subr.mxu1 %v9324_v58 }
0x13b4   : > { %6585 = vmatpush3.msra.mxu0 %v8240_v3  ;;  %6598 = vmatprep.mubr.msk.f32.mxu0 %vm7528_vm5, %v9324_v58 }
0x13b5   : > { %6586 = vmatprep.subr.mxu0 %v9324_v58 }
0x13b6   : > { %6570 = vmatpush3.xpose.msk.msra.mxu1 %vm1085_vm2, %v8176_v37  ;;  %6587 = vmatpush3.msra.mxu0 %v8232_v60 }
0x13b7   : > { %6588 = vmatprep.subr.mxu0 %v9324_v58  ;;  %6571 = vmatprep.subr.mxu1 %v9324_v58 }
0x13b8   : > { %6589 = vmatpush3.msra.mxu0 %v8243_v36 }
0x13b9   : > { %6590 = vmatprep.subr.mxu0 %v9324_v58 }
0x13ba   : > { %6572 = vmatpush3.xpose.msk.msra.mxu1 %vm1085_vm2, %v8185_v49  ;;  %6591 = vmatpush3.msra.mxu0 %v8249_v5 }
0x13bb   : > { %6592 = vmatprep.subr.mxu0 %v9324_v58  ;;  %6573 = vmatprep.subr.mxu1 %v9324_v58 }
0x13bc   : > { %6593 = vmatpush3.msra.mxu0 %v8234_v1 }
0x13bd   : > { %6594 = vmatprep.subr.mxu0 %v9324_v58 }
0x13be   : > { %6574 = vmatpush3.xpose.msk.msra.mxu1 %vm1085_vm2, %v8159_v28  ;;  %6595 = vmatpush3.msra.mxu0 %v8255_v8 }
0x13bf   : > { %6596 = vmatprep.subr.mxu0 %v9324_v58  ;;  %6575 = vmatprep.subr.mxu1 %v9324_v58 }
0x13c0   : > { %6597 = vmatpush3.msra.mxu0 %v8301_v42 }
0x13c1   : > { %6601 = vmatprep.subr.mxu0 %v9324_v58 }
0x13c2   : > { %6576 = vmatpush3.xpose.msk.msra.mxu1 %vm1085_vm2, %v8192_v53 }
0x13c3   : > { %6577 = vmatprep.subr.mxu1 %v9324_v58 }
0x13c6   : > { %6578 = vmatpush3.xpose.msk.msra.mxu1 %vm1085_vm2, %v8220_v59 }
0x13c7   : > { %6620 = vmatprep.subr.mxu1 %v9324_v58 }
0x1469   : > { %v3383_v18 = vpop.f32.mrf.mxu1 }
0x146a   : > { %v3384_v24 = vadd.f32 %v3383_v18, %v8207_v44 }
0x146b   : > { %v6551_v57 = vpop.f32.mrf.mxu1 }
0x146c   : > { %v3463_v4 = vrot.slane %v3384_v24, 7 }
0x1471   : > { %v3458_v7 = vpop.f32.mrf.mxu0 }
0x1472   : > { %v3459_v29 = vadd.f32 %v3458_v7, %v8131_v17 }
0x1473   : > { %v6562_v13 = vpop.f32.mrf.mxu0 }
0x1474   : > { %v3465_v51 = vsel %vm2174_vm6, %v3459_v29, %v3463_v4 }
0x1475   : > { %6580 = vmatmul.mubr.msk.f32.vlgmr.msra.gmra.mxu1 %vm1085_vm2, %v3465_v51 }
0x1476   : > { %6621 = vmatpush3.msra.mxu1 %v8276_v56  ;;  %6628 = vmatprep.mubr.msk.f32.mxu1 %vm7528_vm5, %v9324_v58 }
0x1477   : > { %6622 = vmatprep.subr.mxu1 %v9324_v58 }
0x1478   : > { %6623 = vmatpush3.msra.mxu1 %v8281_v50 }
0x1479   : > { %6624 = vmatprep.subr.mxu1 %v9324_v58 }
0x147a   : > { %6625 = vmatpush3.msra.mxu1 %v8288_v61 }
0x147b   : > { %6626 = vmatprep.subr.mxu1 %v9324_v58 }
0x147c   : > { %6627 = vmatpush3.msra.mxu1 %v8295_v0 }
0x147d   : > { %6642 = vmatprep.subr.mxu1 %v9324_v58 }
0x1535   : > { %v3535_v6 = vpop.f32.mrf.mxu1 }
0x1536   : > { %v3539_v46 = vmul.f32 0.17677669, %v3535_v6 }
0x1537   : > { %v6581_v56 = vpop.f32.mrf.mxu1 }
0x1538   : > { %v3540_v55 = vsel %vm2274_vm7, %v3539_v46, -inf }
0x1539   : > { %v3541_v18 = vrot.slane %v3540_v55, 4 }
0x153b   : > { %v3542_v57 = vmax.f32 %v3540_v55, %v3541_v18 }
0x153d   : > { %v3543_v24 = vrot.slane %v3542_v57, 2 }
0x153f   : > { %v3544_v7 = vmax.f32 %v3542_v57, %v3543_v24 }
0x1541   : > { %v3545_v50 = vrot.slane %v3544_v7, 1 }
0x1543   : > { %v3546_v4 = vmax.f32 %v3544_v7, %v3545_v50  ;;  %v9340_v50 = vld [vmem:[#allocation42_spill] sm:$0xff] }
0x1545   : > { %v3547_v29 = vsub.f32 %v3539_v46, %v3546_v4  ;;  %v9341_v4 = vld [vmem:[#allocation43_spill] sm:$0xff] }
0x1547   : > { %v3548_v13 = vmul.f32 1.442695, %v3547_v29  ;;  %v9342_v29 = vld [vmem:[#allocation44_spill] sm:$0xff] }
0x1549   : > { %7080 = vpow2.f32 %v3548_v13  ;;  %v9343_v13 = vld [vmem:[#allocation45_spill] sm:$0xff] }
0x1556   : > { %v7081_v61 = vpop.eup %7080 }
0x1557   : > { %v3550_v51 = vsel %vm2274_vm7, %v7081_v61, 0.0 }
0x1558   : > { %v3551_v0 = vrot.slane %v3550_v51, 4 }
0x155a   : > { %v3552_v17 = vadd.f32 %v3551_v0, %v3550_v51 }
0x155c   : > { %v3553_v44 = vrot.slane %v3552_v17, 2 }
0x155e   : > { %v3554_v42 = vadd.f32 %v3553_v44, %v3552_v17  ;;  %v9335_v17 = vld [vmem:[#allocation33_spill] sm:$0xff]  ;;  %v9336_v44 = vld [vmem:[#allocation34_spill] sm:$0xff] }
0x1560   : > { %v3555_v6 = vrot.slane %v3554_v42, 1 }
0x1562   : > { %v3556_v56 = vadd.f32 %v3555_v6, %v3554_v42  ;;  %v9339_v42 = vld [vmem:[#allocation41_spill] sm:$0xff] }
0x1564   : > { %7082 = vrcp.f32 %v3556_v56  ;;  %v9349_v56 = vld [vmem:[#allocation47_spill] sm:$0xff] }
0x1571   : > { %v7083_v8 = vpop.eup %7082 }
0x1572   : > { %v3558_v59 = vmul.f32 %v7083_v8, %v7081_v61  ;;  %v9338_v8 = vld [vmem:[#allocation40_spill] sm:$0xff]  ;;  %v9344_v61 = vld [vmem:[#allocation46_spill] sm:$0xff] }
0x1574   : > { %v3559_v55 = vadd.f32 1e-08, %v3558_v59  ;;  %v9337_v59 = vld [vmem:[#allocation39_spill] sm:$0xff] }
0x1576   : > { %v3560_v18 = vsel %vm2274_vm7, %v3559_v55, 0.0 }
0x1577   : > { %3561 = vadd.xlane.f32.xlu1 %v3560_v18 }
0x1600   : > { %v3562_v57 = vpop.xlane.xlu1 %3561 }
0x1601   : > { %7084 = vrcp.f32 %v3562_v57  ;;  %v9350_v57 = vld [vmem:[#allocation48_spill] sm:$0xff] }
0x160e   : > { %v7085_v46 = vpop.eup %7084 }
0x160f   : > { %v3564_v24 = vmul.f32 %v7085_v46, %v3559_v55 }
0x1611   : > { %v3566_v7 = vrot.slane %v3564_v24, 1 }
0x1613   : > { %6599 = vmatmul.mubr.msk.f32.vlgmr.msra.gmra.mxu0 %vm2326_vm8, %v3566_v7 }
0x1614   : > { %6602 = vmatpush3.msra.mxu0 %v8305_v9  ;;  %6617 = vmatprep.mubr.msk.f32.mxu0 %vm7528_vm5, %v9324_v58 }
0x1615   : > { %6603 = vmatprep.subr.mxu0 %v9324_v58 }
0x1616   : > { %6604 = vmatpush3.msra.mxu0 %v8307_v11 }
0x1617   : > { %6605 = vmatprep.subr.mxu0 %v9324_v58 }
0x1618   : > { %6606 = vmatpush3.msra.mxu0 %v8309_v14 }
0x1619   : > { %6607 = vmatprep.subr.mxu0 %v9324_v58 }
0x161a   : > { %6608 = vmatpush3.msra.mxu0 %v8315_v52 }
0x161b   : > { %6609 = vmatprep.subr.mxu0 %v9324_v58 }
0x161c   : > { %6610 = vmatpush3.msra.mxu0 %v8321_v16 }
0x161d   : > { %6611 = vmatprep.subr.mxu0 %v9324_v58 }
0x161e   : > { %6612 = vmatpush3.msra.mxu0 %v8325_v19 }
0x161f   : > { %6613 = vmatprep.subr.mxu0 %v9324_v58 }
0x1620   : > { %6614 = vmatpush3.msra.mxu0 %v9335_v17 }
0x1621   : > { %6615 = vmatprep.subr.mxu0 %v9324_v58 }
0x1622   : > { %6616 = vmatpush3.msra.mxu0 %v9336_v44 }
0x1623   : > { %6618 = vmatmul.mubr.msk.f32.vlgmr.msra.gmra.mxu0 %vm2326_vm8, %v3564_v24  ;;  %6631 = vmatprep.subr.mxu0 %v9324_v58 }
0x1624   : > { %6632 = vmatpush3.msra.mxu0 %v9337_v59  ;;  %6639 = vmatprep.mubr.msk.f32.mxu0 %vm7528_vm5, %v9324_v58 }
0x1625   : > { %6633 = vmatprep.subr.mxu0 %v9324_v58 }
0x1626   : > { %6634 = vmatpush3.msra.mxu0 %v9338_v8 }
0x1627   : > { %6635 = vmatprep.subr.mxu0 %v9324_v58 }
0x1628   : > { %6636 = vmatpush3.msra.mxu0 %v9339_v42 }
0x1629   : > { %6637 = vmatprep.subr.mxu0 %v9324_v58 }
0x162a   : > { %6638 = vmatpush3.msra.mxu0 %v9340_v50 }
0x162b   : > { %6640 = vmatmul.mubr.msk.f32.vlgmr.msra.gmra.mxu0 %vm1085_vm2, %v8627_v34  ;;  %6653 = vmatprep.subr.mxu0 %v9324_v58 }
0x162c   : > { %6654 = vmatpush3.msra.mxu0 %v9341_v4  ;;  %6661 = vmatprep.mubr.msk.f32.mxu0 %vm7528_vm5, %v9324_v58 }
0x162d   : > { %6655 = vmatprep.subr.mxu0 %v9324_v58 }
0x162e   : > { %6656 = vmatpush3.msra.mxu0 %v9342_v29 }
0x162f   : > { %6657 = vmatprep.subr.mxu0 %v9324_v58 }
0x1630   : > { %6658 = vmatpush3.msra.mxu0 %v9343_v13 }
0x1631   : > { %6659 = vmatprep.subr.mxu0 %v9324_v58 }
0x1632   : > { %6660 = vmatpush3.msra.mxu0 %v9344_v61 }
0x1633   : > { %6662 = vmatmul.mubr.msk.f32.vlgmr.msra.gmra.mxu0 %vm1085_vm2, %v8631_v62  ;;  %6675 = vmatprep.subr.mxu0 %v9324_v58  ;;  %v9345_v62 = vld [vmem:[#allocation35_spill] sm:$0xff] }
0x1634   : > { %6676 = vmatpush3.msra.mxu0 %v8515_v38  ;;  %6683 = vmatprep.mubr.msk.f32.mxu0 %vm7528_vm5, %v9324_v58 }
0x1635   : > { %6677 = vmatprep.subr.mxu0 %v9324_v58 }
0x1636   : > { %6678 = vmatpush3.msra.mxu0 %v8559_v54  ;;  %v9346_v54 = vld [vmem:[#allocation36_spill] sm:$0xff] }
0x1637   : > { %6679 = vmatprep.subr.mxu0 %v9324_v58 }
0x1638   : > { %6680 = vmatpush3.msra.mxu0 %v8563_v31  ;;  %v9347_v31 = vld [vmem:[#allocation37_spill] sm:$0xff] }
0x1639   : > { %6681 = vmatprep.subr.mxu0 %v9324_v58 }
0x163a   : > { %6682 = vmatpush3.msra.mxu0 %v8567_v32  ;;  %v9348_v32 = vld [vmem:[#allocation38_spill] sm:$0xff] }
0x163b   : > { %6697 = vmatprep.subr.mxu0 %v9324_v58 }
0x16d3   : > { %v3635_v34 = vpop.f32.mrf.mxu0 }
0x16d4   : > { %6629 = vmatmul.mubr.msk.f32.vlgmr.msra.gmra.mxu1 %vm1085_vm2, %v3635_v34 }
0x16d5   : > { %v6600_v38 = vpop.f32.mrf.mxu0  ;;  %6643 = vmatpush3.msra.mxu1 %v9345_v62  ;;  %6650 = vmatprep.mubr.msk.f32.mxu1 %vm7528_vm5, %v9324_v58 }
0x16d6   : > { %6644 = vmatprep.subr.mxu1 %v9324_v58 }
0x16d7   : > { %6645 = vmatpush3.msra.mxu1 %v9346_v54 }
0x16d8   : > { %6646 = vmatprep.subr.mxu1 %v9324_v58 }
0x16d9   : > { %6647 = vmatpush3.msra.mxu1 %v9347_v31 }
0x16da   : > { %6648 = vmatprep.subr.mxu1 %v9324_v58 }
0x16db   : > { %6649 = vmatpush3.msra.mxu1 %v9348_v32 }
0x16dc   : > { %6664 = vmatprep.subr.mxu1 %v9324_v58 }
0x16e3   : > { %v3707_v51 = vpop.f32.mrf.mxu0 }
0x16e4   : > { %6651 = vmatmul.mubr.msk.f32.vlgmr.msra.gmra.mxu1 %vm1085_vm2, %v3707_v51 }
0x16e5   : > { %v6619_v0 = vpop.f32.mrf.mxu0  ;;  %6665 = vmatpush3.msra.mxu1 %v8495_v41  ;;  %6672 = vmatprep.mubr.msk.f32.mxu1 %vm7528_vm5, %v9324_v58 }
0x16e6   : > { %6666 = vmatprep.subr.mxu1 %v9324_v58 }
0x16e7   : > { %6667 = vmatpush3.msra.mxu1 %v8497_v21 }
0x16e8   : > { %6668 = vmatprep.subr.mxu1 %v9324_v58 }
0x16e9   : > { %6669 = vmatpush3.msra.mxu1 %v8501_v48 }
0x16ea   : > { %6670 = vmatprep.subr.mxu1 %v9324_v58 }
0x16eb   : > { %v3852_v6 = vpop.f32.mrf.mxu0  ;;  %6671 = vmatpush3.msra.mxu1 %v8505_v25 }
0x16ec   : > { %v3853_v55 = vadd.f32 %v3852_v6, %v9349_v56  ;;  %6686 = vmatprep.subr.mxu1 %v9324_v58 }
0x16ed   : > { %v6641_v41 = vpop.f32.mrf.mxu0 }
0x16ee   : > { %3864 = vrot.lane.b32.xlu0 %v3853_v55, %s7530_s30 }
0x16f3   : > { %v4023_v18 = vpop.f32.mrf.mxu0 }
0x16f4   : > { %v4024_v46 = vadd.f32 %v4023_v18, %v9350_v57 }
0x16f5   : > { %v6663_v21 = vpop.f32.mrf.mxu0 }
0x16f6   : > { %4035 = vrot.lane.b32.xlu0 %v4024_v46, %s7530_s30 }
0x1760   : > { %v3865_v38 = vpop.permute.xlu0 %3864 }
0x1768   : > { %v4036_v51 = vpop.permute.xlu0 %4035 }
0x1794   : > { %v3780_v24 = vpop.f32.mrf.mxu1 }
0x1795   : > { %v3781_v48 = vadd.f32 %v3780_v24, %v8454_v27 }
0x1796   : > { %v6630_v7 = vpop.f32.mrf.mxu1 }
0x1797   : > { %v3856_v59 = vadd.f32 %v3853_v55, %v3781_v48 }
0x1799   : > { %v5906_v8 = vmul.f32 -1.442695, %v3856_v59 }
0x179b   : > { %7086 = vpow2.f32 %v5906_v8 }
0x17a4   : > { %v3951_v25 = vpop.f32.mrf.mxu1 }
0x17a5   : > { %v3952_v42 = vadd.f32 %v3951_v25, %v8457_v33 }
0x17a6   : > { %v6652_v50 = vpop.f32.mrf.mxu1 }
0x17a7   : > { %v4027_v4 = vadd.f32 %v4024_v46, %v3952_v42 }
0x17a8   : > { %v7087_v29 = vpop.eup %7086 }
0x17a9   : > { %v3860_v13 = vadd.f32 1.0, %v7087_v29  ;;  %v5909_v61 = vmul.f32 -1.442695, %v4027_v4 }
0x17ab   : > { %7088 = vrcp.f32 %v3860_v13 }
0x17ac   : > { %7090 = vpow2.f32 %v5909_v61 }
0x17b8   : > { %v7089_v34 = vpop.eup %7088 }
0x17b9   : > { %v7091_v62 = vpop.eup %7090  ;;  %v3867_v54 = vmul.f32 %v7089_v34, %v3865_v38  ;;  %v3874_v24 = vsub.f32 1.0, %v7089_v34  ;;  %v3880_v59 = vmul.f32 %v7089_v34, %v8618_v30 }
0x17ba   : > { %v4031_v31 = vadd.f32 1.0, %v7091_v62 }
0x17bb   : > { %3869 = vrot.lane.b32.xlu0 %v3867_v54, %s7530_s30 }
0x17bc   : > { %7092 = vrcp.f32 %v4031_v31 }
0x17c9   : > { %v7093_v32 = vpop.eup %7092 }
0x17ca   : > { %v4038_v0 = vmul.f32 %v7093_v32, %v4036_v51  ;;  %v4051_v4 = vmul.f32 %v7093_v32, %v8623_v15 }
0x17cc   : > { %4040 = vrot.lane.b32.xlu0 %v4038_v0, %s7530_s30 }
0x182d   : > { %v3870_v6 = vpop.permute.xlu0 %3869 }
0x182e   : > { %v3872_v55 = vadd.f32 %v3870_v6, %v3781_v48  ;;  %v4045_v48 = vsub.f32 1.0, %v7093_v32 }
0x1830   : > { %7094 = vtanh.f32 %v3872_v55 }
0x183d   : > { %v7095_v41 = vpop.eup %7094 }
0x183e   : > { %v4041_v18 = vpop.permute.xlu0 %4040  ;;  %3876 = vrot.lane.b32.xlu0 %v7095_v41, %s7529_s3 }
0x183f   : > { %v4043_v46 = vadd.f32 %v4041_v18, %v3952_v42 }
0x1841   : > { %7096 = vtanh.f32 %v4043_v46 }
0x184e   : > { %v7097_v21 = vpop.eup %7096 }
0x184f   : > { %4047 = vrot.lane.b32.xlu0 %v7097_v21, %s7529_s3 }
0x18b0   : > { %v3877_v7 = vpop.permute.xlu0 %3876 }
0x18b1   : > { %v3879_v8 = vmul.f32 %v3877_v7, %v3874_v24 }
0x18b3   : > { %v8813_v25 = vadd.f32 %v3880_v59, %v3879_v8 }
0x18b5   : > { %4054 = vrot.lane.b32.xlu0 %v8813_v25, %s7529_s3 }
0x18c1   : > { %v4048_v50 = vpop.permute.xlu0 %4047 }
0x18c2   : > { %v4050_v29 = vmul.f32 %v4048_v50, %v4045_v48 }
0x18c4   : > { %v8818_v42 = vadd.f32 %v4051_v4, %v4050_v29 }
0x18c6   : > { %4231 = vrot.lane.b32.xlu0 %v8818_v42, %s7529_s3 }
0x1927   : > { %v4055_v13 = vpop.permute.xlu0 %4054 }
0x1928   : > { %v4057_v61 = vsel %vm1975_vm4, %v4055_v13, 0.0 }
0x1929   : > { %4058 = vadd.xlane.f32.xlu0 %v4057_v61 }
0x1938   : > { %v4232_v30 = vpop.permute.xlu0 %4231 }
0x1939   : > { %v4234_v34 = vsel %vm3064_vm9, %v4232_v30, 0.0 }
0x193a   : > { %4235 = vadd.xlane.f32.xlu1 %v4234_v34 }
0x19b2   : > { %v4059_v38 = vpop.xlane.xlu0 %4058 }
0x19b3   : > { %v4060_v62 = vmul.f32 0.03125, %v4059_v38 }
0x19b5   : > { %v4061_v54 = vsub.f32 %v8813_v25, %v4060_v62  ;;  %v9351_v62 = vld [vmem:[#allocation49_spill] sm:$0xff] }
0x19b7   : > { %v4062_v31 = vmul.f32 %v4061_v54, %v4061_v54 }
0x19b9   : > { %4064 = vrot.lane.b32.xlu1 %v4062_v31, %s7529_s3  ;;  %v9353_v31 = vld [vmem:[#allocation51_spill] sm:$0xff] }
0x19c3   : > { %v4236_v15 = vpop.xlane.xlu1 %4235 }
0x19c4   : > { %v4237_v32 = vmul.f32 0.03125, %v4236_v15 }
0x19c6   : > { %v4238_v51 = vsub.f32 %v8818_v42, %v4237_v32  ;;  %v7129_v32 = vld [vmem:[#allocation16 + $0x10] sm:$0xff] }
0x19c8   : > { %v4239_v0 = vmul.f32 %v4238_v51, %v4238_v51 }
0x19ca   : > { %4241 = vrot.lane.b32.xlu1 %v4239_v0, %s7529_s3  ;;  %v7131_v0 = vld [vmem:[#allocation16] sm:$0xff] }
0x1a2b   : > { %v4065_v6 = vpop.permute.xlu1 %4064 }
0x1a2c   : > { %v4067_v55 = vsel %vm1975_vm4, %v4065_v6, 0.0 }
0x1a2d   : > { %4068 = vadd.xlane.f32.xlu1 %v4067_v55 }
0x1a3c   : > { %v4242_v41 = vpop.permute.xlu1 %4241 }
0x1a3d   : > { %v4244_v18 = vsel %vm3064_vm9, %v4242_v41, 0.0 }
0x1a3e   : > { %4245 = vadd.xlane.f32.xlu0 %v4244_v18 }
0x1ab6   : > { %v4069_v46 = vpop.xlane.xlu1 %4068 }
0x1ab7   : > { %v4070_v21 = vmul.f32 0.03125, %v4069_v46  ;;  %v9354_v46 = vld [vmem:[#allocation52_spill] sm:$0xff] }
0x1ab9   : > { %v4071_v24 = vadd.f32 1e-05, %v4070_v21  ;;  %v9355_v21 = vld [vmem:[#allocation54_spill] sm:$0xff] }
0x1abb   : > { %7098 = vrsqrt.f32 %v4071_v24  ;;  %v9356_v24 = vld [vmem:[#allocation55_spill] sm:$0xff] }
0x1ac7   : > { %v4246_v7 = vpop.xlane.xlu0 %4245 }
0x1ac8   : > { %v7099_v59 = vpop.eup %7098  ;;  %v4247_v8 = vmul.f32 0.03125, %v4246_v7  ;;  %v9357_v7 = vld [vmem:[#allocation56_spill] sm:$0xff] }
0x1ac9   : > { %v4073_v48 = vmul.f32 %v7099_v59, %v4061_v54  ;;  %v9352_v54 = vld [vmem:[#allocation50_spill] sm:$0xff] }
0x1aca   : > { %v4248_v50 = vadd.f32 1e-05, %v4247_v8  ;;  %v9358_v8 = vld [vmem:[#allocation53_spill] sm:$0xff] }
0x1acb   : > { %v4074_v4 = vmul.f32 %v4073_v48, %v8511_v63 }
0x1acc   : > { %7100 = vrsqrt.f32 %v4248_v50 }
0x1acd   : > { %v4075_v29 = vadd.f32 %v4074_v4, %v8513_v22 }
0x1acf   : > { %4077 = vrot.lane.b32.xlu0 %v4075_v29, %s7529_s3  ;;  %v7132_v29 = vld [vmem:[#allocation16 + $0x38] sm:$0xff] }
0x1ad9   : > { %v7101_v13 = vpop.eup %7100 }
0x1ada   : > { %v4250_v61 = vmul.f32 %v7101_v13, %v4238_v51  ;;  %v7130_v51 = vld [vmem:[#allocation16 + $0x8] sm:$0xff]  ;;  %v7133_v13 = vld [vmem:[#allocation16 + $0x30] sm:$0xff] }
0x1adc   : > { %v4251_v30 = vmul.f32 %v4250_v61, %v8522_v20  ;;  %v7134_v61 = vld [vmem:[#allocation16 + $0x28] sm:$0xff] }
0x1ade   : > { %v4252_v34 = vadd.f32 %v4251_v30, %v8524_v12  ;;  %v7135_v30 = vld [vmem:[#allocation16 + $0x20] sm:$0xff] }
0x1ae0   : > { %4254 = vrot.lane.b32.xlu0 %v4252_v34, %s7529_s3 }
0x1b41   : > { %v4078_v38 = vpop.permute.xlu0 %4077 }
0x1b42   : > { %6673 = vmatmul.mubr.msk.f32.vlgmr.msra.gmra.mxu1 %vm1085_vm2, %v4078_v38  ;;  %v9359_v38 = vld [vmem:[#allocation57_spill] sm:$0xff] }
0x1b43   : > { %6687 = vmatpush3.msra.mxu1 %v8529_v10  ;;  %6694 = vmatprep.mubr.msk.f32.mxu1 %vm7528_vm5, %v9324_v58  ;;  %v7128_v10 = vld [vmem:[#allocation16 + $0x18] sm:$0xff] }
0x1b44   : > { %6688 = vmatprep.subr.mxu1 %v9324_v58 }
0x1b45   : > { %6689 = vmatpush3.msra.mxu1 %v9351_v62 }
0x1b46   : > { %6690 = vmatprep.subr.mxu1 %v9324_v58 }
0x1b47   : > { %6691 = vmatpush3.msra.mxu1 %v9352_v54 }
0x1b48   : > { %6692 = vmatprep.subr.mxu1 %v9324_v58 }
0x1b49   : > { %6693 = vmatpush3.msra.mxu1 %v9353_v31 }
0x1b4a   : > { %6708 = vmatprep.subr.mxu1 %v9324_v58 }
0x1b52   : > { %v4255_v15 = vpop.permute.xlu0 %4254 }
0x1b53   : > { %6695 = vmatmul.mubr.msk.f32.vlgmr.msra.gmra.mxu1 %vm1085_vm2, %v4255_v15  ;;  %v9360_v15 = vld [vmem:[#allocation58_spill] sm:$0xff] }
0x1b54   : > { %6709 = vmatpush3.msra.mxu1 %v7128_v10  ;;  %6716 = vmatprep.mubr.msk.f32.mxu1 %vm7528_vm5, %v9324_v58 }
0x1b55   : > { %6710 = vmatprep.subr.mxu1 %v9324_v58 }
0x1b56   : > { %6711 = vmatpush3.msra.mxu1 %v7129_v32 }
0x1b57   : > { %6712 = vmatprep.subr.mxu1 %v9324_v58 }
0x1b58   : > { %6713 = vmatpush3.msra.mxu1 %v7130_v51 }
0x1b59   : > { %6714 = vmatprep.subr.mxu1 %v9324_v58 }
0x1b5a   : > { %6715 = vmatpush3.msra.mxu1 %v7131_v0 }
0x1b5b   : > { %6730 = vmatprep.subr.mxu1 %v9324_v58 }
0x1c02   : > { %v4147_v6 = vpop.f32.mrf.mxu1 }
0x1c03   : > { %v4148_v55 = vadd.f32 %v4147_v6, %v8572_v35 }
0x1c04   : > { %v6674_v41 = vpop.f32.mrf.mxu1 }
0x1c05   : > { %v4151_v18 = vmax.f32 %v4148_v55, 0.0 }
0x1c07   : > { %6684 = vmatmul.mubr.msk.f32.vlgmr.msra.gmra.mxu0 %vm1085_vm2, %v4151_v18 }
0x1c08   : > { %6698 = vmatpush3.msra.mxu0 %v9354_v46  ;;  %6705 = vmatprep.mubr.msk.f32.mxu0 %vm7528_vm5, %v9324_v58 }
0x1c09   : > { %6699 = vmatprep.subr.mxu0 %v9324_v58 }
0x1c0a   : > { %6700 = vmatpush3.msra.mxu0 %v9355_v21 }
0x1c0b   : > { %6701 = vmatprep.subr.mxu0 %v9324_v58 }
0x1c0c   : > { %6702 = vmatpush3.msra.mxu0 %v9356_v24 }
0x1c0d   : > { %6703 = vmatprep.subr.mxu0 %v9324_v58 }
0x1c0e   : > { %6704 = vmatpush3.msra.mxu0 %v9357_v7 }
0x1c0f   : > { %6719 = vmatprep.subr.mxu0 %v9324_v58 }
0x1c13   : > { %v4324_v59 = vpop.f32.mrf.mxu1 }
0x1c14   : > { %v4325_v48 = vadd.f32 %v4324_v59, %v9358_v8 }
0x1c15   : > { %v6696_v50 = vpop.f32.mrf.mxu1 }
0x1c16   : > { %v4328_v4 = vmax.f32 %v4325_v48, 0.0 }
0x1c18   : > { %6706 = vmatmul.mubr.msk.f32.vlgmr.msra.gmra.mxu0 %vm1085_vm2, %v4328_v4 }
0x1c19   : > { %6720 = vmatpush3.msra.mxu0 %v7132_v29  ;;  %6727 = vmatprep.mubr.msk.f32.mxu0 %vm7528_vm5, %v9324_v58 }
0x1c1a   : > { %6721 = vmatprep.subr.mxu0 %v9324_v58 }
0x1c1b   : > { %6722 = vmatpush3.msra.mxu0 %v7133_v13 }
0x1c1c   : > { %6723 = vmatprep.subr.mxu0 %v9324_v58 }
0x1c1d   : > { %6724 = vmatpush3.msra.mxu0 %v7134_v61 }
0x1c1e   : > { %6725 = vmatprep.subr.mxu0 %v9324_v58 }
0x1c1f   : > { %6726 = vmatpush3.msra.mxu0 %v7135_v30 }
0x1c20   : > { %6749 = vmatprep.subr.mxu0 %v9324_v58 }
0x1cc7   : > { %v4221_v34 = vpop.f32.mrf.mxu0 }
0x1cc8   : > { %v4222_v62 = vadd.f32 %v4221_v34, %v9359_v38 }
0x1cc9   : > { %v6685_v54 = vpop.f32.mrf.mxu0 }
0x1cca   : > { %4226 = vrot.lane.b32.xlu0 %v4222_v62, %s7531_s8 }
0x1cd8   : > { %v4398_v31 = vpop.f32.mrf.mxu0 }
0x1cd9   : > { %v4399_v10 = vadd.f32 %v4398_v31, %v9360_v15 }
0x1cda   : > { %v6707_v32 = vpop.f32.mrf.mxu0 }
0x1cdb   : > { %4403 = vrot.lane.b32.xlu1 %v4399_v10, %s7531_s8 }
0x1d3c   : > { %v4227_v51 = vpop.permute.xlu0 %4226 }
0x1d3d   : > { %v8879_v0 = vadd.f32 %v4227_v51, %v8813_v25 }
0x1d3f   : > { %4408 = vrot.lane.b32.xlu0 %v8879_v0, %s7529_s3 }
0x1d4d   : > { %v4404_v6 = vpop.permute.xlu1 %4403 }
0x1d4e   : > { %v8884_v55 = vadd.f32 %v4404_v6, %v8818_v42 }
0x1d50   : > { %4431 = vrot.lane.b32.xlu0 %v8884_v55, %s7529_s3 }
0x1db1   : > { %v8888_v41 = vpop.permute.xlu0 %4408 }
0x1db2   : > { %v4411_v18 = vsel %vm1975_vm4, %v8888_v41, 0.0 }
0x1db3   : > { %4412 = vadd.xlane.f32.xlu0 %v4411_v18 }
0x1dc2   : > { %v8892_v46 = vpop.permute.xlu0 %4431 }
0x1dc3   : > { %v4434_v25 = vsel %vm3064_vm9, %v8892_v46, 0.0 }
0x1dc4   : > { %4435 = vadd.xlane.f32.xlu1 %v4434_v25 }
0x1e3c   : > { %v4413_v21 = vpop.xlane.xlu0 %4412 }
0x1e3d   : > { %v4414_v24 = vmul.f32 0.03125, %v4413_v21 }
0x1e3f   : > { %v4415_v42 = vsub.f32 %v8879_v0, %v4414_v24 }
0x1e41   : > { %v4416_v7 = vmul.f32 %v4415_v42, %v4415_v42 }
0x1e43   : > { %4418 = vrot.lane.b32.xlu0 %v4416_v7, %s7529_s3 }
0x1e4d   : > { %v4436_v59 = vpop.xlane.xlu1 %4435 }
0x1e4e   : > { %v4437_v48 = vmul.f32 0.03125, %v4436_v59 }
0x1e50   : > { %v4438_v50 = vsub.f32 %v8884_v55, %v4437_v48 }
0x1e52   : > { %v4439_v4 = vmul.f32 %v4438_v50, %v4438_v50 }
0x1e54   : > { %4441 = vrot.lane.b32.xlu1 %v4439_v4, %s7529_s3 }
0x1eb5   : > { %v4419_v29 = vpop.permute.xlu0 %4418 }
0x1eb6   : > { %v4421_v13 = vsel %vm1975_vm4, %v4419_v29, 0.0 }
0x1eb7   : > { %4422 = vadd.xlane.f32.xlu0 %v4421_v13 }
0x1ec6   : > { %v4442_v61 = vpop.permute.xlu1 %4441 }
0x1ec7   : > { %v4444_v30 = vsel %vm3064_vm9, %v4442_v61, 0.0 }
0x1ec8   : > { %4445 = vadd.xlane.f32.xlu1 %v4444_v30 }
0x1f40   : > { %v4423_v34 = vpop.xlane.xlu0 %4422 }
0x1f41   : > { %v4424_v62 = vmul.f32 0.03125, %v4423_v34 }
0x1f43   : > { %v4425_v54 = vadd.f32 1e-05, %v4424_v62 }
0x1f45   : > { %7102 = vrsqrt.f32 %v4425_v54 }
0x1f51   : > { %v4446_v31 = vpop.xlane.xlu1 %4445 }
0x1f52   : > { %v7103_v10 = vpop.eup %7102  ;;  %v4447_v32 = vmul.f32 0.03125, %v4446_v31 }
0x1f53   : > { %v4427_v51 = vmul.f32 %v7103_v10, %v4415_v42  ;;  %v7139_v42 = vld [vmem:[%s9211_s13] sm:$0xff] }
0x1f54   : > { %v4448_v6 = vadd.f32 1e-05, %v4447_v32 }
0x1f55   : > { %v4428_v18 = vmul.f32 %v4427_v51, %v8649_v43 }
0x1f56   : > { %7104 = vrsqrt.f32 %v4448_v6 }
0x1f57   : > { %v4429_v25 = vadd.f32 %v4428_v18, %v8651_v23  ;;  %v7136_v23 = vld [vmem:[%s9211_s13 + $0x18] sm:$0xff] }
0x1f59   : > { %4454 = vrot.lane.b32.xlu0 %v4429_v25, %s7529_s3 }
0x1f63   : > { %v7105_v21 = vpop.eup %7104 }
0x1f64   : > { %v4450_v24 = vmul.f32 %v7105_v21, %v4438_v50 }
0x1f66   : > { %v4451_v7 = vmul.f32 %v4450_v24, %v8656_v47  ;;  %v7137_v47 = vld [vmem:[%s9211_s13 + $0x10] sm:$0xff] }
0x1f68   : > { %v4452_v59 = vadd.f32 %v4451_v7, %v8658_v26  ;;  %v7138_v26 = vld [vmem:[%s9211_s13 + $0x8] sm:$0xff] }
0x1f6a   : > { %4529 = vrot.lane.b32.xlu1 %v4452_v59, %s7529_s3 }
0x1fcb   : > { %v4455_v48 = vpop.permute.xlu0 %4454 }
0x1fcc   : > { %6717 = vmatmul.mubr.msk.f32.vlgmr.msra.gmra.mxu1 %vm1085_vm2, %v4455_v48 }
0x1fcd   : > { %6731 = vmatpush3.xpose.msk.msra.mxu1 %vm1085_vm2, %v8167_v40  ;;  %6746 = vmatprep.mubr.msk.f32.mxu1 %vm7528_vm5, %v9324_v58 }
0x1fce   : > { %6732 = vmatprep.subr.mxu1 %v9324_v58 }
0x1fd1   : > { %6733 = vmatpush3.xpose.msk.msra.mxu1 %vm1085_vm2, %v8169_v45  ;;  %v9363_v45 = vld [vmem:[#allocation32_spill] sm:$0xff] }
0x1fd2   : > { %6734 = vmatprep.subr.mxu1 %v9324_v58 }
0x1fd5   : > { %6735 = vmatpush3.xpose.msk.msra.mxu1 %vm1085_vm2, %v8161_v39  ;;  %v9362_v39 = vld [vmem:[#allocation31_spill] sm:$0xff] }
0x1fd6   : > { %6736 = vmatprep.subr.mxu1 %v9324_v58 }
0x1fd9   : > { %6737 = vmatpush3.xpose.msk.msra.mxu1 %vm1085_vm2, %v8176_v37 }
0x1fda   : > { %6738 = vmatprep.subr.mxu1 %v9324_v58 }
0x1fdc   : > { %v4530_v40 = vpop.permute.xlu1 %4529 }
0x1fdd   : > { %6728 = vmatmul.mubr.msk.f32.vlgmr.msra.gmra.mxu0 %vm1085_vm2, %v4530_v40  ;;  %6739 = vmatpush3.xpose.msk.msra.mxu1 %vm1085_vm2, %v8185_v49 }
0x1fde   : > { %6750 = vmatpush3.msra.mxu0 %v8236_v2  ;;  %6740 = vmatprep.subr.mxu1 %v9324_v58 }
0x1fdf   : > { %6751 = vmatprep.subr.mxu0 %v9324_v58  ;;  %6765 = vmatprep.mubr.msk.f32.mxu0 %vm7528_vm5, %v9324_v58 }
0x1fe0   : > { %6752 = vmatpush3.msra.mxu0 %v8240_v3  ;;  %v9365_v3 = vld [vmem:[#allocation28_spill] sm:$0xff] }
0x1fe1   : > { %6753 = vmatprep.subr.mxu0 %v9324_v58  ;;  %6741 = vmatpush3.xpose.msk.msra.mxu1 %vm1085_vm2, %v8159_v28  ;;  %v9361_v28 = vld [vmem:[#allocation30_spill] sm:$0xff] }
0x1fe2   : > { %6754 = vmatpush3.msra.mxu0 %v8232_v60  ;;  %6742 = vmatprep.subr.mxu1 %v9324_v58 }
0x1fe3   : > { %6755 = vmatprep.subr.mxu0 %v9324_v58 }
0x1fe4   : > { %6756 = vmatpush3.msra.mxu0 %v8243_v36 }
0x1fe5   : > { %6757 = vmatprep.subr.mxu0 %v9324_v58  ;;  %6743 = vmatpush3.xpose.msk.msra.mxu1 %vm1085_vm2, %v8192_v53  ;;  %v9364_v53 = vld [vmem:[#allocation29_spill] sm:$0xff] }
0x1fe6   : > { %6758 = vmatpush3.msra.mxu0 %v8249_v5  ;;  %6744 = vmatprep.subr.mxu1 %v9324_v58 }
0x1fe7   : > { %6759 = vmatprep.subr.mxu0 %v9324_v58 }
0x1fe8   : > { %6760 = vmatpush3.msra.mxu0 %v8234_v1 }
0x1fe9   : > { %6761 = vmatprep.subr.mxu0 %v9324_v58  ;;  %6745 = vmatpush3.xpose.msk.msra.mxu1 %vm1085_vm2, %v9361_v28 }
0x1fea   : > { %6762 = vmatpush3.msra.mxu0 %v9362_v39  ;;  %6787 = vmatprep.subr.mxu1 %v9324_v58 }
0x1feb   : > { %6763 = vmatprep.subr.mxu0 %v9324_v58 }
0x1fec   : > { %6764 = vmatpush3.msra.mxu0 %v9363_v45 }
0x1fed   : > { %6768 = vmatprep.subr.mxu0 %v9324_v58 }
0x208c   : > { %v4524_v37 = vpop.f32.mrf.mxu1 }
0x208d   : > { %v4525_v60 = vadd.f32 %v4524_v37, %v9364_v53 }
0x208e   : > { %v6718_v49 = vpop.f32.mrf.mxu1 }
0x208f   : > { %v4604_v2 = vrot.slane %v4525_v60, 7  ;;  %v7149_v60 = vld [vmem:[#allocation16 + $0x70] sm:$0xff] }
0x209d   : > { %v4599_v1 = vpop.f32.mrf.mxu0 }
0x209e   : > { %v4600_v36 = vadd.f32 %v4599_v1, %v9365_v3  ;;  %v7150_v1 = vld [vmem:[#allocation16 + $0x68] sm:$0xff] }
0x209f   : > { %v6729_v5 = vpop.f32.mrf.mxu0 }
0x20a0   : > { %v4606_v43 = vsel %vm2174_vm6, %v4600_v36, %v4604_v2  ;;  %v7151_v2 = vld [vmem:[#allocation16 + $0x60] sm:$0xff]  ;;  %v7152_v36 = vld [vmem:[%s9211_s13 + $0x58] sm:$0xff]  ;;  %v7153_v5 = vld [vmem:[%s9211_s13 + $0x50] sm:$0xff] }
0x20a1   : > { %6747 = vmatmul.mubr.msk.f32.vlgmr.msra.gmra.mxu1 %vm1085_vm2, %v4606_v43  ;;  %v7154_v43 = vld [vmem:[%s9211_s13 + $0x48] sm:$0xff] }
0x20a2   : > { %6788 = vmatpush3.msra.mxu1 %v7136_v23  ;;  %6795 = vmatprep.mubr.msk.f32.mxu1 %vm7528_vm5, %v9324_v58  ;;  %v7155_v23 = vld [vmem:[%s9211_s13 + $0x40] sm:$0xff] }
0x20a3   : > { %6789 = vmatprep.subr.mxu1 %v9324_v58 }
0x20a4   : > { %6790 = vmatpush3.msra.mxu1 %v7137_v47 }
0x20a5   : > { %6791 = vmatprep.subr.mxu1 %v9324_v58 }
0x20a6   : > { %6792 = vmatpush3.msra.mxu1 %v7138_v26 }
0x20a7   : > { %6793 = vmatprep.subr.mxu1 %v9324_v58 }
0x20a8   : > { %6794 = vmatpush3.msra.mxu1 %v7139_v42  ;;  %v7156_v42 = vld [vmem:[#allocation16 + $0x58] sm:$0xff] }
0x20a9   : > { %6809 = vmatprep.subr.mxu1 %v9324_v58 }
0x2161   : > { %v4676_v50 = vpop.f32.mrf.mxu1 }
0x2162   : > { %v4680_v4 = vmul.f32 0.17677669, %v4676_v50  ;;  %v7157_v50 = vld [vmem:[#allocation16 + $0x50] sm:$0xff] }
0x2163   : > { %v6748_v29 = vpop.f32.mrf.mxu1 }
0x2164   : > { %v4681_v13 = vsel %vm2274_vm7, %v4680_v4, -inf }
0x2165   : > { %v4682_v61 = vrot.slane %v4681_v13, 4 }
0x2167   : > { %v4683_v30 = vmax.f32 %v4681_v13, %v4682_v61  ;;  %v7159_v13 = vld [vmem:[#allocation16 + $0x40] sm:$0xff] }
0x2169   : > { %v4684_v34 = vrot.slane %v4683_v30, 2 }
0x216b   : > { %v4685_v62 = vmax.f32 %v4683_v30, %v4684_v34 }
0x216d   : > { %v4686_v54 = vrot.slane %v4685_v62, 1 }
0x216f   : > { %v4687_v31 = vmax.f32 %v4685_v62, %v4686_v54 }
0x2171   : > { %v4688_v10 = vsub.f32 %v4680_v4, %v4687_v31  ;;  %v7158_v4 = vld [vmem:[#allocation16 + $0x48] sm:$0xff] }
0x2173   : > { %v4689_v32 = vmul.f32 1.442695, %v4688_v10 }
0x2175   : > { %7106 = vpow2.f32 %v4689_v32 }
0x2182   : > { %v7107_v51 = vpop.eup %7106 }
0x2183   : > { %v4691_v6 = vsel %vm2274_vm7, %v7107_v51, 0.0 }
0x2184   : > { %v4692_v18 = vrot.slane %v4691_v6, 4 }
0x2186   : > { %v4693_v25 = vadd.f32 %v4692_v18, %v4691_v6 }
0x2188   : > { %v4694_v21 = vrot.slane %v4693_v25, 2 }
0x218a   : > { %v4695_v24 = vadd.f32 %v4694_v21, %v4693_v25 }
0x218c   : > { %v4696_v7 = vrot.slane %v4695_v24, 1 }
0x218e   : > { %v4697_v59 = vadd.f32 %v4696_v7, %v4695_v24 }
0x2190   : > { %7108 = vrcp.f32 %v4697_v59 }
0x219d   : > { %v7109_v48 = vpop.eup %7108 }
0x219e   : > { %v4699_v40 = vmul.f32 %v7109_v48, %v7107_v51 }
0x21a0   : > { %v4700_v28 = vadd.f32 1e-08, %v4699_v40 }
0x21a2   : > { %v4701_v39 = vsel %vm2274_vm7, %v4700_v28, 0.0 }
0x21a3   : > { %4702 = vadd.xlane.f32.xlu0 %v4701_v39 }
0x222c   : > { %v4703_v45 = vpop.xlane.xlu0 %4702 }
0x222d   : > { %7110 = vrcp.f32 %v4703_v45 }
0x223a   : > { %v7111_v37 = vpop.eup %7110 }
0x223b   : > { %v4705_v49 = vmul.f32 %v7111_v37, %v4700_v28 }
0x223d   : > { %v4707_v53 = vrot.slane %v4705_v49, 1 }
0x223f   : > { %6766 = vmatmul.mubr.msk.f32.vlgmr.msra.gmra.mxu0 %vm2326_vm8, %v4707_v53 }
0x2240   : > { %6769 = vmatpush3.msra.mxu0 %v8305_v9  ;;  %6784 = vmatprep.mubr.msk.f32.mxu0 %vm7528_vm5, %v9324_v58  ;;  %v7140_v9 = vld [vmem:[%s9211_s13 + $0x38] sm:$0xff] }
0x2241   : > { %6770 = vmatprep.subr.mxu0 %v9324_v58 }
0x2242   : > { %6771 = vmatpush3.msra.mxu0 %v8307_v11  ;;  %v7141_v11 = vld [vmem:[%s9211_s13 + $0x30] sm:$0xff] }
0x2243   : > { %6772 = vmatprep.subr.mxu0 %v9324_v58 }
0x2244   : > { %6773 = vmatpush3.msra.mxu0 %v8309_v14  ;;  %v7142_v14 = vld [vmem:[%s9211_s13 + $0x28] sm:$0xff] }
0x2245   : > { %6774 = vmatprep.subr.mxu0 %v9324_v58 }
0x2246   : > { %6775 = vmatpush3.msra.mxu0 %v8315_v52  ;;  %v7143_v52 = vld [vmem:[%s9211_s13 + $0x20] sm:$0xff] }
0x2247   : > { %6776 = vmatprep.subr.mxu0 %v9324_v58 }
0x2248   : > { %6777 = vmatpush3.msra.mxu0 %v8321_v16  ;;  %v7144_v16 = vld [vmem:[%s9211_s13 + $0x78] sm:$0xff] }
0x2249   : > { %6778 = vmatprep.subr.mxu0 %v9324_v58 }
0x224a   : > { %6779 = vmatpush3.msra.mxu0 %v8325_v19  ;;  %v7145_v19 = vld [vmem:[%s9211_s13 + $0x70] sm:$0xff] }
0x224b   : > { %6780 = vmatprep.subr.mxu0 %v9324_v58 }
0x224c   : > { %6781 = vmatpush3.msra.mxu0 %v9335_v17  ;;  %v7146_v17 = vld [vmem:[%s9211_s13 + $0x68] sm:$0xff] }
0x224d   : > { %6782 = vmatprep.subr.mxu0 %v9324_v58 }
0x224e   : > { %6783 = vmatpush3.msra.mxu0 %v9336_v44  ;;  %v7147_v44 = vld [vmem:[%s9211_s13 + $0x60] sm:$0xff] }
0x224f   : > { %6785 = vmatmul.mubr.msk.f32.vlgmr.msra.gmra.mxu0 %vm2326_vm8, %v4705_v49  ;;  %6798 = vmatprep.subr.mxu0 %v9324_v58 }
0x2250   : > { %6799 = vmatpush3.msra.mxu0 %v7140_v9  ;;  %6806 = vmatprep.mubr.msk.f32.mxu0 %vm7528_vm5, %v9324_v58 }
0x2251   : > { %6800 = vmatprep.subr.mxu0 %v9324_v58 }
0x2252   : > { %6801 = vmatpush3.msra.mxu0 %v7141_v11 }
0x2253   : > { %6802 = vmatprep.subr.mxu0 %v9324_v58 }
0x2254   : > { %6803 = vmatpush3.msra.mxu0 %v7142_v14 }
0x2255   : > { %6804 = vmatprep.subr.mxu0 %v9324_v58 }
0x2256   : > { %6805 = vmatpush3.msra.mxu0 %v7143_v52 }
0x2257   : > { %6807 = vmatmul.mubr.msk.f32.vlgmr.msra.gmra.mxu0 %vm1085_vm2, %v8888_v41  ;;  %6820 = vmatprep.subr.mxu0 %v9324_v58  ;;  %v7148_v41 = vld [vmem:[#allocation16 + $0x78] sm:$0xff] }
0x2258   : > { %6821 = vmatpush3.msra.mxu0 %v7144_v16  ;;  %6828 = vmatprep.mubr.msk.f32.mxu0 %vm7528_vm5, %v9324_v58 }
0x2259   : > { %6822 = vmatprep.subr.mxu0 %v9324_v58 }
0x225a   : > { %6823 = vmatpush3.msra.mxu0 %v7145_v19 }
0x225b   : > { %6824 = vmatprep.subr.mxu0 %v9324_v58 }
0x225c   : > { %6825 = vmatpush3.msra.mxu0 %v7146_v17 }
0x225d   : > { %6826 = vmatprep.subr.mxu0 %v9324_v58 }
0x225e   : > { %6827 = vmatpush3.msra.mxu0 %v7147_v44 }
0x225f   : > { %6829 = vmatmul.mubr.msk.f32.vlgmr.msra.gmra.mxu0 %vm1085_vm2, %v8892_v46  ;;  %6842 = vmatprep.subr.mxu0 %v9324_v58 }
0x2260   : > { %6843 = vmatpush3.msra.mxu0 %v7148_v41  ;;  %6850 = vmatprep.mubr.msk.f32.mxu0 %vm7528_vm5, %v9324_v58 }
0x2261   : > { %6844 = vmatprep.subr.mxu0 %v9324_v58 }
0x2262   : > { %6845 = vmatpush3.msra.mxu0 %v7149_v60 }
0x2263   : > { %6846 = vmatprep.subr.mxu0 %v9324_v58 }
0x2264   : > { %6847 = vmatpush3.msra.mxu0 %v7150_v1 }
0x2265   : > { %6848 = vmatprep.subr.mxu0 %v9324_v58 }
0x2266   : > { %6849 = vmatpush3.msra.mxu0 %v7151_v2 }
0x2267   : > { %6864 = vmatprep.subr.mxu0 %v9324_v58 }
0x22ff   : > { %v4776_v46 = vpop.f32.mrf.mxu0 }
0x2300   : > { %6796 = vmatmul.mubr.msk.f32.vlgmr.msra.gmra.mxu1 %vm1085_vm2, %v4776_v46 }
0x2301   : > { %v6767_v3 = vpop.f32.mrf.mxu0  ;;  %6810 = vmatpush3.msra.mxu1 %v7152_v36  ;;  %6817 = vmatprep.mubr.msk.f32.mxu1 %vm7528_vm5, %v9324_v58 }
0x2302   : > { %6811 = vmatprep.subr.mxu1 %v9324_v58 }
0x2303   : > { %6812 = vmatpush3.msra.mxu1 %v7153_v5 }
0x2304   : > { %6813 = vmatprep.subr.mxu1 %v9324_v58 }
0x2305   : > { %6814 = vmatpush3.msra.mxu1 %v7154_v43 }
0x2306   : > { %6815 = vmatprep.subr.mxu1 %v9324_v58 }
0x2307   : > { %6816 = vmatpush3.msra.mxu1 %v7155_v23 }
0x2308   : > { %6831 = vmatprep.subr.mxu1 %v9324_v58 }
0x230f   : > { %v4848_v47 = vpop.f32.mrf.mxu0 }
0x2310   : > { %6818 = vmatmul.mubr.msk.f32.vlgmr.msra.gmra.mxu1 %vm1085_vm2, %v4848_v47 }
0x2311   : > { %v6786_v26 = vpop.f32.mrf.mxu0  ;;  %6832 = vmatpush3.msra.mxu1 %v7156_v42  ;;  %6839 = vmatprep.mubr.msk.f32.mxu1 %vm7528_vm5, %v9324_v58 }
0x2312   : > { %6833 = vmatprep.subr.mxu1 %v9324_v58 }
0x2313   : > { %6834 = vmatpush3.msra.mxu1 %v7157_v50 }
0x2314   : > { %6835 = vmatprep.subr.mxu1 %v9324_v58 }
0x2315   : > { %6836 = vmatpush3.msra.mxu1 %v7158_v4 }
0x2316   : > { %6837 = vmatprep.subr.mxu1 %v9324_v58 }
0x2317   : > { %v4993_v29 = vpop.f32.mrf.mxu0  ;;  %6838 = vmatpush3.msra.mxu1 %v7159_v13 }
0x2318   : > { %v4994_v61 = vadd.f32 %v4993_v29, %v9349_v56  ;;  %6853 = vmatprep.subr.mxu1 %v9324_v58 }
0x2319   : > { %v6808_v30 = vpop.f32.mrf.mxu0 }
0x231a   : > { %5005 = vrot.lane.b32.xlu1 %v4994_v61, %s7530_s30 }
0x231f   : > { %v5164_v34 = vpop.f32.mrf.mxu0 }
0x2320   : > { %v5165_v62 = vadd.f32 %v5164_v34, %v9350_v57 }
0x2321   : > { %v6830_v54 = vpop.f32.mrf.mxu0 }
0x2322   : > { %5176 = vrot.lane.b32.xlu1 %v5165_v62, %s7530_s30 }
0x238c   : > { %v5006_v48 = vpop.permute.xlu1 %5005 }
0x2394   : > { %v5177_v45 = vpop.permute.xlu1 %5176 }
0x23c0   : > { %v4921_v31 = vpop.f32.mrf.mxu1 }
0x23c1   : > { %v4922_v10 = vadd.f32 %v4921_v31, %v8454_v27 }
0x23c2   : > { %v6797_v32 = vpop.f32.mrf.mxu1 }
0x23c3   : > { %v4997_v51 = vadd.f32 %v4994_v61, %v4922_v10 }
0x23c5   : > { %v5929_v6 = vmul.f32 -1.442695, %v4997_v51 }
0x23c7   : > { %7112 = vpow2.f32 %v5929_v6 }
0x23d0   : > { %v5092_v18 = vpop.f32.mrf.mxu1 }
0x23d1   : > { %v5093_v56 = vadd.f32 %v5092_v18, %v8457_v33 }
0x23d2   : > { %v6819_v25 = vpop.f32.mrf.mxu1 }
0x23d3   : > { %v5168_v21 = vadd.f32 %v5165_v62, %v5093_v56 }
0x23d4   : > { %v7113_v24 = vpop.eup %7112 }
0x23d5   : > { %v5001_v7 = vadd.f32 1.0, %v7113_v24  ;;  %v5932_v59 = vmul.f32 -1.442695, %v5168_v21 }
0x23d7   : > { %7114 = vrcp.f32 %v5001_v7 }
0x23d8   : > { %7116 = vpow2.f32 %v5932_v59 }
0x23e4   : > { %v7115_v57 = vpop.eup %7114 }
0x23e5   : > { %v7117_v40 = vpop.eup %7116  ;;  %v5008_v28 = vmul.f32 %v7115_v57, %v5006_v48  ;;  %v5015_v52 = vsub.f32 1.0, %v7115_v57  ;;  %v5021_v19 = vmul.f32 %v7115_v57, %v8879_v0  ;;  %v7160_v57 = vld [vmem:[#allocation16 + $0x98] sm:$0xff] }
0x23e6   : > { %v5172_v39 = vadd.f32 1.0, %v7117_v40 }
0x23e7   : > { %5010 = vrot.lane.b32.xlu1 %v5008_v28, %s7530_s30 }
0x23e8   : > { %7118 = vrcp.f32 %v5172_v39 }
0x23f5   : > { %v7119_v27 = vpop.eup %7118 }
0x23f6   : > { %v5179_v37 = vmul.f32 %v7119_v27, %v5177_v45  ;;  %v5186_v41 = vsub.f32 1.0, %v7119_v27  ;;  %v5192_v1 = vmul.f32 %v7119_v27, %v8884_v55  ;;  %v7164_v27 = vld [vmem:[#allocation16 + $0xb8] sm:$0xff]  ;;  %v7165_v45 = vld [vmem:[#allocation16 + $0xb0] sm:$0xff] }
0x23f8   : > { %5181 = vrot.lane.b32.xlu1 %v5179_v37, %s7530_s30  ;;  %v7166_v37 = vld [vmem:[#allocation16 + $0xa8] sm:$0xff]  ;;  %s5938_s30 = sshll.u32 %s7640_s27, 6 }
0x23f9   : > { %s9135_s0 = scalar_lea.hbm %s9213_s15, %s5938_s30 }
0x2459   : > { %v5011_v33 = vpop.permute.xlu1 %5010 }
0x245a   : > { %v5013_v49 = vadd.f32 %v5011_v33, %v4922_v10 }
0x245c   : > { %7120 = vtanh.f32 %v5013_v49 }
0x2469   : > { %v7121_v53 = vpop.eup %7120 }
0x246a   : > { %v5182_v9 = vpop.permute.xlu1 %5181  ;;  %5017 = vrot.lane.b32.xlu1 %v7121_v53, %s7529_s3 }
0x246b   : > { %v5184_v11 = vadd.f32 %v5182_v9, %v5093_v56 }
0x246d   : > { %7122 = vtanh.f32 %v5184_v11 }
0x247a   : > { %v7123_v14 = vpop.eup %7122 }
0x247b   : > { %5188 = vrot.lane.b32.xlu1 %v7123_v14, %s7529_s3 }
0x24dc   : > { %v5018_v16 = vpop.permute.xlu1 %5017 }
0x24dd   : > { %v5020_v17 = vmul.f32 %v5018_v16, %v5015_v52 }
0x24df   : > { %v9082_v44 = vadd.f32 %v5021_v19, %v5020_v17 }
0x24e1   : > { %5195 = vrot.lane.b32.xlu0 %v9082_v44, %s7529_s3 }
0x24ed   : > { %v5189_v60 = vpop.permute.xlu1 %5188 }
0x24ee   : > { %v5191_v2 = vmul.f32 %v5189_v60, %v5186_v41 }
0x24f0   : > { %v9087_v46 = vadd.f32 %v5192_v1, %v5191_v2 }
0x24f2   : > { %5372 = vrot.lane.b32.xlu1 %v9087_v46, %s7529_s3 }
0x2553   : > { %v5196_v3 = vpop.permute.xlu0 %5195 }
0x2554   : > { %v5198_v36 = vsel %vm1975_vm4, %v5196_v3, 0.0 }
0x2555   : > { %5199 = vadd.xlane.f32.xlu1 %v5198_v36 }
0x2564   : > { %v5373_v0 = vpop.permute.xlu1 %5372 }
0x2565   : > { %v5375_v5 = vsel %vm3064_vm9, %v5373_v0, 0.0 }
0x2566   : > { %5376 = vadd.xlane.f32.xlu0 %v5375_v5 }
0x25de   : > { %v5200_v43 = vpop.xlane.xlu1 %5199 }
0x25df   : > { %v5201_v23 = vmul.f32 0.03125, %v5200_v43 }
0x25e1   : > { %v5202_v47 = vsub.f32 %v9082_v44, %v5201_v23 }
0x25e3   : > { %v5203_v26 = vmul.f32 %v5202_v47, %v5202_v47 }
0x25e5   : > { %5205 = vrot.lane.b32.xlu1 %v5203_v26, %s7529_s3 }
0x25ef   : > { %v5377_v55 = vpop.xlane.xlu0 %5376 }
0x25f0   : > { %v5378_v42 = vmul.f32 0.03125, %v5377_v55 }
0x25f2   : > { %v5379_v50 = vsub.f32 %v9087_v46, %v5378_v42 }
0x25f4   : > { %v5380_v4 = vmul.f32 %v5379_v50, %v5379_v50 }
0x25f6   : > { %5382 = vrot.lane.b32.xlu0 %v5380_v4, %s7529_s3 }
0x2657   : > { %v5206_v29 = vpop.permute.xlu1 %5205 }
0x2658   : > { %v5208_v13 = vsel %vm1975_vm4, %v5206_v29, 0.0 }
0x2659   : > { %5209 = vadd.xlane.f32.xlu1 %v5208_v13 }
0x2668   : > { %v5383_v61 = vpop.permute.xlu0 %5382 }
0x2669   : > { %v5385_v30 = vsel %vm3064_vm9, %v5383_v61, 0.0 }
0x266a   : > { %5386 = vadd.xlane.f32.xlu0 %v5385_v30 }
0x26e2   : > { %v5210_v34 = vpop.xlane.xlu1 %5209 }
0x26e3   : > { %v5211_v62 = vmul.f32 0.03125, %v5210_v34 }
0x26e5   : > { %v5212_v54 = vadd.f32 1e-05, %v5211_v62 }
0x26e7   : > { %7124 = vrsqrt.f32 %v5212_v54 }
0x26f3   : > { %v5387_v31 = vpop.xlane.xlu0 %5386 }
0x26f4   : > { %v7125_v10 = vpop.eup %7124  ;;  %v5388_v32 = vmul.f32 0.03125, %v5387_v31 }
0x26f5   : > { %v5214_v51 = vmul.f32 %v7125_v10, %v5202_v47 }
0x26f6   : > { %v5389_v6 = vadd.f32 1e-05, %v5388_v32 }
0x26f7   : > { %v5215_v18 = vmul.f32 %v5214_v51, %v8511_v63  ;;  %v7161_v63 = vld [vmem:[#allocation16 + $0x90] sm:$0xff] }
0x26f8   : > { %7126 = vrsqrt.f32 %v5389_v6 }
0x26f9   : > { %v5216_v56 = vadd.f32 %v5215_v18, %v8513_v22  ;;  %v7162_v22 = vld [vmem:[#allocation16 + $0x88] sm:$0xff] }
0x26fb   : > { %5218 = vrot.lane.b32.xlu1 %v5216_v56, %s7529_s3 }
0x2705   : > { %v7127_v25 = vpop.eup %7126 }
0x2706   : > { %v5391_v21 = vmul.f32 %v7127_v25, %v5379_v50 }
0x2708   : > { %v5392_v24 = vmul.f32 %v5391_v21, %v8522_v20  ;;  %v7163_v20 = vld [vmem:[#allocation16 + $0x80] sm:$0xff] }
0x270a   : > { %v5393_v7 = vadd.f32 %v5392_v24, %v8524_v12 }
0x270c   : > { %5395 = vrot.lane.b32.xlu0 %v5393_v7, %s7529_s3 }
0x276d   : > { %v5219_v59 = vpop.permute.xlu1 %5218 }
0x276e   : > { %6840 = vmatmul.mubr.msk.f32.vlgmr.msra.gmra.mxu1 %vm1085_vm2, %v5219_v59 }
0x276f   : > { %6854 = vmatpush3.msra.mxu1 %v7160_v57  ;;  %6861 = vmatprep.mubr.msk.f32.mxu1 %vm7528_vm5, %v9324_v58 }
0x2770   : > { %6855 = vmatprep.subr.mxu1 %v9324_v58 }
0x2771   : > { %6856 = vmatpush3.msra.mxu1 %v7161_v63 }
0x2772   : > { %6857 = vmatprep.subr.mxu1 %v9324_v58 }
0x2773   : > { %6858 = vmatpush3.msra.mxu1 %v7162_v22 }
0x2774   : > { %6859 = vmatprep.subr.mxu1 %v9324_v58 }
0x2775   : > { %6860 = vmatpush3.msra.mxu1 %v7163_v20 }
0x277e   : > { %v5396_v12 = vpop.permute.xlu0 %5395 }
0x277f   : > { %6862 = vmatmul.mubr.msk.f32.vlgmr.msra.gmra.mxu1 %vm1085_vm2, %v5396_v12 }
0x282e   : > { %v5288_v48 = vpop.f32.mrf.mxu1 }
0x282f   : > { %v5289_v40 = vadd.f32 %v5288_v48, %v8572_v35  ;;  %v7167_v35 = vld [vmem:[#allocation16 + $0xa0] sm:$0xff] }
0x2830   : > { %v6841_v28 = vpop.f32.mrf.mxu1 }
0x2831   : > { %v5292_v39 = vmax.f32 %v5289_v40, 0.0 }
0x2833   : > { %6851 = vmatmul.mubr.msk.f32.vlgmr.msra.gmra.mxu0 %vm1085_vm2, %v5292_v39 }
0x2834   : > { %6865 = vmatpush3.msra.mxu0 %v7164_v27  ;;  %6872 = vmatprep.mubr.msk.f32.mxu0 %vm7528_vm5, %v9324_v58 }
0x2835   : > { %6866 = vmatprep.subr.mxu0 %v9324_v58 }
0x2836   : > { %6867 = vmatpush3.msra.mxu0 %v7165_v45 }
0x2837   : > { %6868 = vmatprep.subr.mxu0 %v9324_v58 }
0x2838   : > { %6869 = vmatpush3.msra.mxu0 %v7166_v37 }
0x2839   : > { %6870 = vmatprep.subr.mxu0 %v9324_v58 }
0x283a   : > { %6871 = vmatpush3.msra.mxu0 %v7167_v35 }
0x283f   : > { %v5465_v33 = vpop.f32.mrf.mxu1 }
0x2840   : > { %v5466_v49 = vadd.f32 %v5465_v33, %v9358_v8 }
0x2841   : > { %v6863_v53 = vpop.f32.mrf.mxu1 }
0x2842   : > { %v5469_v9 = vmax.f32 %v5466_v49, 0.0 }
0x2844   : > { %6873 = vmatmul.mubr.msk.f32.vlgmr.msra.gmra.mxu0 %vm1085_vm2, %v5469_v9 }
0x28f3   : > { %v5362_v11 = vpop.f32.mrf.mxu0 }
0x28f4   : > { %v5363_v14 = vadd.f32 %v5362_v11, %v9359_v38 }
0x28f5   : > { %v6852_v52 = vpop.f32.mrf.mxu0 }
0x28f6   : > { %5367 = vrot.lane.b32.xlu1 %v5363_v14, %s7531_s8 }
0x2904   : > { %v5539_v16 = vpop.f32.mrf.mxu0 }
0x2905   : > { %v5540_v58 = vadd.f32 %v5539_v16, %v9360_v15 }
0x2906   : > { %v6874_v19 = vpop.f32.mrf.mxu0 }
0x2907   : > { %5544 = vrot.lane.b32.xlu1 %v5540_v58, %s7531_s8  ;;  %s5559_s8 = scalar_lea.sflag [#allocation4], %s7807_s11 }
0x2968   : > { %v5368_v8 = vpop.permute.xlu1 %5367 }
0x2969   : > { %v5370_v17 = vadd.f32 %v5368_v8, %v9082_v44 }
0x296b   : > { %5549 = vrot.lane.b32.xlu1 %v5370_v17, %s7529_s3 }
0x2979   : > { %v5545_v41 = vpop.permute.xlu1 %5544 }
0x297a   : > { %v5547_v60 = vadd.f32 %v5545_v41, %v9087_v46 }
0x297c   : > { %5554 = vrot.lane.b32.xlu1 %v5547_v60, %s7529_s3  ;;  %s7532_s3 = smov [#allocation17]  }
0x297d   : > { %s7408_s16 = sshll.u32 %s7532_s3, 4  ;;  %s7409_s16 = int_to_ptr.vmem [resolvable:$false] %s7408_s16 }
0x297e   : > { %s7410_s29 = scalar_lea.vmem %s7409_s16, 128  ;;  %p7411_p6 = scmp.lt.s32.totalorder %s5577_s4, %s7409_s16 }
0x297f   : > { %p7412_p12 = scmp.lt.s32.totalorder %s7410_s29, %s7404_s17 }
0x2981   : > { %p7413_p13 = por %p7412_p12, %p7411_p6 }
0x2983   : > { %p7414_p1 = pnand %p7413_p13, %p7407_p0 }
0x29dd   : > { %v5550_v38 = vpop.permute.xlu1 %5549 }
0x29de   : > { %5552 = vst.msk [vmem:[%s676_s25] sm:$0xf] %vm1975_vm4, %v5550_v38 }
0x29df   : > { %7417 = shalt.err (!%p7414_p1)
}
0x29e0   : > { %s7418_s12 = scalar_lea.hbm %s9135_s0, 64  ;;  %s7422_s28 = scalar_lea.hbm %s9213_s15, 128 }
0x29e1   : > { %p7419_p7 = scmp.ne.s32.totalorder %s9135_s0, %s7418_s12  ;;  %p7423_p8 = scmp.lt.s32.totalorder %s9135_s0, %s9213_s15 }
0x29e2   : > { %p7424_p9 = scmp.lt.s32.totalorder %s7422_s28, %s7418_s12 }
0x29e3   : > { %p7420_p2 = pnand %p7419_p7, %p9366_p4 }
0x29e4   : > { %p7425_p10 = por %p7424_p9, %p7423_p8 }
0x29e5   : > { %p7421_p5 = pneg %p7420_p2 }
0x29e7   : > { %p7426_p11 = pnand %p7425_p10, %p7421_p5 }
0x29e9   : > { %7429 = shalt.err (!%p7426_p11)
}
0x29ea   : > { %6911 = dma.vmem_to_hbm [thread:$0]  (%p9366_p4), %s5577_s4, 64, %s9135_s0, %s5559_s8  }
0x29eb   : > { %s5939_s6 = sshll.u32 %s7640_s27, 4  ;;  %s682_s18 = scalar_lea.vmem [#allocation18], %s7807_s11 }
0x29ec   : > { %s5589_s17 = sshll.u32 %s682_s18, 4  ;;  %s9367_s29 = sld [smem:[#allocation68_spill]]  ;;  %s5590_s17 = int_to_ptr.vmem [resolvable:$true] %s5589_s17 }
0x29ed   : > { %s5564_s12 = scalar_lea.sflag [#allocation19], %s7807_s11  ;;  %s7430_s9 = scalar_lea.vmem %s5590_s17, 16 }
0x29ee   : > { %v5555_v15 = vpop.permute.xlu1 %5554  ;;  %p7431_p3 = scmp.ne.s32.totalorder %s5590_s17, %s7430_s9  ;;  %s7533_s28 = smov [#allocation18]  }
0x29ef   : > { %5557 = vst.msk [vmem:[%s682_s18] sm:$0x1] %vm3064_vm9, %v5555_v15  ;;  %s7434_s4 = sshll.u32 %s7533_s28, 4  ;;  %s7435_s4 = int_to_ptr.vmem [resolvable:$false] %s7434_s4 }
0x29f0   : > { %p7432_p0 = pnand %p7431_p3, %p9366_p4  ;;  %s7436_s27 = scalar_lea.vmem %s7435_s4, 32 }
0x29f1   : > { %p7437_p12 = scmp.lt.s32.totalorder %s5590_s17, %s7435_s4  ;;  %p7438_p13 = scmp.lt.s32.totalorder %s7436_s27, %s7430_s9 }
0x29f2   : > { %s9160_s7 = scalar_lea.hbm %s9367_s29, %s5939_s6  ;;  %p7433_p6 = pneg %p7432_p0 }
0x29f3   : > { %p7439_p1 = por %p7438_p13, %p7437_p12 }
0x29f5   : > { %p7440_p7 = pnand %p7439_p1, %p7433_p6 }
0x29f7   : > { %7443 = shalt.err (!%p7440_p7)
}
0x29f8   : > { %s7444_s0 = scalar_lea.hbm %s9160_s7, 16  ;;  %s7448_s30 = scalar_lea.hbm %s9367_s29, 32 }
0x29f9   : > { %p7445_p2 = scmp.ne.s32.totalorder %s9160_s7, %s7444_s0  ;;  %p7449_p9 = scmp.lt.s32.totalorder %s9160_s7, %s9367_s29 }
0x29fa   : > { %p7450_p10 = scmp.lt.s32.totalorder %s7448_s30, %s7444_s0 }
0x29fb   : > { %p7446_p5 = pnand %p7445_p2, %p9366_p4 }
0x29fc   : > { %p7451_p11 = por %p7450_p10, %p7449_p9 }
0x29fd   : > { %p7447_p8 = pneg %p7446_p5 }
0x29ff   : > { %p7452_p3 = pnand %p7451_p11, %p7447_p8 }
0x2a01   : > { %7455 = shalt.err (!%p7452_p3)
}
0x2a02   : > { %6912 = dma.vmem_to_hbm [thread:$0]  (%p9366_p4), %s5590_s17, 16, %s9160_s7, %s5564_s12  }
0x2a03 PF: > { %s5601_s18 = sand.u32 1, %s7502_s21   ;;  %p9368_p0 = scmp.ne.s32.totalorder %s9288_s26, 0 }
0x2a04   : > { %p9369_p6 = scmp.ge.s32.totalorder %s7514_s24, 2  ;;  %s5602_s3 = scalar_lea.sflag [#allocation4], %s5601_s18 }
0x2a06   : > { %p6945_p12 = pnand %p9369_p6, %p9368_p0 }
0x2a08   : > { %p6946_p13 = pneg %p6945_p12 }
0x2a0a   : > { %7493 = dma.done.wait (%p6946_p13), %s5602_s3, 64  }
0x2a0b   : > { %7495 = vsyncadd (%p6946_p13), %s5602_s3, 4294967232  ;;  %s5611_s16 = scalar_lea.sflag [#allocation19], %s5601_s18 }
0x2a0c   : > { %7497 = dma.done.wait (%p6946_p13), %s5611_s16, 16  }
0x2a0d   : > { %7499 = vsyncadd (%p6946_p13), %s5611_s16, 4294967280  ;;  %s9370_s20 = sld [smem:[#allocation27_spill]]  ;;  %p37_p4 = scmp.ge.s32.totalorder %s7744_s19, 4  }
0x2a0e   : > { %s9371_s21 = smov %s7506_s22  ;;  %s9372_s22 = smov %s7510_s23 }
0x2a0f   : > { %s9374_s24 = smov %s7744_s19  ;;  %39 = sbr.rel (!%p37_p4) target bundleno = 22 (0x16), region = 180 }
0x2a13   : > { %s9373_s23 = smov %s9370_s20 }
0x2a14   :  { %5615 = vsyncpa [#allocation3], 1 }
0x2a15   :  { %5617 = vsyncpa [#allocation3 + $0x1], 1 }
0x2a16   :  { %5618 = vsyncpa [#allocation6], 1 }
0x2a17   :  { %5619 = vsyncpa [#allocation9], 1 }
0x2a18   :  { %5620 = vsyncpa [#allocation12], 1 }
0x2a19   :  { %5621 = vsyncpa [#allocation15], 1 }
0x2a1a   :  { %5622 = vsyncpa [#allocation4], 1 }
0x2a1b   :  { %5624 = vsyncpa [#allocation4 + $0x1], 1 }
0x2a1c   :  { %5625 = vsyncpa [#allocation19], 1 }
0x2a1d   :  { %5627 = vsyncpa [#allocation19 + $0x1], 1 }

</bundles_post_ra>
